<compile_context>
chip_gen: v7x
topology: tpu7x:2x2x1
jax: 0.10.0
libtpu: 0.0.40
codegen_flags: <defaults>
</compile_context>

<pallas_src>
import functools

import jax
import jax.numpy as jnp
from jax.experimental import pallas as pl
from jax.experimental.pallas import tpu as pltpu


# ----------------------------------------------------------------------------
# Fused kernel factory.  x rows are time-major / batch-minor: row t*B + b = x[t, b].
# ----------------------------------------------------------------------------
def _make_fused_kernel(L, H, pro_size, n_pred, n_gate, n_exte, p0_split,
                       neg_slope, unroll):
    def kernel(*refs):
        it = iter(refs)
        x_ref = next(it)
        h0_ref = next(it)
        rnn_main = [tuple(next(it) for _ in range(4)) for _ in range(L)]
        rnn_pro = [tuple(next(it) for _ in range(4)) for _ in range(L)]
        w_cat0 = next(it)            # (H, P0 + G0): pred & gate first layers fused
        b_cat0 = next(it)            # (1, P0 + G0)
        pred_rest = [(next(it), next(it)) for _ in range(n_pred - 1)]
        gate_rest = [(next(it), next(it)) for _ in range(n_gate - 1)]
        exte_layers = [(next(it), next(it)) for _ in range(n_exte)]
        pred_ref = next(it)          # (S*B, P) output
        hn_ref = next(it)            # (L, B, H) output
        g_main = next(it)            # (S*B, 3H) f32 scratch
        g_pro = next(it)             # (S*B, 3H) f32 scratch
        seq_main = next(it)          # (S*B, H)  f32 scratch
        seq_pro = next(it)           # (S*B, H)  f32 scratch
        h_main = next(it)            # (B, H)    f32 scratch
        h_pro = next(it)             # (B, H)    f32 scratch

        SB = x_ref.shape[0]
        B = h0_ref.shape[1]
        S = SB // B

        x = x_ref[...]
        cur_main = x                       # layer-0 input, full sensor vector
        cur_pro = x[:, :pro_size]          # layer-0 input, proprioceptive slice (in-kernel)
        # NOTE: exte_input = x[:, -208:] is computed by the torch module but never used.

        for l in range(L):
            wih_m, whh_m, bih_m, bhh_m = rnn_main[l]
            wih_p, whh_p, bih_p, bhh_p = rnn_pro[l]

            # One fused MXU matmul per stack covers the input projection of every
            # timestep and all three gates (r, z, n) at once.  Weights are (IN, 3H).
            g_main[...] = (jnp.dot(cur_main, wih_m[...],
                                   preferred_element_type=jnp.float32)
                           + bih_m[...].astype(jnp.float32))
            g_pro[...] = (jnp.dot(cur_pro, wih_p[...],
                                  preferred_element_type=jnp.float32)
                          + bih_p[...].astype(jnp.float32))

            # Both stacks start from the SAME per-layer hidden (per the module).
            h_main[...] = h0_ref[l].astype(jnp.float32)
            h_pro[...] = h0_ref[l].astype(jnp.float32)

            whm = whh_m[...]                               # (H, 3H) resident
            bhm = bhh_m[...].astype(jnp.float32)           # (1, 3H)
            whp = whh_p[...]
            bhp = bhh_p[...].astype(jnp.float32)

            def step(t, carry, whm=whm, bhm=bhm, whp=whp, bhp=bhp):
                row = pl.multiple_of(t * B, B)
                hm = h_main[...]
                hp = h_pro[...]
                # Two INDEPENDENT recurrent matmuls back-to-back -> MXU latency of one
                # chain is hidden behind the other.
                ghm = jnp.dot(hm, whm, preferred_element_type=jnp.float32) + bhm
                ghp = jnp.dot(hp, whp, preferred_element_type=jnp.float32) + bhp
                gxm = g_main[pl.ds(row, B), :]
                gxp = g_pro[pl.ds(row, B), :]

                rm = jax.nn.sigmoid(gxm[:, :H] + ghm[:, :H])
                zm = jax.nn.sigmoid(gxm[:, H:2 * H] + ghm[:, H:2 * H])
                nm = jnp.tanh(gxm[:, 2 * H:] + rm * ghm[:, 2 * H:])
                hm_new = (1.0 - zm) * nm + zm * hm

                rp = jax.nn.sigmoid(gxp[:, :H] + ghp[:, :H])
                zp = jax.nn.sigmoid(gxp[:, H:2 * H] + ghp[:, H:2 * H])
                np_ = jnp.tanh(gxp[:, 2 * H:] + rp * ghp[:, 2 * H:])
                hp_new = (1.0 - zp) * np_ + zp * hp

                h_main[...] = hm_new
                h_pro[...] = hp_new
                seq_main[pl.ds(row, B), :] = hm_new
                seq_pro[pl.ds(row, B), :] = hp_new
                return carry

            # Fixed partial unroll so the LLO scheduler can overlap the recurrent
            # matmul drain of step t with the gate math of step t+1.
            jax.lax.fori_loop(0, S, step, 0, unroll=unroll)

            hn_ref[l] = h_main[...].astype(hn_ref.dtype)
            cur_main = seq_main[...]       # (S*B, H) f32, stays in VMEM
            cur_pro = seq_pro[...]

        # -------------------- fused gated heads --------------------
        def leaky(v):
            return jnp.where(v > 0, v, neg_slope * v)

        h_out = cur_main
        h_pro_seq = cur_pro

        # pred & gate MLP first layers share h_out -> one fused matmul, then split.
        cat = (jnp.dot(h_out, w_cat0[...], preferred_element_type=jnp.float32)
               + b_cat0[...].astype(jnp.float32))
        ph = cat[:, :p0_split]
        gh = cat[:, p0_split:]

        if n_pred > 1:
            ph = leaky(ph)
            for i, (w, b) in enumerate(pred_rest):
                ph = (jnp.dot(ph, w[...], preferred_element_type=jnp.float32)
                      + b[...].astype(jnp.float32))
                if i < n_pred - 2:
                    ph = leaky(ph)
        if n_gate > 1:
            gh = leaky(gh)
            for i, (w, b) in enumerate(gate_rest):
                gh = (jnp.dot(gh, w[...], preferred_element_type=jnp.float32)
                      + b[...].astype(jnp.float32))
                if i < n_gate - 2:
                    gh = leaky(gh)

        eh = h_pro_seq
        for i, (w, b) in enumerate(exte_layers):
            eh = (jnp.dot(eh, w[...], preferred_element_type=jnp.float32)
                  + b[...].astype(jnp.float32))
            if i < n_exte - 1:
                eh = leaky(eh)

        alpha = jax.nn.sigmoid(gh)
        pred = alpha * eh + ph
        pred_ref[...] = pred.astype(pred_ref.dtype)

    return kernel


# ----------------------------------------------------------------------------
# One-time parameter preparation (all transposes / concatenations happen HERE,
# never per forward call).  Torch convention (out, in) -> kernel convention (in, out).
# ----------------------------------------------------------------------------
def prepare_params(params):
    def gru_flat(layers):
        flat = []
        for (w_ih, w_hh, b_ih, b_hh) in layers:
            flat += [jnp.transpose(w_ih),            # (IN, 3H)
                     jnp.transpose(w_hh),            # (H, 3H)
                     b_ih.reshape(1, -1),
                     b_hh.reshape(1, -1)]
        return flat

    def mlp_t(layers):
        return [(jnp.transpose(W), b.reshape(1, -1)) for (W, b) in layers]

    pred_l = mlp_t(params['hidden_to_pred'])
    gate_l = mlp_t(params['hidden_to_gate'])
    exte_l = mlp_t(params['hidden_to_pred_exte'])

    # Fuse the first layers of pred & gate MLPs (same input) into one matmul.
    w_cat0 = jnp.concatenate([pred_l[0][0], gate_l[0][0]], axis=1)
    b_cat0 = jnp.concatenate([pred_l[0][1], gate_l[0][1]], axis=1)
    p0 = pred_l[0][0].shape[1]

    flat = gru_flat(params['rnn']) + gru_flat(params['rnn_pro']) + [w_cat0, b_cat0]
    for (W, b) in pred_l[1:]:
        flat += [W, b]
    for (W, b) in gate_l[1:]:
        flat += [W, b]
    for (W, b) in exte_l:
        flat += [W, b]

    meta = dict(n_pred=len(pred_l), n_gate=len(gate_l), n_exte=len(exte_l),
                p0=p0, priv=pred_l[-1][0].shape[1])
    return {'flat': flat, 'meta': meta}


# ----------------------------------------------------------------------------
# Full ParallelnoattMode.forward (single pallas_call)
# ----------------------------------------------------------------------------
def parallel_noatt_forward(x, hidden, prepared, config):
    """x: (B, S, sens_size); hidden: (L, B, H) or None.
    Returns (pred (B, S, priv_size), next_hidden (L, B, H))."""
    B, S, F = x.shape
    H = config['hidden_size']
    L = config['num_rnn_layers']
    pro_size = F - 208
    assert pro_size > 0, "sens_size must exceed 208 (module hard-codes a 208-wide exte slice)"

    if config.get('reset_hidden_each_epoch', True) or hidden is None:
        hidden = jnp.zeros((L, B, H), x.dtype)

    x2d = jnp.transpose(x, (1, 0, 2)).reshape(S * B, F)   # time-major rows

    flat = prepared['flat']
    meta = prepared['meta']
    P = meta['priv']
    SB = S * B

    kernel = _make_fused_kernel(
        L=L, H=H, pro_size=pro_size,
        n_pred=meta['n_pred'], n_gate=meta['n_gate'], n_exte=meta['n_exte'],
        p0_split=meta['p0'], neg_slope=0.01, unroll=min(8, S))

    vmem = lambda: pl.BlockSpec(memory_space=pltpu.MemorySpace.VMEM)

    # Everything (inputs + outputs + scratch) is VMEM-resident for the whole call.
    scratch = [pltpu.VMEM((SB, 3 * H), jnp.float32),   # main-stack fused input gates
               pltpu.VMEM((SB, 3 * H), jnp.float32),   # pro-stack fused input gates
               pltpu.VMEM((SB, H), jnp.float32),       # main-stack layer output
               pltpu.VMEM((SB, H), jnp.float32),       # pro-stack layer output
               pltpu.VMEM((B, H), jnp.float32),        # running hidden, main
               pltpu.VMEM((B, H), jnp.float32)]        # running hidden, pro

    pred2d, next_hidden = pl.pallas_call(
        kernel,
        out_shape=(jax.ShapeDtypeStruct((SB, P), x.dtype),
                   jax.ShapeDtypeStruct((L, B, H), x.dtype)),
        in_specs=[vmem() for _ in range(2 + len(flat))],
        out_specs=(vmem(), vmem()),
        scratch_shapes=scratch,
        compiler_params=pltpu.CompilerParams(vmem_limit_bytes=64 * 1024 * 1024),
    )(x2d, hidden, *flat)

    pred = jnp.transpose(pred2d.reshape(S, B, P), (1, 0, 2))   # (B, S, priv)
    return pred, next_hidden


# ----------------------------------------------------------------------------
# Pure-JAX reference (mirrors the PyTorch module exactly) + test harness
# ----------------------------------------------------------------------------
def _gru_layer_ref(x_seq, h0, w_ih, w_hh, b_ih, b_hh):
    H = h0.shape[-1]

    def step(h, x_t):
        gx = x_t @ w_ih.T + b_ih
        gh = h @ w_hh.T + b_hh
        r = jax.nn.sigmoid(gx[:, :H] + gh[:, :H])
        z = jax.nn.sigmoid(gx[:, H:2 * H] + gh[:, H:2 * H])
        n = jnp.tanh(gx[:, 2 * H:] + r * gh[:, 2 * H:])
        h_new = (1.0 - z) * n + z * h
        return h_new, h_new

    h_n, out = jax.lax.scan(step, h0, x_seq)
    return out, h_n


def _mlp_ref(h, layers, neg_slope=0.01):
    for i, (W, b) in enumerate(layers):
        h = h @ W.T + b
        if i < len(layers) - 1:
            h = jnp.where(h > 0, h, neg_slope * h)
    return h


def _reference_forward(x, hidden, params, config):
    B, S, F = x.shape
    H = config['hidden_size']
    L = config['num_rnn_layers']
    pro_size = F - 208
    if config.get('reset_hidden_each_epoch', True) or hidden is None:
        hidden = jnp.zeros((L, B, H), x.dtype)
    xt = jnp.transpose(x, (1, 0, 2))
    pro_in = xt[:, :, :pro_size]

    def gru_stack(seq, layers):
        out = seq
        h_n = []
        for l, (w_ih, w_hh, b_ih, b_hh) in enumerate(layers):
            out, hn = _gru_layer_ref(out, hidden[l], w_ih, w_hh, b_ih, b_hh)
            h_n.append(hn)
        return out, jnp.stack(h_n, 0)

    out, next_hidden = gru_stack(xt, params['rnn'])
    pro_out, _ = gru_stack(pro_in, params['rnn_pro'])
    out_b = jnp.transpose(out, (1, 0, 2))
    pro_b = jnp.transpose(pro_out, (1, 0, 2))
    pro_pred = _mlp_ref(pro_b, params['hidden_to_pred_exte'])
    alpha = jax.nn.sigmoid(_mlp_ref(out_b, params['hidden_to_gate']))
    pred = alpha * pro_pred + _mlp_ref(out_b, params['hidden_to_pred'])
    return pred, next_hidden


def _init_params(key, config):
    F = config['sens_size']; H = config['hidden_size']
    L = config['num_rnn_layers']; P = config['priv_size']
    pro = F - 208
    keys = iter(jax.random.split(key, 64))

    def u(shape, bound):
        return jax.random.uniform(next(keys), shape, minval=-bound, maxval=bound,
                                  dtype=jnp.float32)

    def gru_layers(in0):
        bound = 1.0 / (H ** 0.5)
        layers = []
        for l in range(L):
            IN = in0 if l == 0 else H
            layers.append((u((3 * H, IN), bound), u((3 * H, H), bound),
                           u((3 * H,), bound), u((3 * H,), bound)))
        return layers

    def mlp_layers(shape):
        dims = [H] + list(shape) + [P]
        layers = []
        for i in range(len(dims) - 1):
            bound = 1.0 / (dims[i] ** 0.5)
            layers.append((u((dims[i + 1], dims[i]), bound), u((dims[i + 1],), bound)))
        return layers

    return {
        'rnn': gru_layers(F),
        'rnn_pro': gru_layers(pro),
        'hidden_to_pred': mlp_layers(config['hidden_to_pred_shape']),
        'hidden_to_gate': mlp_layers(config['hidden_to_gate_shape']),
        'hidden_to_pred_exte': mlp_layers(config['hidden_to_pred_shape']),
    }


if __name__ == "__main__":
    config = {
        'sens_size': 216,              # pro_size = 216 - 208 = 8
        'priv_size': 16,
        'hidden_to_pred_shape': [64],
        'hidden_to_gate_shape': [64],
        'gate_to_pred_shape': [32],    # present in config, unused by this mode
        'hidden_size': 32,
        'num_rnn_layers': 2,
        'seq_length': 8,
        'mode': 'parallel_noatt',
        'is_training': False,
        'model_type': 'gru',
        'reset_hidden_each_epoch': True,
    }
    B, S = 2, config['seq_length']

    key = jax.random.PRNGKey(0)
    kx, kp = jax.random.split(key)
    x = jax.random.normal(kx, (B, S, config['sens_size']), dtype=jnp.float32)
    params = _init_params(kp, config)
    prepared = prepare_params(params)      # one-time: transposes + head-weight fusion
    hidden = jnp.zeros((config['num_rnn_layers'], B, config['hidden_size']), jnp.float32)

    pred, next_hidden = parallel_noatt_forward(x, hidden, prepared, config)
    pred = jax.block_until_ready(pred)
    next_hidden = jax.block_until_ready(next_hidden)

    ref_pred, ref_hidden = _reference_forward(x, hidden, params, config)

    assert pred.shape == (B, S, config['priv_size'])
    assert next_hidden.shape == (config['num_rnn_layers'], B, config['hidden_size'])
    assert jnp.allclose(pred, ref_pred, atol=2e-4, rtol=2e-4)
    assert jnp.allclose(next_hidden, ref_hidden, atol=2e-4, rtol=2e-4)
    print("KERNEL_OK")
</pallas_src>

<mosaic_0001>
module attributes {stable_mosaic.version = 11 : i64} {
  func.func @kernel(%arg0: memref<16x216xf32, #tpu.memory_space<vmem>>, %arg1: memref<2x2x32xf32, #tpu.memory_space<vmem>>, %arg2: memref<216x96xf32, #tpu.memory_space<vmem>>, %arg3: memref<32x96xf32, #tpu.memory_space<vmem>>, %arg4: memref<1x96xf32, #tpu.memory_space<vmem>>, %arg5: memref<1x96xf32, #tpu.memory_space<vmem>>, %arg6: memref<32x96xf32, #tpu.memory_space<vmem>>, %arg7: memref<32x96xf32, #tpu.memory_space<vmem>>, %arg8: memref<1x96xf32, #tpu.memory_space<vmem>>, %arg9: memref<1x96xf32, #tpu.memory_space<vmem>>, %arg10: memref<8x96xf32, #tpu.memory_space<vmem>>, %arg11: memref<32x96xf32, #tpu.memory_space<vmem>>, %arg12: memref<1x96xf32, #tpu.memory_space<vmem>>, %arg13: memref<1x96xf32, #tpu.memory_space<vmem>>, %arg14: memref<32x96xf32, #tpu.memory_space<vmem>>, %arg15: memref<32x96xf32, #tpu.memory_space<vmem>>, %arg16: memref<1x96xf32, #tpu.memory_space<vmem>>, %arg17: memref<1x96xf32, #tpu.memory_space<vmem>>, %arg18: memref<32x128xf32, #tpu.memory_space<vmem>>, %arg19: memref<1x128xf32, #tpu.memory_space<vmem>>, %arg20: memref<64x16xf32, #tpu.memory_space<vmem>>, %arg21: memref<1x16xf32, #tpu.memory_space<vmem>>, %arg22: memref<64x16xf32, #tpu.memory_space<vmem>>, %arg23: memref<1x16xf32, #tpu.memory_space<vmem>>, %arg24: memref<32x64xf32, #tpu.memory_space<vmem>>, %arg25: memref<1x64xf32, #tpu.memory_space<vmem>>, %arg26: memref<64x16xf32, #tpu.memory_space<vmem>>, %arg27: memref<1x16xf32, #tpu.memory_space<vmem>>, %arg28: memref<16x16xf32, #tpu.memory_space<vmem>>, %arg29: memref<2x2x32xf32, #tpu.memory_space<vmem>>, %arg30: memref<16x96xf32, #tpu.memory_space<vmem>>, %arg31: memref<16x96xf32, #tpu.memory_space<vmem>>, %arg32: memref<16x32xf32, #tpu.memory_space<vmem>>, %arg33: memref<16x32xf32, #tpu.memory_space<vmem>>, %arg34: memref<2x32xf32, #tpu.memory_space<vmem>>, %arg35: memref<2x32xf32, #tpu.memory_space<vmem>>) attributes {dimension_semantics = [], scalar_prefetch = 0 : i64, scratch_operands = 6 : i64, tpu.core_type = #tpu.core_type<tc>} {
    %c0 = arith.constant 0 : index
    %c0_0 = arith.constant 0 : index
    %0 = vector.load %arg0[%c0, %c0_0] : memref<16x216xf32, #tpu.memory_space<vmem>>, vector<16x216xf32>
    %1 = vector.extract_strided_slice %0 {offsets = [0, 0], sizes = [16, 8], strides = [1, 1]} : vector<16x216xf32> to vector<16x8xf32>
    %c0_1 = arith.constant 0 : index
    %c0_2 = arith.constant 0 : index
    %2 = vector.load %arg2[%c0_1, %c0_2] : memref<216x96xf32, #tpu.memory_space<vmem>>, vector<216x96xf32>
    %cst = arith.constant dense<0.000000e+00> : vector<16x96xf32>
    %3 = tpu.matmul %0, %2, %cst {dimension_numbers = #tpu.dot_dimension_numbers<[1], [0], [0], [1], [0, 0, 1, 1], [], []>} : vector<16x216xf32>, vector<216x96xf32>, vector<16x96xf32> -> vector<16x96xf32>
    %c0_3 = arith.constant 0 : index
    %c0_4 = arith.constant 0 : index
    %4 = vector.load %arg4[%c0_3, %c0_4] : memref<1x96xf32, #tpu.memory_space<vmem>>, vector<1x96xf32>
    %5 = vector.broadcast %4 : vector<1x96xf32> to vector<16x96xf32>
    %6 = arith.addf %3, %5 : vector<16x96xf32>
    %c0_5 = arith.constant 0 : index
    %c0_6 = arith.constant 0 : index
    %7 = vector.load %arg30[%c0_5, %c0_6] : memref<16x96xf32, #tpu.memory_space<vmem>>, vector<16x96xf32>
    tpu.vector_store %arg30[%c0_5, %c0_6], %6 {strides = array<i32>} : memref<16x96xf32, #tpu.memory_space<vmem>>, vector<16x96xf32>,
    %c0_7 = arith.constant 0 : index
    %c0_8 = arith.constant 0 : index
    %8 = vector.load %arg10[%c0_7, %c0_8] : memref<8x96xf32, #tpu.memory_space<vmem>>, vector<8x96xf32>
    %cst_9 = arith.constant dense<0.000000e+00> : vector<16x96xf32>
    %9 = tpu.matmul %1, %8, %cst_9 {dimension_numbers = #tpu.dot_dimension_numbers<[1], [0], [0], [1], [0, 0, 1, 1], [], []>} : vector<16x8xf32>, vector<8x96xf32>, vector<16x96xf32> -> vector<16x96xf32>
    %c0_10 = arith.constant 0 : index
    %c0_11 = arith.constant 0 : index
    %10 = vector.load %arg12[%c0_10, %c0_11] : memref<1x96xf32, #tpu.memory_space<vmem>>, vector<1x96xf32>
    %11 = vector.broadcast %10 : vector<1x96xf32> to vector<16x96xf32>
    %12 = arith.addf %9, %11 : vector<16x96xf32>
    %c0_12 = arith.constant 0 : index
    %c0_13 = arith.constant 0 : index
    %13 = vector.load %arg31[%c0_12, %c0_13] : memref<16x96xf32, #tpu.memory_space<vmem>>, vector<16x96xf32>
    tpu.vector_store %arg31[%c0_12, %c0_13], %12 {strides = array<i32>} : memref<16x96xf32, #tpu.memory_space<vmem>>, vector<16x96xf32>,
    %c0_14 = arith.constant 0 : index
    %c0_15 = arith.constant 0 : index
    %c0_16 = arith.constant 0 : index
    %14 = vector.load %arg1[%c0_14, %c0_15, %c0_16] : memref<2x2x32xf32, #tpu.memory_space<vmem>>, vector<1x2x32xf32>
    %15 = vector.shape_cast %14 : vector<1x2x32xf32> to vector<2x32xf32>
    %c0_17 = arith.constant 0 : index
    %c0_18 = arith.constant 0 : index
    %16 = vector.load %arg34[%c0_17, %c0_18] : memref<2x32xf32, #tpu.memory_space<vmem>>, vector<2x32xf32>
    tpu.vector_store %arg34[%c0_17, %c0_18], %15 {strides = array<i32>} : memref<2x32xf32, #tpu.memory_space<vmem>>, vector<2x32xf32>,
    %c0_19 = arith.constant 0 : index
    %c0_20 = arith.constant 0 : index
    %c0_21 = arith.constant 0 : index
    %17 = vector.load %arg1[%c0_19, %c0_20, %c0_21] : memref<2x2x32xf32, #tpu.memory_space<vmem>>, vector<1x2x32xf32>
    %18 = vector.shape_cast %17 : vector<1x2x32xf32> to vector<2x32xf32>
    %c0_22 = arith.constant 0 : index
    %c0_23 = arith.constant 0 : index
    %19 = vector.load %arg35[%c0_22, %c0_23] : memref<2x32xf32, #tpu.memory_space<vmem>>, vector<2x32xf32>
    tpu.vector_store %arg35[%c0_22, %c0_23], %18 {strides = array<i32>} : memref<2x32xf32, #tpu.memory_space<vmem>>, vector<2x32xf32>,
    %c0_24 = arith.constant 0 : index
    %c0_25 = arith.constant 0 : index
    %20 = vector.load %arg3[%c0_24, %c0_25] : memref<32x96xf32, #tpu.memory_space<vmem>>, vector<32x96xf32>
    %c0_26 = arith.constant 0 : index
    %c0_27 = arith.constant 0 : index
    %21 = vector.load %arg5[%c0_26, %c0_27] : memref<1x96xf32, #tpu.memory_space<vmem>>, vector<1x96xf32>
    %c0_28 = arith.constant 0 : index
    %c0_29 = arith.constant 0 : index
    %22 = vector.load %arg11[%c0_28, %c0_29] : memref<32x96xf32, #tpu.memory_space<vmem>>, vector<32x96xf32>
    %c0_30 = arith.constant 0 : index
    %c0_31 = arith.constant 0 : index
    %23 = vector.load %arg13[%c0_30, %c0_31] : memref<1x96xf32, #tpu.memory_space<vmem>>, vector<1x96xf32>
    %c0_i32 = arith.constant 0 : i32
    %c2_i32 = arith.constant 2 : i32
    %24 = arith.muli %c0_i32, %c2_i32 : i32
    %25 = tpu.assume_multiple %24, 2 : i32
    %c0_32 = arith.constant 0 : index
    %c0_33 = arith.constant 0 : index
    %26 = vector.load %arg34[%c0_32, %c0_33] : memref<2x32xf32, #tpu.memory_space<vmem>>, vector<2x32xf32>
    %c0_34 = arith.constant 0 : index
    %c0_35 = arith.constant 0 : index
    %27 = vector.load %arg35[%c0_34, %c0_35] : memref<2x32xf32, #tpu.memory_space<vmem>>, vector<2x32xf32>
    %cst_36 = arith.constant dense<0.000000e+00> : vector<2x96xf32>
    %28 = tpu.matmul %26, %20, %cst_36 {dimension_numbers = #tpu.dot_dimension_numbers<[1], [0], [0], [1], [0, 0, 1, 1], [], []>} : vector<2x32xf32>, vector<32x96xf32>, vector<2x96xf32> -> vector<2x96xf32>
    %29 = vector.broadcast %21 : vector<1x96xf32> to vector<2x96xf32>
    %30 = arith.addf %28, %29 : vector<2x96xf32>
    %cst_37 = arith.constant dense<0.000000e+00> : vector<2x96xf32>
    %31 = tpu.matmul %27, %22, %cst_37 {dimension_numbers = #tpu.dot_dimension_numbers<[1], [0], [0], [1], [0, 0, 1, 1], [], []>} : vector<2x32xf32>, vector<32x96xf32>, vector<2x96xf32> -> vector<2x96xf32>
    %32 = vector.broadcast %23 : vector<1x96xf32> to vector<2x96xf32>
    %33 = arith.addf %31, %32 : vector<2x96xf32>
    %34 = arith.index_cast %25 : i32 to index
    %c0_38 = arith.constant 0 : index
    %35 = vector.load %arg30[%34, %c0_38] : memref<16x96xf32, #tpu.memory_space<vmem>>, vector<2x96xf32>
    %36 = arith.index_cast %25 : i32 to index
    %c0_39 = arith.constant 0 : index
    %37 = vector.load %arg31[%36, %c0_39] : memref<16x96xf32, #tpu.memory_space<vmem>>, vector<2x96xf32>
    %38 = vector.extract_strided_slice %35 {offsets = [0, 0], sizes = [2, 32], strides = [1, 1]} : vector<2x96xf32> to vector<2x32xf32>
    %39 = vector.extract_strided_slice %30 {offsets = [0, 0], sizes = [2, 32], strides = [1, 1]} : vector<2x96xf32> to vector<2x32xf32>
    %40 = arith.addf %38, %39 : vector<2x32xf32>
    %41 = arith.negf %40 : vector<2x32xf32>
    %42 = math.exp %41 : vector<2x32xf32>
    %cst_40 = arith.constant 1.000000e+00 : f32
    %43 = vector.broadcast %cst_40 : f32 to vector<2x32xf32>
    %44 = arith.addf %43, %42 : vector<2x32xf32>
    %45 = arith.divf %43, %44 : vector<2x32xf32>
    %46 = vector.extract_strided_slice %35 {offsets = [0, 32], sizes = [2, 32], strides = [1, 1]} : vector<2x96xf32> to vector<2x32xf32>
    %47 = vector.extract_strided_slice %30 {offsets = [0, 32], sizes = [2, 32], strides = [1, 1]} : vector<2x96xf32> to vector<2x32xf32>
    %48 = arith.addf %46, %47 : vector<2x32xf32>
    %49 = arith.negf %48 : vector<2x32xf32>
    %50 = math.exp %49 : vector<2x32xf32>
    %cst_41 = arith.constant 1.000000e+00 : f32
    %51 = vector.broadcast %cst_41 : f32 to vector<2x32xf32>
    %52 = arith.addf %51, %50 : vector<2x32xf32>
    %53 = arith.divf %51, %52 : vector<2x32xf32>
    %54 = vector.extract_strided_slice %35 {offsets = [0, 64], sizes = [2, 32], strides = [1, 1]} : vector<2x96xf32> to vector<2x32xf32>
    %55 = vector.extract_strided_slice %30 {offsets = [0, 64], sizes = [2, 32], strides = [1, 1]} : vector<2x96xf32> to vector<2x32xf32>
    %56 = arith.mulf %45, %55 : vector<2x32xf32>
    %57 = arith.addf %54, %56 : vector<2x32xf32>
    %58 = math.tanh %57 : vector<2x32xf32>
    %cst_42 = arith.constant 1.000000e+00 : f32
    %59 = vector.broadcast %cst_42 : f32 to vector<2x32xf32>
    %60 = arith.subf %59, %53 : vector<2x32xf32>
    %61 = arith.mulf %60, %58 : vector<2x32xf32>
    %62 = arith.mulf %53, %26 : vector<2x32xf32>
    %63 = arith.addf %61, %62 : vector<2x32xf32>
    %64 = vector.extract_strided_slice %37 {offsets = [0, 0], sizes = [2, 32], strides = [1, 1]} : vector<2x96xf32> to vector<2x32xf32>
    %65 = vector.extract_strided_slice %33 {offsets = [0, 0], sizes = [2, 32], strides = [1, 1]} : vector<2x96xf32> to vector<2x32xf32>
    %66 = arith.addf %64, %65 : vector<2x32xf32>
    %67 = arith.negf %66 : vector<2x32xf32>
    %68 = math.exp %67 : vector<2x32xf32>
    %cst_43 = arith.constant 1.000000e+00 : f32
    %69 = vector.broadcast %cst_43 : f32 to vector<2x32xf32>
    %70 = arith.addf %69, %68 : vector<2x32xf32>
    %71 = arith.divf %69, %70 : vector<2x32xf32>
    %72 = vector.extract_strided_slice %37 {offsets = [0, 32], sizes = [2, 32], strides = [1, 1]} : vector<2x96xf32> to vector<2x32xf32>
    %73 = vector.extract_strided_slice %33 {offsets = [0, 32], sizes = [2, 32], strides = [1, 1]} : vector<2x96xf32> to vector<2x32xf32>
    %74 = arith.addf %72, %73 : vector<2x32xf32>
    %75 = arith.negf %74 : vector<2x32xf32>
    %76 = math.exp %75 : vector<2x32xf32>
    %cst_44 = arith.constant 1.000000e+00 : f32
    %77 = vector.broadcast %cst_44 : f32 to vector<2x32xf32>
    %78 = arith.addf %77, %76 : vector<2x32xf32>
    %79 = arith.divf %77, %78 : vector<2x32xf32>
    %80 = vector.extract_strided_slice %37 {offsets = [0, 64], sizes = [2, 32], strides = [1, 1]} : vector<2x96xf32> to vector<2x32xf32>
    %81 = vector.extract_strided_slice %33 {offsets = [0, 64], sizes = [2, 32], strides = [1, 1]} : vector<2x96xf32> to vector<2x32xf32>
    %82 = arith.mulf %71, %81 : vector<2x32xf32>
    %83 = arith.addf %80, %82 : vector<2x32xf32>
    %84 = math.tanh %83 : vector<2x32xf32>
    %cst_45 = arith.constant 1.000000e+00 : f32
    %85 = vector.broadcast %cst_45 : f32 to vector<2x32xf32>
    %86 = arith.subf %85, %79 : vector<2x32xf32>
    %87 = arith.mulf %86, %84 : vector<2x32xf32>
    %88 = arith.mulf %79, %27 : vector<2x32xf32>
    %89 = arith.addf %87, %88 : vector<2x32xf32>
    %c0_46 = arith.constant 0 : index
    %c0_47 = arith.constant 0 : index
    %90 = vector.load %arg34[%c0_46, %c0_47] : memref<2x32xf32, #tpu.memory_space<vmem>>, vector<2x32xf32>
    tpu.vector_store %arg34[%c0_46, %c0_47], %63 {strides = array<i32>} : memref<2x32xf32, #tpu.memory_space<vmem>>, vector<2x32xf32>,
    %c0_48 = arith.constant 0 : index
    %c0_49 = arith.constant 0 : index
    %91 = vector.load %arg35[%c0_48, %c0_49] : memref<2x32xf32, #tpu.memory_space<vmem>>, vector<2x32xf32>
    tpu.vector_store %arg35[%c0_48, %c0_49], %89 {strides = array<i32>} : memref<2x32xf32, #tpu.memory_space<vmem>>, vector<2x32xf32>,
    %92 = arith.index_cast %25 : i32 to index
    %c0_50 = arith.constant 0 : index
    %93 = vector.load %arg32[%92, %c0_50] : memref<16x32xf32, #tpu.memory_space<vmem>>, vector<2x32xf32>
    tpu.vector_store %arg32[%92, %c0_50], %63 {strides = array<i32>} : memref<16x32xf32, #tpu.memory_space<vmem>>, vector<2x32xf32>,
    %94 = arith.index_cast %25 : i32 to index
    %c0_51 = arith.constant 0 : index
    %95 = vector.load %arg33[%94, %c0_51] : memref<16x32xf32, #tpu.memory_space<vmem>>, vector<2x32xf32>
    tpu.vector_store %arg33[%94, %c0_51], %89 {strides = array<i32>} : memref<16x32xf32, #tpu.memory_space<vmem>>, vector<2x32xf32>,
    %c1_i32 = arith.constant 1 : i32
    %c2_i32_52 = arith.constant 2 : i32
    %96 = arith.muli %c1_i32, %c2_i32_52 : i32
    %97 = tpu.assume_multiple %96, 2 : i32
    %c0_53 = arith.constant 0 : index
    %c0_54 = arith.constant 0 : index
    %98 = vector.load %arg34[%c0_53, %c0_54] : memref<2x32xf32, #tpu.memory_space<vmem>>, vector<2x32xf32>
    %c0_55 = arith.constant 0 : index
    %c0_56 = arith.constant 0 : index
    %99 = vector.load %arg35[%c0_55, %c0_56] : memref<2x32xf32, #tpu.memory_space<vmem>>, vector<2x32xf32>
    %cst_57 = arith.constant dense<0.000000e+00> : vector<2x96xf32>
    %100 = tpu.matmul %98, %20, %cst_57 {dimension_numbers = #tpu.dot_dimension_numbers<[1], [0], [0], [1], [0, 0, 1, 1], [], []>} : vector<2x32xf32>, vector<32x96xf32>, vector<2x96xf32> -> vector<2x96xf32>
    %101 = vector.broadcast %21 : vector<1x96xf32> to vector<2x96xf32>
    %102 = arith.addf %100, %101 : vector<2x96xf32>
    %cst_58 = arith.constant dense<0.000000e+00> : vector<2x96xf32>
    %103 = tpu.matmul %99, %22, %cst_58 {dimension_numbers = #tpu.dot_dimension_numbers<[1], [0], [0], [1], [0, 0, 1, 1], [], []>} : vector<2x32xf32>, vector<32x96xf32>, vector<2x96xf32> -> vector<2x96xf32>
    %104 = vector.broadcast %23 : vector<1x96xf32> to vector<2x96xf32>
    %105 = arith.addf %103, %104 : vector<2x96xf32>
    %106 = arith.index_cast %97 : i32 to index
    %c0_59 = arith.constant 0 : index
    %107 = vector.load %arg30[%106, %c0_59] : memref<16x96xf32, #tpu.memory_space<vmem>>, vector<2x96xf32>
    %108 = arith.index_cast %97 : i32 to index
    %c0_60 = arith.constant 0 : index
    %109 = vector.load %arg31[%108, %c0_60] : memref<16x96xf32, #tpu.memory_space<vmem>>, vector<2x96xf32>
    %110 = vector.extract_strided_slice %107 {offsets = [0, 0], sizes = [2, 32], strides = [1, 1]} : vector<2x96xf32> to vector<2x32xf32>
    %111 = vector.extract_strided_slice %102 {offsets = [0, 0], sizes = [2, 32], strides = [1, 1]} : vector<2x96xf32> to vector<2x32xf32>
    %112 = arith.addf %110, %111 : vector<2x32xf32>
    %113 = arith.negf %112 : vector<2x32xf32>
    %114 = math.exp %113 : vector<2x32xf32>
    %cst_61 = arith.constant 1.000000e+00 : f32
    %115 = vector.broadcast %cst_61 : f32 to vector<2x32xf32>
    %116 = arith.addf %115, %114 : vector<2x32xf32>
    %117 = arith.divf %115, %116 : vector<2x32xf32>
    %118 = vector.extract_strided_slice %107 {offsets = [0, 32], sizes = [2, 32], strides = [1, 1]} : vector<2x96xf32> to vector<2x32xf32>
    %119 = vector.extract_strided_slice %102 {offsets = [0, 32], sizes = [2, 32], strides = [1, 1]} : vector<2x96xf32> to vector<2x32xf32>
    %120 = arith.addf %118, %119 : vector<2x32xf32>
    %121 = arith.negf %120 : vector<2x32xf32>
    %122 = math.exp %121 : vector<2x32xf32>
    %cst_62 = arith.constant 1.000000e+00 : f32
    %123 = vector.broadcast %cst_62 : f32 to vector<2x32xf32>
    %124 = arith.addf %123, %122 : vector<2x32xf32>
    %125 = arith.divf %123, %124 : vector<2x32xf32>
    %126 = vector.extract_strided_slice %107 {offsets = [0, 64], sizes = [2, 32], strides = [1, 1]} : vector<2x96xf32> to vector<2x32xf32>
    %127 = vector.extract_strided_slice %102 {offsets = [0, 64], sizes = [2, 32], strides = [1, 1]} : vector<2x96xf32> to vector<2x32xf32>
    %128 = arith.mulf %117, %127 : vector<2x32xf32>
    %129 = arith.addf %126, %128 : vector<2x32xf32>
    %130 = math.tanh %129 : vector<2x32xf32>
    %cst_63 = arith.constant 1.000000e+00 : f32
    %131 = vector.broadcast %cst_63 : f32 to vector<2x32xf32>
    %132 = arith.subf %131, %125 : vector<2x32xf32>
    %133 = arith.mulf %132, %130 : vector<2x32xf32>
    %134 = arith.mulf %125, %98 : vector<2x32xf32>
    %135 = arith.addf %133, %134 : vector<2x32xf32>
    %136 = vector.extract_strided_slice %109 {offsets = [0, 0], sizes = [2, 32], strides = [1, 1]} : vector<2x96xf32> to vector<2x32xf32>
    %137 = vector.extract_strided_slice %105 {offsets = [0, 0], sizes = [2, 32], strides = [1, 1]} : vector<2x96xf32> to vector<2x32xf32>
    %138 = arith.addf %136, %137 : vector<2x32xf32>
    %139 = arith.negf %138 : vector<2x32xf32>
    %140 = math.exp %139 : vector<2x32xf32>
    %cst_64 = arith.constant 1.000000e+00 : f32
    %141 = vector.broadcast %cst_64 : f32 to vector<2x32xf32>
    %142 = arith.addf %141, %140 : vector<2x32xf32>
    %143 = arith.divf %141, %142 : vector<2x32xf32>
    %144 = vector.extract_strided_slice %109 {offsets = [0, 32], sizes = [2, 32], strides = [1, 1]} : vector<2x96xf32> to vector<2x32xf32>
    %145 = vector.extract_strided_slice %105 {offsets = [0, 32], sizes = [2, 32], strides = [1, 1]} : vector<2x96xf32> to vector<2x32xf32>
    %146 = arith.addf %144, %145 : vector<2x32xf32>
    %147 = arith.negf %146 : vector<2x32xf32>
    %148 = math.exp %147 : vector<2x32xf32>
    %cst_65 = arith.constant 1.000000e+00 : f32
    %149 = vector.broadcast %cst_65 : f32 to vector<2x32xf32>
    %150 = arith.addf %149, %148 : vector<2x32xf32>
    %151 = arith.divf %149, %150 : vector<2x32xf32>
    %152 = vector.extract_strided_slice %109 {offsets = [0, 64], sizes = [2, 32], strides = [1, 1]} : vector<2x96xf32> to vector<2x32xf32>
    %153 = vector.extract_strided_slice %105 {offsets = [0, 64], sizes = [2, 32], strides = [1, 1]} : vector<2x96xf32> to vector<2x32xf32>
    %154 = arith.mulf %143, %153 : vector<2x32xf32>
    %155 = arith.addf %152, %154 : vector<2x32xf32>
    %156 = math.tanh %155 : vector<2x32xf32>
    %cst_66 = arith.constant 1.000000e+00 : f32
    %157 = vector.broadcast %cst_66 : f32 to vector<2x32xf32>
    %158 = arith.subf %157, %151 : vector<2x32xf32>
    %159 = arith.mulf %158, %156 : vector<2x32xf32>
    %160 = arith.mulf %151, %99 : vector<2x32xf32>
    %161 = arith.addf %159, %160 : vector<2x32xf32>
    %c0_67 = arith.constant 0 : index
    %c0_68 = arith.constant 0 : index
    %162 = vector.load %arg34[%c0_67, %c0_68] : memref<2x32xf32, #tpu.memory_space<vmem>>, vector<2x32xf32>
    tpu.vector_store %arg34[%c0_67, %c0_68], %135 {strides = array<i32>} : memref<2x32xf32, #tpu.memory_space<vmem>>, vector<2x32xf32>,
    %c0_69 = arith.constant 0 : index
    %c0_70 = arith.constant 0 : index
    %163 = vector.load %arg35[%c0_69, %c0_70] : memref<2x32xf32, #tpu.memory_space<vmem>>, vector<2x32xf32>
    tpu.vector_store %arg35[%c0_69, %c0_70], %161 {strides = array<i32>} : memref<2x32xf32, #tpu.memory_space<vmem>>, vector<2x32xf32>,
    %164 = arith.index_cast %97 : i32 to index
    %c0_71 = arith.constant 0 : index
    %165 = vector.load %arg32[%164, %c0_71] : memref<16x32xf32, #tpu.memory_space<vmem>>, vector<2x32xf32>
    tpu.vector_store %arg32[%164, %c0_71], %135 {strides = array<i32>} : memref<16x32xf32, #tpu.memory_space<vmem>>, vector<2x32xf32>,
    %166 = arith.index_cast %97 : i32 to index
    %c0_72 = arith.constant 0 : index
    %167 = vector.load %arg33[%166, %c0_72] : memref<16x32xf32, #tpu.memory_space<vmem>>, vector<2x32xf32>
    tpu.vector_store %arg33[%166, %c0_72], %161 {strides = array<i32>} : memref<16x32xf32, #tpu.memory_space<vmem>>, vector<2x32xf32>,
    %c2_i32_73 = arith.constant 2 : i32
    %c2_i32_74 = arith.constant 2 : i32
    %168 = arith.muli %c2_i32_73, %c2_i32_74 : i32
    %169 = tpu.assume_multiple %168, 2 : i32
    %c0_75 = arith.constant 0 : index
    %c0_76 = arith.constant 0 : index
    %170 = vector.load %arg34[%c0_75, %c0_76] : memref<2x32xf32, #tpu.memory_space<vmem>>, vector<2x32xf32>
    %c0_77 = arith.constant 0 : index
    %c0_78 = arith.constant 0 : index
    %171 = vector.load %arg35[%c0_77, %c0_78] : memref<2x32xf32, #tpu.memory_space<vmem>>, vector<2x32xf32>
    %cst_79 = arith.constant dense<0.000000e+00> : vector<2x96xf32>
    %172 = tpu.matmul %170, %20, %cst_79 {dimension_numbers = #tpu.dot_dimension_numbers<[1], [0], [0], [1], [0, 0, 1, 1], [], []>} : vector<2x32xf32>, vector<32x96xf32>, vector<2x96xf32> -> vector<2x96xf32>
    %173 = vector.broadcast %21 : vector<1x96xf32> to vector<2x96xf32>
    %174 = arith.addf %172, %173 : vector<2x96xf32>
    %cst_80 = arith.constant dense<0.000000e+00> : vector<2x96xf32>
    %175 = tpu.matmul %171, %22, %cst_80 {dimension_numbers = #tpu.dot_dimension_numbers<[1], [0], [0], [1], [0, 0, 1, 1], [], []>} : vector<2x32xf32>, vector<32x96xf32>, vector<2x96xf32> -> vector<2x96xf32>
    %176 = vector.broadcast %23 : vector<1x96xf32> to vector<2x96xf32>
    %177 = arith.addf %175, %176 : vector<2x96xf32>
    %178 = arith.index_cast %169 : i32 to index
    %c0_81 = arith.constant 0 : index
    %179 = vector.load %arg30[%178, %c0_81] : memref<16x96xf32, #tpu.memory_space<vmem>>, vector<2x96xf32>
    %180 = arith.index_cast %169 : i32 to index
    %c0_82 = arith.constant 0 : index
    %181 = vector.load %arg31[%180, %c0_82] : memref<16x96xf32, #tpu.memory_space<vmem>>, vector<2x96xf32>
    %182 = vector.extract_strided_slice %179 {offsets = [0, 0], sizes = [2, 32], strides = [1, 1]} : vector<2x96xf32> to vector<2x32xf32>
    %183 = vector.extract_strided_slice %174 {offsets = [0, 0], sizes = [2, 32], strides = [1, 1]} : vector<2x96xf32> to vector<2x32xf32>
    %184 = arith.addf %182, %183 : vector<2x32xf32>
    %185 = arith.negf %184 : vector<2x32xf32>
    %186 = math.exp %185 : vector<2x32xf32>
    %cst_83 = arith.constant 1.000000e+00 : f32
    %187 = vector.broadcast %cst_83 : f32 to vector<2x32xf32>
    %188 = arith.addf %187, %186 : vector<2x32xf32>
    %189 = arith.divf %187, %188 : vector<2x32xf32>
    %190 = vector.extract_strided_slice %179 {offsets = [0, 32], sizes = [2, 32], strides = [1, 1]} : vector<2x96xf32> to vector<2x32xf32>
    %191 = vector.extract_strided_slice %174 {offsets = [0, 32], sizes = [2, 32], strides = [1, 1]} : vector<2x96xf32> to vector<2x32xf32>
    %192 = arith.addf %190, %191 : vector<2x32xf32>
    %193 = arith.negf %192 : vector<2x32xf32>
    %194 = math.exp %193 : vector<2x32xf32>
    %cst_84 = arith.constant 1.000000e+00 : f32
    %195 = vector.broadcast %cst_84 : f32 to vector<2x32xf32>
    %196 = arith.addf %195, %194 : vector<2x32xf32>
    %197 = arith.divf %195, %196 : vector<2x32xf32>
    %198 = vector.extract_strided_slice %179 {offsets = [0, 64], sizes = [2, 32], strides = [1, 1]} : vector<2x96xf32> to vector<2x32xf32>
    %199 = vector.extract_strided_slice %174 {offsets = [0, 64], sizes = [2, 32], strides = [1, 1]} : vector<2x96xf32> to vector<2x32xf32>
    %200 = arith.mulf %189, %199 : vector<2x32xf32>
    %201 = arith.addf %198, %200 : vector<2x32xf32>
    %202 = math.tanh %201 : vector<2x32xf32>
    %cst_85 = arith.constant 1.000000e+00 : f32
    %203 = vector.broadcast %cst_85 : f32 to vector<2x32xf32>
    %204 = arith.subf %203, %197 : vector<2x32xf32>
    %205 = arith.mulf %204, %202 : vector<2x32xf32>
    %206 = arith.mulf %197, %170 : vector<2x32xf32>
    %207 = arith.addf %205, %206 : vector<2x32xf32>
    %208 = vector.extract_strided_slice %181 {offsets = [0, 0], sizes = [2, 32], strides = [1, 1]} : vector<2x96xf32> to vector<2x32xf32>
    %209 = vector.extract_strided_slice %177 {offsets = [0, 0], sizes = [2, 32], strides = [1, 1]} : vector<2x96xf32> to vector<2x32xf32>
    %210 = arith.addf %208, %209 : vector<2x32xf32>
    %211 = arith.negf %210 : vector<2x32xf32>
    %212 = math.exp %211 : vector<2x32xf32>
    %cst_86 = arith.constant 1.000000e+00 : f32
    %213 = vector.broadcast %cst_86 : f32 to vector<2x32xf32>
    %214 = arith.addf %213, %212 : vector<2x32xf32>
    %215 = arith.divf %213, %214 : vector<2x32xf32>
    %216 = vector.extract_strided_slice %181 {offsets = [0, 32], sizes = [2, 32], strides = [1, 1]} : vector<2x96xf32> to vector<2x32xf32>
    %217 = vector.extract_strided_slice %177 {offsets = [0, 32], sizes = [2, 32], strides = [1, 1]} : vector<2x96xf32> to vector<2x32xf32>
    %218 = arith.addf %216, %217 : vector<2x32xf32>
    %219 = arith.negf %218 : vector<2x32xf32>
    %220 = math.exp %219 : vector<2x32xf32>
    %cst_87 = arith.constant 1.000000e+00 : f32
    %221 = vector.broadcast %cst_87 : f32 to vector<2x32xf32>
    %222 = arith.addf %221, %220 : vector<2x32xf32>
    %223 = arith.divf %221, %222 : vector<2x32xf32>
    %224 = vector.extract_strided_slice %181 {offsets = [0, 64], sizes = [2, 32], strides = [1, 1]} : vector<2x96xf32> to vector<2x32xf32>
    %225 = vector.extract_strided_slice %177 {offsets = [0, 64], sizes = [2, 32], strides = [1, 1]} : vector<2x96xf32> to vector<2x32xf32>
    %226 = arith.mulf %215, %225 : vector<2x32xf32>
    %227 = arith.addf %224, %226 : vector<2x32xf32>
    %228 = math.tanh %227 : vector<2x32xf32>
    %cst_88 = arith.constant 1.000000e+00 : f32
    %229 = vector.broadcast %cst_88 : f32 to vector<2x32xf32>
    %230 = arith.subf %229, %223 : vector<2x32xf32>
    %231 = arith.mulf %230, %228 : vector<2x32xf32>
    %232 = arith.mulf %223, %171 : vector<2x32xf32>
    %233 = arith.addf %231, %232 : vector<2x32xf32>
    %c0_89 = arith.constant 0 : index
    %c0_90 = arith.constant 0 : index
    %234 = vector.load %arg34[%c0_89, %c0_90] : memref<2x32xf32, #tpu.memory_space<vmem>>, vector<2x32xf32>
    tpu.vector_store %arg34[%c0_89, %c0_90], %207 {strides = array<i32>} : memref<2x32xf32, #tpu.memory_space<vmem>>, vector<2x32xf32>,
    %c0_91 = arith.constant 0 : index
    %c0_92 = arith.constant 0 : index
    %235 = vector.load %arg35[%c0_91, %c0_92] : memref<2x32xf32, #tpu.memory_space<vmem>>, vector<2x32xf32>
    tpu.vector_store %arg35[%c0_91, %c0_92], %233 {strides = array<i32>} : memref<2x32xf32, #tpu.memory_space<vmem>>, vector<2x32xf32>,
    %236 = arith.index_cast %169 : i32 to index
    %c0_93 = arith.constant 0 : index
    %237 = vector.load %arg32[%236, %c0_93] : memref<16x32xf32, #tpu.memory_space<vmem>>, vector<2x32xf32>
    tpu.vector_store %arg32[%236, %c0_93], %207 {strides = array<i32>} : memref<16x32xf32, #tpu.memory_space<vmem>>, vector<2x32xf32>,
    %238 = arith.index_cast %169 : i32 to index
    %c0_94 = arith.constant 0 : index
    %239 = vector.load %arg33[%238, %c0_94] : memref<16x32xf32, #tpu.memory_space<vmem>>, vector<2x32xf32>
    tpu.vector_store %arg33[%238, %c0_94], %233 {strides = array<i32>} : memref<16x32xf32, #tpu.memory_space<vmem>>, vector<2x32xf32>,
    %c3_i32 = arith.constant 3 : i32
    %c2_i32_95 = arith.constant 2 : i32
    %240 = arith.muli %c3_i32, %c2_i32_95 : i32
    %241 = tpu.assume_multiple %240, 2 : i32
    %c0_96 = arith.constant 0 : index
    %c0_97 = arith.constant 0 : index
    %242 = vector.load %arg34[%c0_96, %c0_97] : memref<2x32xf32, #tpu.memory_space<vmem>>, vector<2x32xf32>
    %c0_98 = arith.constant 0 : index
    %c0_99 = arith.constant 0 : index
    %243 = vector.load %arg35[%c0_98, %c0_99] : memref<2x32xf32, #tpu.memory_space<vmem>>, vector<2x32xf32>
    %cst_100 = arith.constant dense<0.000000e+00> : vector<2x96xf32>
    %244 = tpu.matmul %242, %20, %cst_100 {dimension_numbers = #tpu.dot_dimension_numbers<[1], [0], [0], [1], [0, 0, 1, 1], [], []>} : vector<2x32xf32>, vector<32x96xf32>, vector<2x96xf32> -> vector<2x96xf32>
    %245 = vector.broadcast %21 : vector<1x96xf32> to vector<2x96xf32>
    %246 = arith.addf %244, %245 : vector<2x96xf32>
    %cst_101 = arith.constant dense<0.000000e+00> : vector<2x96xf32>
    %247 = tpu.matmul %243, %22, %cst_101 {dimension_numbers = #tpu.dot_dimension_numbers<[1], [0], [0], [1], [0, 0, 1, 1], [], []>} : vector<2x32xf32>, vector<32x96xf32>, vector<2x96xf32> -> vector<2x96xf32>
    %248 = vector.broadcast %23 : vector<1x96xf32> to vector<2x96xf32>
    %249 = arith.addf %247, %248 : vector<2x96xf32>
    %250 = arith.index_cast %241 : i32 to index
    %c0_102 = arith.constant 0 : index
    %251 = vector.load %arg30[%250, %c0_102] : memref<16x96xf32, #tpu.memory_space<vmem>>, vector<2x96xf32>
    %252 = arith.index_cast %241 : i32 to index
    %c0_103 = arith.constant 0 : index
    %253 = vector.load %arg31[%252, %c0_103] : memref<16x96xf32, #tpu.memory_space<vmem>>, vector<2x96xf32>
    %254 = vector.extract_strided_slice %251 {offsets = [0, 0], sizes = [2, 32], strides = [1, 1]} : vector<2x96xf32> to vector<2x32xf32>
    %255 = vector.extract_strided_slice %246 {offsets = [0, 0], sizes = [2, 32], strides = [1, 1]} : vector<2x96xf32> to vector<2x32xf32>
    %256 = arith.addf %254, %255 : vector<2x32xf32>
    %257 = arith.negf %256 : vector<2x32xf32>
    %258 = math.exp %257 : vector<2x32xf32>
    %cst_104 = arith.constant 1.000000e+00 : f32
    %259 = vector.broadcast %cst_104 : f32 to vector<2x32xf32>
    %260 = arith.addf %259, %258 : vector<2x32xf32>
    %261 = arith.divf %259, %260 : vector<2x32xf32>
    %262 = vector.extract_strided_slice %251 {offsets = [0, 32], sizes = [2, 32], strides = [1, 1]} : vector<2x96xf32> to vector<2x32xf32>
    %263 = vector.extract_strided_slice %246 {offsets = [0, 32], sizes = [2, 32], strides = [1, 1]} : vector<2x96xf32> to vector<2x32xf32>
    %264 = arith.addf %262, %263 : vector<2x32xf32>
    %265 = arith.negf %264 : vector<2x32xf32>
    %266 = math.exp %265 : vector<2x32xf32>
    %cst_105 = arith.constant 1.000000e+00 : f32
    %267 = vector.broadcast %cst_105 : f32 to vector<2x32xf32>
    %268 = arith.addf %267, %266 : vector<2x32xf32>
    %269 = arith.divf %267, %268 : vector<2x32xf32>
    %270 = vector.extract_strided_slice %251 {offsets = [0, 64], sizes = [2, 32], strides = [1, 1]} : vector<2x96xf32> to vector<2x32xf32>
    %271 = vector.extract_strided_slice %246 {offsets = [0, 64], sizes = [2, 32], strides = [1, 1]} : vector<2x96xf32> to vector<2x32xf32>
    %272 = arith.mulf %261, %271 : vector<2x32xf32>
    %273 = arith.addf %270, %272 : vector<2x32xf32>
    %274 = math.tanh %273 : vector<2x32xf32>
    %cst_106 = arith.constant 1.000000e+00 : f32
    %275 = vector.broadcast %cst_106 : f32 to vector<2x32xf32>
    %276 = arith.subf %275, %269 : vector<2x32xf32>
    %277 = arith.mulf %276, %274 : vector<2x32xf32>
    %278 = arith.mulf %269, %242 : vector<2x32xf32>
    %279 = arith.addf %277, %278 : vector<2x32xf32>
    %280 = vector.extract_strided_slice %253 {offsets = [0, 0], sizes = [2, 32], strides = [1, 1]} : vector<2x96xf32> to vector<2x32xf32>
    %281 = vector.extract_strided_slice %249 {offsets = [0, 0], sizes = [2, 32], strides = [1, 1]} : vector<2x96xf32> to vector<2x32xf32>
    %282 = arith.addf %280, %281 : vector<2x32xf32>
    %283 = arith.negf %282 : vector<2x32xf32>
    %284 = math.exp %283 : vector<2x32xf32>
    %cst_107 = arith.constant 1.000000e+00 : f32
    %285 = vector.broadcast %cst_107 : f32 to vector<2x32xf32>
    %286 = arith.addf %285, %284 : vector<2x32xf32>
    %287 = arith.divf %285, %286 : vector<2x32xf32>
    %288 = vector.extract_strided_slice %253 {offsets = [0, 32], sizes = [2, 32], strides = [1, 1]} : vector<2x96xf32> to vector<2x32xf32>
    %289 = vector.extract_strided_slice %249 {offsets = [0, 32], sizes = [2, 32], strides = [1, 1]} : vector<2x96xf32> to vector<2x32xf32>
    %290 = arith.addf %288, %289 : vector<2x32xf32>
    %291 = arith.negf %290 : vector<2x32xf32>
    %292 = math.exp %291 : vector<2x32xf32>
    %cst_108 = arith.constant 1.000000e+00 : f32
    %293 = vector.broadcast %cst_108 : f32 to vector<2x32xf32>
    %294 = arith.addf %293, %292 : vector<2x32xf32>
    %295 = arith.divf %293, %294 : vector<2x32xf32>
    %296 = vector.extract_strided_slice %253 {offsets = [0, 64], sizes = [2, 32], strides = [1, 1]} : vector<2x96xf32> to vector<2x32xf32>
    %297 = vector.extract_strided_slice %249 {offsets = [0, 64], sizes = [2, 32], strides = [1, 1]} : vector<2x96xf32> to vector<2x32xf32>
    %298 = arith.mulf %287, %297 : vector<2x32xf32>
    %299 = arith.addf %296, %298 : vector<2x32xf32>
    %300 = math.tanh %299 : vector<2x32xf32>
    %cst_109 = arith.constant 1.000000e+00 : f32
    %301 = vector.broadcast %cst_109 : f32 to vector<2x32xf32>
    %302 = arith.subf %301, %295 : vector<2x32xf32>
    %303 = arith.mulf %302, %300 : vector<2x32xf32>
    %304 = arith.mulf %295, %243 : vector<2x32xf32>
    %305 = arith.addf %303, %304 : vector<2x32xf32>
    %c0_110 = arith.constant 0 : index
    %c0_111 = arith.constant 0 : index
    %306 = vector.load %arg34[%c0_110, %c0_111] : memref<2x32xf32, #tpu.memory_space<vmem>>, vector<2x32xf32>
    tpu.vector_store %arg34[%c0_110, %c0_111], %279 {strides = array<i32>} : memref<2x32xf32, #tpu.memory_space<vmem>>, vector<2x32xf32>,
    %c0_112 = arith.constant 0 : index
    %c0_113 = arith.constant 0 : index
    %307 = vector.load %arg35[%c0_112, %c0_113] : memref<2x32xf32, #tpu.memory_space<vmem>>, vector<2x32xf32>
    tpu.vector_store %arg35[%c0_112, %c0_113], %305 {strides = array<i32>} : memref<2x32xf32, #tpu.memory_space<vmem>>, vector<2x32xf32>,
    %308 = arith.index_cast %241 : i32 to index
    %c0_114 = arith.constant 0 : index
    %309 = vector.load %arg32[%308, %c0_114] : memref<16x32xf32, #tpu.memory_space<vmem>>, vector<2x32xf32>
    tpu.vector_store %arg32[%308, %c0_114], %279 {strides = array<i32>} : memref<16x32xf32, #tpu.memory_space<vmem>>, vector<2x32xf32>,
    %310 = arith.index_cast %241 : i32 to index
    %c0_115 = arith.constant 0 : index
    %311 = vector.load %arg33[%310, %c0_115] : memref<16x32xf32, #tpu.memory_space<vmem>>, vector<2x32xf32>
    tpu.vector_store %arg33[%310, %c0_115], %305 {strides = array<i32>} : memref<16x32xf32, #tpu.memory_space<vmem>>, vector<2x32xf32>,
    %c4_i32 = arith.constant 4 : i32
    %c2_i32_116 = arith.constant 2 : i32
    %312 = arith.muli %c4_i32, %c2_i32_116 : i32
    %313 = tpu.assume_multiple %312, 2 : i32
    %c0_117 = arith.constant 0 : index
    %c0_118 = arith.constant 0 : index
    %314 = vector.load %arg34[%c0_117, %c0_118] : memref<2x32xf32, #tpu.memory_space<vmem>>, vector<2x32xf32>
    %c0_119 = arith.constant 0 : index
    %c0_120 = arith.constant 0 : index
    %315 = vector.load %arg35[%c0_119, %c0_120] : memref<2x32xf32, #tpu.memory_space<vmem>>, vector<2x32xf32>
    %cst_121 = arith.constant dense<0.000000e+00> : vector<2x96xf32>
    %316 = tpu.matmul %314, %20, %cst_121 {dimension_numbers = #tpu.dot_dimension_numbers<[1], [0], [0], [1], [0, 0, 1, 1], [], []>} : vector<2x32xf32>, vector<32x96xf32>, vector<2x96xf32> -> vector<2x96xf32>
    %317 = vector.broadcast %21 : vector<1x96xf32> to vector<2x96xf32>
    %318 = arith.addf %316, %317 : vector<2x96xf32>
    %cst_122 = arith.constant dense<0.000000e+00> : vector<2x96xf32>
    %319 = tpu.matmul %315, %22, %cst_122 {dimension_numbers = #tpu.dot_dimension_numbers<[1], [0], [0], [1], [0, 0, 1, 1], [], []>} : vector<2x32xf32>, vector<32x96xf32>, vector<2x96xf32> -> vector<2x96xf32>
    %320 = vector.broadcast %23 : vector<1x96xf32> to vector<2x96xf32>
    %321 = arith.addf %319, %320 : vector<2x96xf32>
    %322 = arith.index_cast %313 : i32 to index
    %c0_123 = arith.constant 0 : index
    %323 = vector.load %arg30[%322, %c0_123] : memref<16x96xf32, #tpu.memory_space<vmem>>, vector<2x96xf32>
    %324 = arith.index_cast %313 : i32 to index
    %c0_124 = arith.constant 0 : index
    %325 = vector.load %arg31[%324, %c0_124] : memref<16x96xf32, #tpu.memory_space<vmem>>, vector<2x96xf32>
    %326 = vector.extract_strided_slice %323 {offsets = [0, 0], sizes = [2, 32], strides = [1, 1]} : vector<2x96xf32> to vector<2x32xf32>
    %327 = vector.extract_strided_slice %318 {offsets = [0, 0], sizes = [2, 32], strides = [1, 1]} : vector<2x96xf32> to vector<2x32xf32>
    %328 = arith.addf %326, %327 : vector<2x32xf32>
    %329 = arith.negf %328 : vector<2x32xf32>
    %330 = math.exp %329 : vector<2x32xf32>
    %cst_125 = arith.constant 1.000000e+00 : f32
    %331 = vector.broadcast %cst_125 : f32 to vector<2x32xf32>
    %332 = arith.addf %331, %330 : vector<2x32xf32>
    %333 = arith.divf %331, %332 : vector<2x32xf32>
    %334 = vector.extract_strided_slice %323 {offsets = [0, 32], sizes = [2, 32], strides = [1, 1]} : vector<2x96xf32> to vector<2x32xf32>
    %335 = vector.extract_strided_slice %318 {offsets = [0, 32], sizes = [2, 32], strides = [1, 1]} : vector<2x96xf32> to vector<2x32xf32>
    %336 = arith.addf %334, %335 : vector<2x32xf32>
    %337 = arith.negf %336 : vector<2x32xf32>
    %338 = math.exp %337 : vector<2x32xf32>
    %cst_126 = arith.constant 1.000000e+00 : f32
    %339 = vector.broadcast %cst_126 : f32 to vector<2x32xf32>
    %340 = arith.addf %339, %338 : vector<2x32xf32>
    %341 = arith.divf %339, %340 : vector<2x32xf32>
    %342 = vector.extract_strided_slice %323 {offsets = [0, 64], sizes = [2, 32], strides = [1, 1]} : vector<2x96xf32> to vector<2x32xf32>
    %343 = vector.extract_strided_slice %318 {offsets = [0, 64], sizes = [2, 32], strides = [1, 1]} : vector<2x96xf32> to vector<2x32xf32>
    %344 = arith.mulf %333, %343 : vector<2x32xf32>
    %345 = arith.addf %342, %344 : vector<2x32xf32>
    %346 = math.tanh %345 : vector<2x32xf32>
    %cst_127 = arith.constant 1.000000e+00 : f32
    %347 = vector.broadcast %cst_127 : f32 to vector<2x32xf32>
    %348 = arith.subf %347, %341 : vector<2x32xf32>
    %349 = arith.mulf %348, %346 : vector<2x32xf32>
    %350 = arith.mulf %341, %314 : vector<2x32xf32>
    %351 = arith.addf %349, %350 : vector<2x32xf32>
    %352 = vector.extract_strided_slice %325 {offsets = [0, 0], sizes = [2, 32], strides = [1, 1]} : vector<2x96xf32> to vector<2x32xf32>
    %353 = vector.extract_strided_slice %321 {offsets = [0, 0], sizes = [2, 32], strides = [1, 1]} : vector<2x96xf32> to vector<2x32xf32>
    %354 = arith.addf %352, %353 : vector<2x32xf32>
    %355 = arith.negf %354 : vector<2x32xf32>
    %356 = math.exp %355 : vector<2x32xf32>
    %cst_128 = arith.constant 1.000000e+00 : f32
    %357 = vector.broadcast %cst_128 : f32 to vector<2x32xf32>
    %358 = arith.addf %357, %356 : vector<2x32xf32>
    %359 = arith.divf %357, %358 : vector<2x32xf32>
    %360 = vector.extract_strided_slice %325 {offsets = [0, 32], sizes = [2, 32], strides = [1, 1]} : vector<2x96xf32> to vector<2x32xf32>
    %361 = vector.extract_strided_slice %321 {offsets = [0, 32], sizes = [2, 32], strides = [1, 1]} : vector<2x96xf32> to vector<2x32xf32>
    %362 = arith.addf %360, %361 : vector<2x32xf32>
    %363 = arith.negf %362 : vector<2x32xf32>
    %364 = math.exp %363 : vector<2x32xf32>
    %cst_129 = arith.constant 1.000000e+00 : f32
    %365 = vector.broadcast %cst_129 : f32 to vector<2x32xf32>
    %366 = arith.addf %365, %364 : vector<2x32xf32>
    %367 = arith.divf %365, %366 : vector<2x32xf32>
    %368 = vector.extract_strided_slice %325 {offsets = [0, 64], sizes = [2, 32], strides = [1, 1]} : vector<2x96xf32> to vector<2x32xf32>
    %369 = vector.extract_strided_slice %321 {offsets = [0, 64], sizes = [2, 32], strides = [1, 1]} : vector<2x96xf32> to vector<2x32xf32>
    %370 = arith.mulf %359, %369 : vector<2x32xf32>
    %371 = arith.addf %368, %370 : vector<2x32xf32>
    %372 = math.tanh %371 : vector<2x32xf32>
    %cst_130 = arith.constant 1.000000e+00 : f32
    %373 = vector.broadcast %cst_130 : f32 to vector<2x32xf32>
    %374 = arith.subf %373, %367 : vector<2x32xf32>
    %375 = arith.mulf %374, %372 : vector<2x32xf32>
    %376 = arith.mulf %367, %315 : vector<2x32xf32>
    %377 = arith.addf %375, %376 : vector<2x32xf32>
    %c0_131 = arith.constant 0 : index
    %c0_132 = arith.constant 0 : index
    %378 = vector.load %arg34[%c0_131, %c0_132] : memref<2x32xf32, #tpu.memory_space<vmem>>, vector<2x32xf32>
    tpu.vector_store %arg34[%c0_131, %c0_132], %351 {strides = array<i32>} : memref<2x32xf32, #tpu.memory_space<vmem>>, vector<2x32xf32>,
    %c0_133 = arith.constant 0 : index
    %c0_134 = arith.constant 0 : index
    %379 = vector.load %arg35[%c0_133, %c0_134] : memref<2x32xf32, #tpu.memory_space<vmem>>, vector<2x32xf32>
    tpu.vector_store %arg35[%c0_133, %c0_134], %377 {strides = array<i32>} : memref<2x32xf32, #tpu.memory_space<vmem>>, vector<2x32xf32>,
    %380 = arith.index_cast %313 : i32 to index
    %c0_135 = arith.constant 0 : index
    %381 = vector.load %arg32[%380, %c0_135] : memref<16x32xf32, #tpu.memory_space<vmem>>, vector<2x32xf32>
    tpu.vector_store %arg32[%380, %c0_135], %351 {strides = array<i32>} : memref<16x32xf32, #tpu.memory_space<vmem>>, vector<2x32xf32>,
    %382 = arith.index_cast %313 : i32 to index
    %c0_136 = arith.constant 0 : index
    %383 = vector.load %arg33[%382, %c0_136] : memref<16x32xf32, #tpu.memory_space<vmem>>, vector<2x32xf32>
    tpu.vector_store %arg33[%382, %c0_136], %377 {strides = array<i32>} : memref<16x32xf32, #tpu.memory_space<vmem>>, vector<2x32xf32>,
    %c5_i32 = arith.constant 5 : i32
    %c2_i32_137 = arith.constant 2 : i32
    %384 = arith.muli %c5_i32, %c2_i32_137 : i32
    %385 = tpu.assume_multiple %384, 2 : i32
    %c0_138 = arith.constant 0 : index
    %c0_139 = arith.constant 0 : index
    %386 = vector.load %arg34[%c0_138, %c0_139] : memref<2x32xf32, #tpu.memory_space<vmem>>, vector<2x32xf32>
    %c0_140 = arith.constant 0 : index
    %c0_141 = arith.constant 0 : index
    %387 = vector.load %arg35[%c0_140, %c0_141] : memref<2x32xf32, #tpu.memory_space<vmem>>, vector<2x32xf32>
    %cst_142 = arith.constant dense<0.000000e+00> : vector<2x96xf32>
    %388 = tpu.matmul %386, %20, %cst_142 {dimension_numbers = #tpu.dot_dimension_numbers<[1], [0], [0], [1], [0, 0, 1, 1], [], []>} : vector<2x32xf32>, vector<32x96xf32>, vector<2x96xf32> -> vector<2x96xf32>
    %389 = vector.broadcast %21 : vector<1x96xf32> to vector<2x96xf32>
    %390 = arith.addf %388, %389 : vector<2x96xf32>
    %cst_143 = arith.constant dense<0.000000e+00> : vector<2x96xf32>
    %391 = tpu.matmul %387, %22, %cst_143 {dimension_numbers = #tpu.dot_dimension_numbers<[1], [0], [0], [1], [0, 0, 1, 1], [], []>} : vector<2x32xf32>, vector<32x96xf32>, vector<2x96xf32> -> vector<2x96xf32>
    %392 = vector.broadcast %23 : vector<1x96xf32> to vector<2x96xf32>
    %393 = arith.addf %391, %392 : vector<2x96xf32>
    %394 = arith.index_cast %385 : i32 to index
    %c0_144 = arith.constant 0 : index
    %395 = vector.load %arg30[%394, %c0_144] : memref<16x96xf32, #tpu.memory_space<vmem>>, vector<2x96xf32>
    %396 = arith.index_cast %385 : i32 to index
    %c0_145 = arith.constant 0 : index
    %397 = vector.load %arg31[%396, %c0_145] : memref<16x96xf32, #tpu.memory_space<vmem>>, vector<2x96xf32>
    %398 = vector.extract_strided_slice %395 {offsets = [0, 0], sizes = [2, 32], strides = [1, 1]} : vector<2x96xf32> to vector<2x32xf32>
    %399 = vector.extract_strided_slice %390 {offsets = [0, 0], sizes = [2, 32], strides = [1, 1]} : vector<2x96xf32> to vector<2x32xf32>
    %400 = arith.addf %398, %399 : vector<2x32xf32>
    %401 = arith.negf %400 : vector<2x32xf32>
    %402 = math.exp %401 : vector<2x32xf32>
    %cst_146 = arith.constant 1.000000e+00 : f32
    %403 = vector.broadcast %cst_146 : f32 to vector<2x32xf32>
    %404 = arith.addf %403, %402 : vector<2x32xf32>
    %405 = arith.divf %403, %404 : vector<2x32xf32>
    %406 = vector.extract_strided_slice %395 {offsets = [0, 32], sizes = [2, 32], strides = [1, 1]} : vector<2x96xf32> to vector<2x32xf32>
    %407 = vector.extract_strided_slice %390 {offsets = [0, 32], sizes = [2, 32], strides = [1, 1]} : vector<2x96xf32> to vector<2x32xf32>
    %408 = arith.addf %406, %407 : vector<2x32xf32>
    %409 = arith.negf %408 : vector<2x32xf32>
    %410 = math.exp %409 : vector<2x32xf32>
    %cst_147 = arith.constant 1.000000e+00 : f32
    %411 = vector.broadcast %cst_147 : f32 to vector<2x32xf32>
    %412 = arith.addf %411, %410 : vector<2x32xf32>
    %413 = arith.divf %411, %412 : vector<2x32xf32>
    %414 = vector.extract_strided_slice %395 {offsets = [0, 64], sizes = [2, 32], strides = [1, 1]} : vector<2x96xf32> to vector<2x32xf32>
    %415 = vector.extract_strided_slice %390 {offsets = [0, 64], sizes = [2, 32], strides = [1, 1]} : vector<2x96xf32> to vector<2x32xf32>
    %416 = arith.mulf %405, %415 : vector<2x32xf32>
    %417 = arith.addf %414, %416 : vector<2x32xf32>
    %418 = math.tanh %417 : vector<2x32xf32>
    %cst_148 = arith.constant 1.000000e+00 : f32
    %419 = vector.broadcast %cst_148 : f32 to vector<2x32xf32>
    %420 = arith.subf %419, %413 : vector<2x32xf32>
    %421 = arith.mulf %420, %418 : vector<2x32xf32>
    %422 = arith.mulf %413, %386 : vector<2x32xf32>
    %423 = arith.addf %421, %422 : vector<2x32xf32>
    %424 = vector.extract_strided_slice %397 {offsets = [0, 0], sizes = [2, 32], strides = [1, 1]} : vector<2x96xf32> to vector<2x32xf32>
    %425 = vector.extract_strided_slice %393 {offsets = [0, 0], sizes = [2, 32], strides = [1, 1]} : vector<2x96xf32> to vector<2x32xf32>
    %426 = arith.addf %424, %425 : vector<2x32xf32>
    %427 = arith.negf %426 : vector<2x32xf32>
    %428 = math.exp %427 : vector<2x32xf32>
    %cst_149 = arith.constant 1.000000e+00 : f32
    %429 = vector.broadcast %cst_149 : f32 to vector<2x32xf32>
    %430 = arith.addf %429, %428 : vector<2x32xf32>
    %431 = arith.divf %429, %430 : vector<2x32xf32>
    %432 = vector.extract_strided_slice %397 {offsets = [0, 32], sizes = [2, 32], strides = [1, 1]} : vector<2x96xf32> to vector<2x32xf32>
    %433 = vector.extract_strided_slice %393 {offsets = [0, 32], sizes = [2, 32], strides = [1, 1]} : vector<2x96xf32> to vector<2x32xf32>
    %434 = arith.addf %432, %433 : vector<2x32xf32>
    %435 = arith.negf %434 : vector<2x32xf32>
    %436 = math.exp %435 : vector<2x32xf32>
    %cst_150 = arith.constant 1.000000e+00 : f32
    %437 = vector.broadcast %cst_150 : f32 to vector<2x32xf32>
    %438 = arith.addf %437, %436 : vector<2x32xf32>
    %439 = arith.divf %437, %438 : vector<2x32xf32>
    %440 = vector.extract_strided_slice %397 {offsets = [0, 64], sizes = [2, 32], strides = [1, 1]} : vector<2x96xf32> to vector<2x32xf32>
    %441 = vector.extract_strided_slice %393 {offsets = [0, 64], sizes = [2, 32], strides = [1, 1]} : vector<2x96xf32> to vector<2x32xf32>
    %442 = arith.mulf %431, %441 : vector<2x32xf32>
    %443 = arith.addf %440, %442 : vector<2x32xf32>
    %444 = math.tanh %443 : vector<2x32xf32>
    %cst_151 = arith.constant 1.000000e+00 : f32
    %445 = vector.broadcast %cst_151 : f32 to vector<2x32xf32>
    %446 = arith.subf %445, %439 : vector<2x32xf32>
    %447 = arith.mulf %446, %444 : vector<2x32xf32>
    %448 = arith.mulf %439, %387 : vector<2x32xf32>
    %449 = arith.addf %447, %448 : vector<2x32xf32>
    %c0_152 = arith.constant 0 : index
    %c0_153 = arith.constant 0 : index
    %450 = vector.load %arg34[%c0_152, %c0_153] : memref<2x32xf32, #tpu.memory_space<vmem>>, vector<2x32xf32>
    tpu.vector_store %arg34[%c0_152, %c0_153], %423 {strides = array<i32>} : memref<2x32xf32, #tpu.memory_space<vmem>>, vector<2x32xf32>,
    %c0_154 = arith.constant 0 : index
    %c0_155 = arith.constant 0 : index
    %451 = vector.load %arg35[%c0_154, %c0_155] : memref<2x32xf32, #tpu.memory_space<vmem>>, vector<2x32xf32>
    tpu.vector_store %arg35[%c0_154, %c0_155], %449 {strides = array<i32>} : memref<2x32xf32, #tpu.memory_space<vmem>>, vector<2x32xf32>,
    %452 = arith.index_cast %385 : i32 to index
    %c0_156 = arith.constant 0 : index
    %453 = vector.load %arg32[%452, %c0_156] : memref<16x32xf32, #tpu.memory_space<vmem>>, vector<2x32xf32>
    tpu.vector_store %arg32[%452, %c0_156], %423 {strides = array<i32>} : memref<16x32xf32, #tpu.memory_space<vmem>>, vector<2x32xf32>,
    %454 = arith.index_cast %385 : i32 to index
    %c0_157 = arith.constant 0 : index
    %455 = vector.load %arg33[%454, %c0_157] : memref<16x32xf32, #tpu.memory_space<vmem>>, vector<2x32xf32>
    tpu.vector_store %arg33[%454, %c0_157], %449 {strides = array<i32>} : memref<16x32xf32, #tpu.memory_space<vmem>>, vector<2x32xf32>,
    %c6_i32 = arith.constant 6 : i32
    %c2_i32_158 = arith.constant 2 : i32
    %456 = arith.muli %c6_i32, %c2_i32_158 : i32
    %457 = tpu.assume_multiple %456, 2 : i32
    %c0_159 = arith.constant 0 : index
    %c0_160 = arith.constant 0 : index
    %458 = vector.load %arg34[%c0_159, %c0_160] : memref<2x32xf32, #tpu.memory_space<vmem>>, vector<2x32xf32>
    %c0_161 = arith.constant 0 : index
    %c0_162 = arith.constant 0 : index
    %459 = vector.load %arg35[%c0_161, %c0_162] : memref<2x32xf32, #tpu.memory_space<vmem>>, vector<2x32xf32>
    %cst_163 = arith.constant dense<0.000000e+00> : vector<2x96xf32>
    %460 = tpu.matmul %458, %20, %cst_163 {dimension_numbers = #tpu.dot_dimension_numbers<[1], [0], [0], [1], [0, 0, 1, 1], [], []>} : vector<2x32xf32>, vector<32x96xf32>, vector<2x96xf32> -> vector<2x96xf32>
    %461 = vector.broadcast %21 : vector<1x96xf32> to vector<2x96xf32>
    %462 = arith.addf %460, %461 : vector<2x96xf32>
    %cst_164 = arith.constant dense<0.000000e+00> : vector<2x96xf32>
    %463 = tpu.matmul %459, %22, %cst_164 {dimension_numbers = #tpu.dot_dimension_numbers<[1], [0], [0], [1], [0, 0, 1, 1], [], []>} : vector<2x32xf32>, vector<32x96xf32>, vector<2x96xf32> -> vector<2x96xf32>
    %464 = vector.broadcast %23 : vector<1x96xf32> to vector<2x96xf32>
    %465 = arith.addf %463, %464 : vector<2x96xf32>
    %466 = arith.index_cast %457 : i32 to index
    %c0_165 = arith.constant 0 : index
    %467 = vector.load %arg30[%466, %c0_165] : memref<16x96xf32, #tpu.memory_space<vmem>>, vector<2x96xf32>
    %468 = arith.index_cast %457 : i32 to index
    %c0_166 = arith.constant 0 : index
    %469 = vector.load %arg31[%468, %c0_166] : memref<16x96xf32, #tpu.memory_space<vmem>>, vector<2x96xf32>
    %470 = vector.extract_strided_slice %467 {offsets = [0, 0], sizes = [2, 32], strides = [1, 1]} : vector<2x96xf32> to vector<2x32xf32>
    %471 = vector.extract_strided_slice %462 {offsets = [0, 0], sizes = [2, 32], strides = [1, 1]} : vector<2x96xf32> to vector<2x32xf32>
    %472 = arith.addf %470, %471 : vector<2x32xf32>
    %473 = arith.negf %472 : vector<2x32xf32>
    %474 = math.exp %473 : vector<2x32xf32>
    %cst_167 = arith.constant 1.000000e+00 : f32
    %475 = vector.broadcast %cst_167 : f32 to vector<2x32xf32>
    %476 = arith.addf %475, %474 : vector<2x32xf32>
    %477 = arith.divf %475, %476 : vector<2x32xf32>
    %478 = vector.extract_strided_slice %467 {offsets = [0, 32], sizes = [2, 32], strides = [1, 1]} : vector<2x96xf32> to vector<2x32xf32>
    %479 = vector.extract_strided_slice %462 {offsets = [0, 32], sizes = [2, 32], strides = [1, 1]} : vector<2x96xf32> to vector<2x32xf32>
    %480 = arith.addf %478, %479 : vector<2x32xf32>
    %481 = arith.negf %480 : vector<2x32xf32>
    %482 = math.exp %481 : vector<2x32xf32>
    %cst_168 = arith.constant 1.000000e+00 : f32
    %483 = vector.broadcast %cst_168 : f32 to vector<2x32xf32>
    %484 = arith.addf %483, %482 : vector<2x32xf32>
    %485 = arith.divf %483, %484 : vector<2x32xf32>
    %486 = vector.extract_strided_slice %467 {offsets = [0, 64], sizes = [2, 32], strides = [1, 1]} : vector<2x96xf32> to vector<2x32xf32>
    %487 = vector.extract_strided_slice %462 {offsets = [0, 64], sizes = [2, 32], strides = [1, 1]} : vector<2x96xf32> to vector<2x32xf32>
    %488 = arith.mulf %477, %487 : vector<2x32xf32>
    %489 = arith.addf %486, %488 : vector<2x32xf32>
    %490 = math.tanh %489 : vector<2x32xf32>
    %cst_169 = arith.constant 1.000000e+00 : f32
    %491 = vector.broadcast %cst_169 : f32 to vector<2x32xf32>
    %492 = arith.subf %491, %485 : vector<2x32xf32>
    %493 = arith.mulf %492, %490 : vector<2x32xf32>
    %494 = arith.mulf %485, %458 : vector<2x32xf32>
    %495 = arith.addf %493, %494 : vector<2x32xf32>
    %496 = vector.extract_strided_slice %469 {offsets = [0, 0], sizes = [2, 32], strides = [1, 1]} : vector<2x96xf32> to vector<2x32xf32>
    %497 = vector.extract_strided_slice %465 {offsets = [0, 0], sizes = [2, 32], strides = [1, 1]} : vector<2x96xf32> to vector<2x32xf32>
    %498 = arith.addf %496, %497 : vector<2x32xf32>
    %499 = arith.negf %498 : vector<2x32xf32>
    %500 = math.exp %499 : vector<2x32xf32>
    %cst_170 = arith.constant 1.000000e+00 : f32
    %501 = vector.broadcast %cst_170 : f32 to vector<2x32xf32>
    %502 = arith.addf %501, %500 : vector<2x32xf32>
    %503 = arith.divf %501, %502 : vector<2x32xf32>
    %504 = vector.extract_strided_slice %469 {offsets = [0, 32], sizes = [2, 32], strides = [1, 1]} : vector<2x96xf32> to vector<2x32xf32>
    %505 = vector.extract_strided_slice %465 {offsets = [0, 32], sizes = [2, 32], strides = [1, 1]} : vector<2x96xf32> to vector<2x32xf32>
    %506 = arith.addf %504, %505 : vector<2x32xf32>
    %507 = arith.negf %506 : vector<2x32xf32>
    %508 = math.exp %507 : vector<2x32xf32>
    %cst_171 = arith.constant 1.000000e+00 : f32
    %509 = vector.broadcast %cst_171 : f32 to vector<2x32xf32>
    %510 = arith.addf %509, %508 : vector<2x32xf32>
    %511 = arith.divf %509, %510 : vector<2x32xf32>
    %512 = vector.extract_strided_slice %469 {offsets = [0, 64], sizes = [2, 32], strides = [1, 1]} : vector<2x96xf32> to vector<2x32xf32>
    %513 = vector.extract_strided_slice %465 {offsets = [0, 64], sizes = [2, 32], strides = [1, 1]} : vector<2x96xf32> to vector<2x32xf32>
    %514 = arith.mulf %503, %513 : vector<2x32xf32>
    %515 = arith.addf %512, %514 : vector<2x32xf32>
    %516 = math.tanh %515 : vector<2x32xf32>
    %cst_172 = arith.constant 1.000000e+00 : f32
    %517 = vector.broadcast %cst_172 : f32 to vector<2x32xf32>
    %518 = arith.subf %517, %511 : vector<2x32xf32>
    %519 = arith.mulf %518, %516 : vector<2x32xf32>
    %520 = arith.mulf %511, %459 : vector<2x32xf32>
    %521 = arith.addf %519, %520 : vector<2x32xf32>
    %c0_173 = arith.constant 0 : index
    %c0_174 = arith.constant 0 : index
    %522 = vector.load %arg34[%c0_173, %c0_174] : memref<2x32xf32, #tpu.memory_space<vmem>>, vector<2x32xf32>
    tpu.vector_store %arg34[%c0_173, %c0_174], %495 {strides = array<i32>} : memref<2x32xf32, #tpu.memory_space<vmem>>, vector<2x32xf32>,
    %c0_175 = arith.constant 0 : index
    %c0_176 = arith.constant 0 : index
    %523 = vector.load %arg35[%c0_175, %c0_176] : memref<2x32xf32, #tpu.memory_space<vmem>>, vector<2x32xf32>
    tpu.vector_store %arg35[%c0_175, %c0_176], %521 {strides = array<i32>} : memref<2x32xf32, #tpu.memory_space<vmem>>, vector<2x32xf32>,
    %524 = arith.index_cast %457 : i32 to index
    %c0_177 = arith.constant 0 : index
    %525 = vector.load %arg32[%524, %c0_177] : memref<16x32xf32, #tpu.memory_space<vmem>>, vector<2x32xf32>
    tpu.vector_store %arg32[%524, %c0_177], %495 {strides = array<i32>} : memref<16x32xf32, #tpu.memory_space<vmem>>, vector<2x32xf32>,
    %526 = arith.index_cast %457 : i32 to index
    %c0_178 = arith.constant 0 : index
    %527 = vector.load %arg33[%526, %c0_178] : memref<16x32xf32, #tpu.memory_space<vmem>>, vector<2x32xf32>
    tpu.vector_store %arg33[%526, %c0_178], %521 {strides = array<i32>} : memref<16x32xf32, #tpu.memory_space<vmem>>, vector<2x32xf32>,
    %c7_i32 = arith.constant 7 : i32
    %c2_i32_179 = arith.constant 2 : i32
    %528 = arith.muli %c7_i32, %c2_i32_179 : i32
    %529 = tpu.assume_multiple %528, 2 : i32
    %c0_180 = arith.constant 0 : index
    %c0_181 = arith.constant 0 : index
    %530 = vector.load %arg34[%c0_180, %c0_181] : memref<2x32xf32, #tpu.memory_space<vmem>>, vector<2x32xf32>
    %c0_182 = arith.constant 0 : index
    %c0_183 = arith.constant 0 : index
    %531 = vector.load %arg35[%c0_182, %c0_183] : memref<2x32xf32, #tpu.memory_space<vmem>>, vector<2x32xf32>
    %cst_184 = arith.constant dense<0.000000e+00> : vector<2x96xf32>
    %532 = tpu.matmul %530, %20, %cst_184 {dimension_numbers = #tpu.dot_dimension_numbers<[1], [0], [0], [1], [0, 0, 1, 1], [], []>} : vector<2x32xf32>, vector<32x96xf32>, vector<2x96xf32> -> vector<2x96xf32>
    %533 = vector.broadcast %21 : vector<1x96xf32> to vector<2x96xf32>
    %534 = arith.addf %532, %533 : vector<2x96xf32>
    %cst_185 = arith.constant dense<0.000000e+00> : vector<2x96xf32>
    %535 = tpu.matmul %531, %22, %cst_185 {dimension_numbers = #tpu.dot_dimension_numbers<[1], [0], [0], [1], [0, 0, 1, 1], [], []>} : vector<2x32xf32>, vector<32x96xf32>, vector<2x96xf32> -> vector<2x96xf32>
    %536 = vector.broadcast %23 : vector<1x96xf32> to vector<2x96xf32>
    %537 = arith.addf %535, %536 : vector<2x96xf32>
    %538 = arith.index_cast %529 : i32 to index
    %c0_186 = arith.constant 0 : index
    %539 = vector.load %arg30[%538, %c0_186] : memref<16x96xf32, #tpu.memory_space<vmem>>, vector<2x96xf32>
    %540 = arith.index_cast %529 : i32 to index
    %c0_187 = arith.constant 0 : index
    %541 = vector.load %arg31[%540, %c0_187] : memref<16x96xf32, #tpu.memory_space<vmem>>, vector<2x96xf32>
    %542 = vector.extract_strided_slice %539 {offsets = [0, 0], sizes = [2, 32], strides = [1, 1]} : vector<2x96xf32> to vector<2x32xf32>
    %543 = vector.extract_strided_slice %534 {offsets = [0, 0], sizes = [2, 32], strides = [1, 1]} : vector<2x96xf32> to vector<2x32xf32>
    %544 = arith.addf %542, %543 : vector<2x32xf32>
    %545 = arith.negf %544 : vector<2x32xf32>
    %546 = math.exp %545 : vector<2x32xf32>
    %cst_188 = arith.constant 1.000000e+00 : f32
    %547 = vector.broadcast %cst_188 : f32 to vector<2x32xf32>
    %548 = arith.addf %547, %546 : vector<2x32xf32>
    %549 = arith.divf %547, %548 : vector<2x32xf32>
    %550 = vector.extract_strided_slice %539 {offsets = [0, 32], sizes = [2, 32], strides = [1, 1]} : vector<2x96xf32> to vector<2x32xf32>
    %551 = vector.extract_strided_slice %534 {offsets = [0, 32], sizes = [2, 32], strides = [1, 1]} : vector<2x96xf32> to vector<2x32xf32>
    %552 = arith.addf %550, %551 : vector<2x32xf32>
    %553 = arith.negf %552 : vector<2x32xf32>
    %554 = math.exp %553 : vector<2x32xf32>
    %cst_189 = arith.constant 1.000000e+00 : f32
    %555 = vector.broadcast %cst_189 : f32 to vector<2x32xf32>
    %556 = arith.addf %555, %554 : vector<2x32xf32>
    %557 = arith.divf %555, %556 : vector<2x32xf32>
    %558 = vector.extract_strided_slice %539 {offsets = [0, 64], sizes = [2, 32], strides = [1, 1]} : vector<2x96xf32> to vector<2x32xf32>
    %559 = vector.extract_strided_slice %534 {offsets = [0, 64], sizes = [2, 32], strides = [1, 1]} : vector<2x96xf32> to vector<2x32xf32>
    %560 = arith.mulf %549, %559 : vector<2x32xf32>
    %561 = arith.addf %558, %560 : vector<2x32xf32>
    %562 = math.tanh %561 : vector<2x32xf32>
    %cst_190 = arith.constant 1.000000e+00 : f32
    %563 = vector.broadcast %cst_190 : f32 to vector<2x32xf32>
    %564 = arith.subf %563, %557 : vector<2x32xf32>
    %565 = arith.mulf %564, %562 : vector<2x32xf32>
    %566 = arith.mulf %557, %530 : vector<2x32xf32>
    %567 = arith.addf %565, %566 : vector<2x32xf32>
    %568 = vector.extract_strided_slice %541 {offsets = [0, 0], sizes = [2, 32], strides = [1, 1]} : vector<2x96xf32> to vector<2x32xf32>
    %569 = vector.extract_strided_slice %537 {offsets = [0, 0], sizes = [2, 32], strides = [1, 1]} : vector<2x96xf32> to vector<2x32xf32>
    %570 = arith.addf %568, %569 : vector<2x32xf32>
    %571 = arith.negf %570 : vector<2x32xf32>
    %572 = math.exp %571 : vector<2x32xf32>
    %cst_191 = arith.constant 1.000000e+00 : f32
    %573 = vector.broadcast %cst_191 : f32 to vector<2x32xf32>
    %574 = arith.addf %573, %572 : vector<2x32xf32>
    %575 = arith.divf %573, %574 : vector<2x32xf32>
    %576 = vector.extract_strided_slice %541 {offsets = [0, 32], sizes = [2, 32], strides = [1, 1]} : vector<2x96xf32> to vector<2x32xf32>
    %577 = vector.extract_strided_slice %537 {offsets = [0, 32], sizes = [2, 32], strides = [1, 1]} : vector<2x96xf32> to vector<2x32xf32>
    %578 = arith.addf %576, %577 : vector<2x32xf32>
    %579 = arith.negf %578 : vector<2x32xf32>
    %580 = math.exp %579 : vector<2x32xf32>
    %cst_192 = arith.constant 1.000000e+00 : f32
    %581 = vector.broadcast %cst_192 : f32 to vector<2x32xf32>
    %582 = arith.addf %581, %580 : vector<2x32xf32>
    %583 = arith.divf %581, %582 : vector<2x32xf32>
    %584 = vector.extract_strided_slice %541 {offsets = [0, 64], sizes = [2, 32], strides = [1, 1]} : vector<2x96xf32> to vector<2x32xf32>
    %585 = vector.extract_strided_slice %537 {offsets = [0, 64], sizes = [2, 32], strides = [1, 1]} : vector<2x96xf32> to vector<2x32xf32>
    %586 = arith.mulf %575, %585 : vector<2x32xf32>
    %587 = arith.addf %584, %586 : vector<2x32xf32>
    %588 = math.tanh %587 : vector<2x32xf32>
    %cst_193 = arith.constant 1.000000e+00 : f32
    %589 = vector.broadcast %cst_193 : f32 to vector<2x32xf32>
    %590 = arith.subf %589, %583 : vector<2x32xf32>
    %591 = arith.mulf %590, %588 : vector<2x32xf32>
    %592 = arith.mulf %583, %531 : vector<2x32xf32>
    %593 = arith.addf %591, %592 : vector<2x32xf32>
    %c0_194 = arith.constant 0 : index
    %c0_195 = arith.constant 0 : index
    %594 = vector.load %arg34[%c0_194, %c0_195] : memref<2x32xf32, #tpu.memory_space<vmem>>, vector<2x32xf32>
    tpu.vector_store %arg34[%c0_194, %c0_195], %567 {strides = array<i32>} : memref<2x32xf32, #tpu.memory_space<vmem>>, vector<2x32xf32>,
    %c0_196 = arith.constant 0 : index
    %c0_197 = arith.constant 0 : index
    %595 = vector.load %arg35[%c0_196, %c0_197] : memref<2x32xf32, #tpu.memory_space<vmem>>, vector<2x32xf32>
    tpu.vector_store %arg35[%c0_196, %c0_197], %593 {strides = array<i32>} : memref<2x32xf32, #tpu.memory_space<vmem>>, vector<2x32xf32>,
    %596 = arith.index_cast %529 : i32 to index
    %c0_198 = arith.constant 0 : index
    %597 = vector.load %arg32[%596, %c0_198] : memref<16x32xf32, #tpu.memory_space<vmem>>, vector<2x32xf32>
    tpu.vector_store %arg32[%596, %c0_198], %567 {strides = array<i32>} : memref<16x32xf32, #tpu.memory_space<vmem>>, vector<2x32xf32>,
    %598 = arith.index_cast %529 : i32 to index
    %c0_199 = arith.constant 0 : index
    %599 = vector.load %arg33[%598, %c0_199] : memref<16x32xf32, #tpu.memory_space<vmem>>, vector<2x32xf32>
    tpu.vector_store %arg33[%598, %c0_199], %593 {strides = array<i32>} : memref<16x32xf32, #tpu.memory_space<vmem>>, vector<2x32xf32>,
    %c8_i32 = arith.constant 8 : i32
    %c0_200 = arith.constant 0 : index
    %c0_201 = arith.constant 0 : index
    %600 = vector.load %arg34[%c0_200, %c0_201] : memref<2x32xf32, #tpu.memory_space<vmem>>, vector<2x32xf32>
    %c0_202 = arith.constant 0 : index
    %c0_203 = arith.constant 0 : index
    %c0_204 = arith.constant 0 : index
    %601 = vector.load %arg29[%c0_202, %c0_203, %c0_204] : memref<2x2x32xf32, #tpu.memory_space<vmem>>, vector<1x2x32xf32>
    %602 = vector.shape_cast %601 : vector<1x2x32xf32> to vector<2x32xf32>
    %603 = vector.shape_cast %600 : vector<2x32xf32> to vector<1x2x32xf32>
    tpu.vector_store %arg29[%c0_202, %c0_203, %c0_204], %603 {strides = array<i32>} : memref<2x2x32xf32, #tpu.memory_space<vmem>>, vector<1x2x32xf32>,
    %c0_205 = arith.constant 0 : index
    %c0_206 = arith.constant 0 : index
    %604 = vector.load %arg32[%c0_205, %c0_206] : memref<16x32xf32, #tpu.memory_space<vmem>>, vector<16x32xf32>
    %c0_207 = arith.constant 0 : index
    %c0_208 = arith.constant 0 : index
    %605 = vector.load %arg33[%c0_207, %c0_208] : memref<16x32xf32, #tpu.memory_space<vmem>>, vector<16x32xf32>
    %c0_209 = arith.constant 0 : index
    %c0_210 = arith.constant 0 : index
    %606 = vector.load %arg6[%c0_209, %c0_210] : memref<32x96xf32, #tpu.memory_space<vmem>>, vector<32x96xf32>
    %cst_211 = arith.constant dense<0.000000e+00> : vector<16x96xf32>
    %607 = tpu.matmul %604, %606, %cst_211 {dimension_numbers = #tpu.dot_dimension_numbers<[1], [0], [0], [1], [0, 0, 1, 1], [], []>} : vector<16x32xf32>, vector<32x96xf32>, vector<16x96xf32> -> vector<16x96xf32>
    %c0_212 = arith.constant 0 : index
    %c0_213 = arith.constant 0 : index
    %608 = vector.load %arg8[%c0_212, %c0_213] : memref<1x96xf32, #tpu.memory_space<vmem>>, vector<1x96xf32>
    %609 = vector.broadcast %608 : vector<1x96xf32> to vector<16x96xf32>
    %610 = arith.addf %607, %609 : vector<16x96xf32>
    %c0_214 = arith.constant 0 : index
    %c0_215 = arith.constant 0 : index
    %611 = vector.load %arg30[%c0_214, %c0_215] : memref<16x96xf32, #tpu.memory_space<vmem>>, vector<16x96xf32>
    tpu.vector_store %arg30[%c0_214, %c0_215], %610 {strides = array<i32>} : memref<16x96xf32, #tpu.memory_space<vmem>>, vector<16x96xf32>,
    %c0_216 = arith.constant 0 : index
    %c0_217 = arith.constant 0 : index
    %612 = vector.load %arg14[%c0_216, %c0_217] : memref<32x96xf32, #tpu.memory_space<vmem>>, vector<32x96xf32>
    %cst_218 = arith.constant dense<0.000000e+00> : vector<16x96xf32>
    %613 = tpu.matmul %605, %612, %cst_218 {dimension_numbers = #tpu.dot_dimension_numbers<[1], [0], [0], [1], [0, 0, 1, 1], [], []>} : vector<16x32xf32>, vector<32x96xf32>, vector<16x96xf32> -> vector<16x96xf32>
    %c0_219 = arith.constant 0 : index
    %c0_220 = arith.constant 0 : index
    %614 = vector.load %arg16[%c0_219, %c0_220] : memref<1x96xf32, #tpu.memory_space<vmem>>, vector<1x96xf32>
    %615 = vector.broadcast %614 : vector<1x96xf32> to vector<16x96xf32>
    %616 = arith.addf %613, %615 : vector<16x96xf32>
    %c0_221 = arith.constant 0 : index
    %c0_222 = arith.constant 0 : index
    %617 = vector.load %arg31[%c0_221, %c0_222] : memref<16x96xf32, #tpu.memory_space<vmem>>, vector<16x96xf32>
    tpu.vector_store %arg31[%c0_221, %c0_222], %616 {strides = array<i32>} : memref<16x96xf32, #tpu.memory_space<vmem>>, vector<16x96xf32>,
    %c1 = arith.constant 1 : index
    %c0_223 = arith.constant 0 : index
    %c0_224 = arith.constant 0 : index
    %618 = vector.load %arg1[%c1, %c0_223, %c0_224] : memref<2x2x32xf32, #tpu.memory_space<vmem>>, vector<1x2x32xf32>
    %619 = vector.shape_cast %618 : vector<1x2x32xf32> to vector<2x32xf32>
    %c0_225 = arith.constant 0 : index
    %c0_226 = arith.constant 0 : index
    %620 = vector.load %arg34[%c0_225, %c0_226] : memref<2x32xf32, #tpu.memory_space<vmem>>, vector<2x32xf32>
    tpu.vector_store %arg34[%c0_225, %c0_226], %619 {strides = array<i32>} : memref<2x32xf32, #tpu.memory_space<vmem>>, vector<2x32xf32>,
    %c1_227 = arith.constant 1 : index
    %c0_228 = arith.constant 0 : index
    %c0_229 = arith.constant 0 : index
    %621 = vector.load %arg1[%c1_227, %c0_228, %c0_229] : memref<2x2x32xf32, #tpu.memory_space<vmem>>, vector<1x2x32xf32>
    %622 = vector.shape_cast %621 : vector<1x2x32xf32> to vector<2x32xf32>
    %c0_230 = arith.constant 0 : index
    %c0_231 = arith.constant 0 : index
    %623 = vector.load %arg35[%c0_230, %c0_231] : memref<2x32xf32, #tpu.memory_space<vmem>>, vector<2x32xf32>
    tpu.vector_store %arg35[%c0_230, %c0_231], %622 {strides = array<i32>} : memref<2x32xf32, #tpu.memory_space<vmem>>, vector<2x32xf32>,
    %c0_232 = arith.constant 0 : index
    %c0_233 = arith.constant 0 : index
    %624 = vector.load %arg7[%c0_232, %c0_233] : memref<32x96xf32, #tpu.memory_space<vmem>>, vector<32x96xf32>
    %c0_234 = arith.constant 0 : index
    %c0_235 = arith.constant 0 : index
    %625 = vector.load %arg9[%c0_234, %c0_235] : memref<1x96xf32, #tpu.memory_space<vmem>>, vector<1x96xf32>
    %c0_236 = arith.constant 0 : index
    %c0_237 = arith.constant 0 : index
    %626 = vector.load %arg15[%c0_236, %c0_237] : memref<32x96xf32, #tpu.memory_space<vmem>>, vector<32x96xf32>
    %c0_238 = arith.constant 0 : index
    %c0_239 = arith.constant 0 : index
    %627 = vector.load %arg17[%c0_238, %c0_239] : memref<1x96xf32, #tpu.memory_space<vmem>>, vector<1x96xf32>
    %c0_i32_240 = arith.constant 0 : i32
    %c2_i32_241 = arith.constant 2 : i32
    %628 = arith.muli %c0_i32_240, %c2_i32_241 : i32
    %629 = tpu.assume_multiple %628, 2 : i32
    %c0_242 = arith.constant 0 : index
    %c0_243 = arith.constant 0 : index
    %630 = vector.load %arg34[%c0_242, %c0_243] : memref<2x32xf32, #tpu.memory_space<vmem>>, vector<2x32xf32>
    %c0_244 = arith.constant 0 : index
    %c0_245 = arith.constant 0 : index
    %631 = vector.load %arg35[%c0_244, %c0_245] : memref<2x32xf32, #tpu.memory_space<vmem>>, vector<2x32xf32>
    %cst_246 = arith.constant dense<0.000000e+00> : vector<2x96xf32>
    %632 = tpu.matmul %630, %624, %cst_246 {dimension_numbers = #tpu.dot_dimension_numbers<[1], [0], [0], [1], [0, 0, 1, 1], [], []>} : vector<2x32xf32>, vector<32x96xf32>, vector<2x96xf32> -> vector<2x96xf32>
    %633 = vector.broadcast %625 : vector<1x96xf32> to vector<2x96xf32>
    %634 = arith.addf %632, %633 : vector<2x96xf32>
    %cst_247 = arith.constant dense<0.000000e+00> : vector<2x96xf32>
    %635 = tpu.matmul %631, %626, %cst_247 {dimension_numbers = #tpu.dot_dimension_numbers<[1], [0], [0], [1], [0, 0, 1, 1], [], []>} : vector<2x32xf32>, vector<32x96xf32>, vector<2x96xf32> -> vector<2x96xf32>
    %636 = vector.broadcast %627 : vector<1x96xf32> to vector<2x96xf32>
    %637 = arith.addf %635, %636 : vector<2x96xf32>
    %638 = arith.index_cast %629 : i32 to index
    %c0_248 = arith.constant 0 : index
    %639 = vector.load %arg30[%638, %c0_248] : memref<16x96xf32, #tpu.memory_space<vmem>>, vector<2x96xf32>
    %640 = arith.index_cast %629 : i32 to index
    %c0_249 = arith.constant 0 : index
    %641 = vector.load %arg31[%640, %c0_249] : memref<16x96xf32, #tpu.memory_space<vmem>>, vector<2x96xf32>
    %642 = vector.extract_strided_slice %639 {offsets = [0, 0], sizes = [2, 32], strides = [1, 1]} : vector<2x96xf32> to vector<2x32xf32>
    %643 = vector.extract_strided_slice %634 {offsets = [0, 0], sizes = [2, 32], strides = [1, 1]} : vector<2x96xf32> to vector<2x32xf32>
    %644 = arith.addf %642, %643 : vector<2x32xf32>
    %645 = arith.negf %644 : vector<2x32xf32>
    %646 = math.exp %645 : vector<2x32xf32>
    %cst_250 = arith.constant 1.000000e+00 : f32
    %647 = vector.broadcast %cst_250 : f32 to vector<2x32xf32>
    %648 = arith.addf %647, %646 : vector<2x32xf32>
    %649 = arith.divf %647, %648 : vector<2x32xf32>
    %650 = vector.extract_strided_slice %639 {offsets = [0, 32], sizes = [2, 32], strides = [1, 1]} : vector<2x96xf32> to vector<2x32xf32>
    %651 = vector.extract_strided_slice %634 {offsets = [0, 32], sizes = [2, 32], strides = [1, 1]} : vector<2x96xf32> to vector<2x32xf32>
    %652 = arith.addf %650, %651 : vector<2x32xf32>
    %653 = arith.negf %652 : vector<2x32xf32>
    %654 = math.exp %653 : vector<2x32xf32>
    %cst_251 = arith.constant 1.000000e+00 : f32
    %655 = vector.broadcast %cst_251 : f32 to vector<2x32xf32>
    %656 = arith.addf %655, %654 : vector<2x32xf32>
    %657 = arith.divf %655, %656 : vector<2x32xf32>
    %658 = vector.extract_strided_slice %639 {offsets = [0, 64], sizes = [2, 32], strides = [1, 1]} : vector<2x96xf32> to vector<2x32xf32>
    %659 = vector.extract_strided_slice %634 {offsets = [0, 64], sizes = [2, 32], strides = [1, 1]} : vector<2x96xf32> to vector<2x32xf32>
    %660 = arith.mulf %649, %659 : vector<2x32xf32>
    %661 = arith.addf %658, %660 : vector<2x32xf32>
    %662 = math.tanh %661 : vector<2x32xf32>
    %cst_252 = arith.constant 1.000000e+00 : f32
    %663 = vector.broadcast %cst_252 : f32 to vector<2x32xf32>
    %664 = arith.subf %663, %657 : vector<2x32xf32>
    %665 = arith.mulf %664, %662 : vector<2x32xf32>
    %666 = arith.mulf %657, %630 : vector<2x32xf32>
    %667 = arith.addf %665, %666 : vector<2x32xf32>
    %668 = vector.extract_strided_slice %641 {offsets = [0, 0], sizes = [2, 32], strides = [1, 1]} : vector<2x96xf32> to vector<2x32xf32>
    %669 = vector.extract_strided_slice %637 {offsets = [0, 0], sizes = [2, 32], strides = [1, 1]} : vector<2x96xf32> to vector<2x32xf32>
    %670 = arith.addf %668, %669 : vector<2x32xf32>
    %671 = arith.negf %670 : vector<2x32xf32>
    %672 = math.exp %671 : vector<2x32xf32>
    %cst_253 = arith.constant 1.000000e+00 : f32
    %673 = vector.broadcast %cst_253 : f32 to vector<2x32xf32>
    %674 = arith.addf %673, %672 : vector<2x32xf32>
    %675 = arith.divf %673, %674 : vector<2x32xf32>
    %676 = vector.extract_strided_slice %641 {offsets = [0, 32], sizes = [2, 32], strides = [1, 1]} : vector<2x96xf32> to vector<2x32xf32>
    %677 = vector.extract_strided_slice %637 {offsets = [0, 32], sizes = [2, 32], strides = [1, 1]} : vector<2x96xf32> to vector<2x32xf32>
    %678 = arith.addf %676, %677 : vector<2x32xf32>
    %679 = arith.negf %678 : vector<2x32xf32>
    %680 = math.exp %679 : vector<2x32xf32>
    %cst_254 = arith.constant 1.000000e+00 : f32
    %681 = vector.broadcast %cst_254 : f32 to vector<2x32xf32>
    %682 = arith.addf %681, %680 : vector<2x32xf32>
    %683 = arith.divf %681, %682 : vector<2x32xf32>
    %684 = vector.extract_strided_slice %641 {offsets = [0, 64], sizes = [2, 32], strides = [1, 1]} : vector<2x96xf32> to vector<2x32xf32>
    %685 = vector.extract_strided_slice %637 {offsets = [0, 64], sizes = [2, 32], strides = [1, 1]} : vector<2x96xf32> to vector<2x32xf32>
    %686 = arith.mulf %675, %685 : vector<2x32xf32>
    %687 = arith.addf %684, %686 : vector<2x32xf32>
    %688 = math.tanh %687 : vector<2x32xf32>
    %cst_255 = arith.constant 1.000000e+00 : f32
    %689 = vector.broadcast %cst_255 : f32 to vector<2x32xf32>
    %690 = arith.subf %689, %683 : vector<2x32xf32>
    %691 = arith.mulf %690, %688 : vector<2x32xf32>
    %692 = arith.mulf %683, %631 : vector<2x32xf32>
    %693 = arith.addf %691, %692 : vector<2x32xf32>
    %c0_256 = arith.constant 0 : index
    %c0_257 = arith.constant 0 : index
    %694 = vector.load %arg34[%c0_256, %c0_257] : memref<2x32xf32, #tpu.memory_space<vmem>>, vector<2x32xf32>
    tpu.vector_store %arg34[%c0_256, %c0_257], %667 {strides = array<i32>} : memref<2x32xf32, #tpu.memory_space<vmem>>, vector<2x32xf32>,
    %c0_258 = arith.constant 0 : index
    %c0_259 = arith.constant 0 : index
    %695 = vector.load %arg35[%c0_258, %c0_259] : memref<2x32xf32, #tpu.memory_space<vmem>>, vector<2x32xf32>
    tpu.vector_store %arg35[%c0_258, %c0_259], %693 {strides = array<i32>} : memref<2x32xf32, #tpu.memory_space<vmem>>, vector<2x32xf32>,
    %696 = arith.index_cast %629 : i32 to index
    %c0_260 = arith.constant 0 : index
    %697 = vector.load %arg32[%696, %c0_260] : memref<16x32xf32, #tpu.memory_space<vmem>>, vector<2x32xf32>
    tpu.vector_store %arg32[%696, %c0_260], %667 {strides = array<i32>} : memref<16x32xf32, #tpu.memory_space<vmem>>, vector<2x32xf32>,
    %698 = arith.index_cast %629 : i32 to index
    %c0_261 = arith.constant 0 : index
    %699 = vector.load %arg33[%698, %c0_261] : memref<16x32xf32, #tpu.memory_space<vmem>>, vector<2x32xf32>
    tpu.vector_store %arg33[%698, %c0_261], %693 {strides = array<i32>} : memref<16x32xf32, #tpu.memory_space<vmem>>, vector<2x32xf32>,
    %c1_i32_262 = arith.constant 1 : i32
    %c2_i32_263 = arith.constant 2 : i32
    %700 = arith.muli %c1_i32_262, %c2_i32_263 : i32
    %701 = tpu.assume_multiple %700, 2 : i32
    %c0_264 = arith.constant 0 : index
    %c0_265 = arith.constant 0 : index
    %702 = vector.load %arg34[%c0_264, %c0_265] : memref<2x32xf32, #tpu.memory_space<vmem>>, vector<2x32xf32>
    %c0_266 = arith.constant 0 : index
    %c0_267 = arith.constant 0 : index
    %703 = vector.load %arg35[%c0_266, %c0_267] : memref<2x32xf32, #tpu.memory_space<vmem>>, vector<2x32xf32>
    %cst_268 = arith.constant dense<0.000000e+00> : vector<2x96xf32>
    %704 = tpu.matmul %702, %624, %cst_268 {dimension_numbers = #tpu.dot_dimension_numbers<[1], [0], [0], [1], [0, 0, 1, 1], [], []>} : vector<2x32xf32>, vector<32x96xf32>, vector<2x96xf32> -> vector<2x96xf32>
    %705 = vector.broadcast %625 : vector<1x96xf32> to vector<2x96xf32>
    %706 = arith.addf %704, %705 : vector<2x96xf32>
    %cst_269 = arith.constant dense<0.000000e+00> : vector<2x96xf32>
    %707 = tpu.matmul %703, %626, %cst_269 {dimension_numbers = #tpu.dot_dimension_numbers<[1], [0], [0], [1], [0, 0, 1, 1], [], []>} : vector<2x32xf32>, vector<32x96xf32>, vector<2x96xf32> -> vector<2x96xf32>
    %708 = vector.broadcast %627 : vector<1x96xf32> to vector<2x96xf32>
    %709 = arith.addf %707, %708 : vector<2x96xf32>
    %710 = arith.index_cast %701 : i32 to index
    %c0_270 = arith.constant 0 : index
    %711 = vector.load %arg30[%710, %c0_270] : memref<16x96xf32, #tpu.memory_space<vmem>>, vector<2x96xf32>
    %712 = arith.index_cast %701 : i32 to index
    %c0_271 = arith.constant 0 : index
    %713 = vector.load %arg31[%712, %c0_271] : memref<16x96xf32, #tpu.memory_space<vmem>>, vector<2x96xf32>
    %714 = vector.extract_strided_slice %711 {offsets = [0, 0], sizes = [2, 32], strides = [1, 1]} : vector<2x96xf32> to vector<2x32xf32>
    %715 = vector.extract_strided_slice %706 {offsets = [0, 0], sizes = [2, 32], strides = [1, 1]} : vector<2x96xf32> to vector<2x32xf32>
    %716 = arith.addf %714, %715 : vector<2x32xf32>
    %717 = arith.negf %716 : vector<2x32xf32>
    %718 = math.exp %717 : vector<2x32xf32>
    %cst_272 = arith.constant 1.000000e+00 : f32
    %719 = vector.broadcast %cst_272 : f32 to vector<2x32xf32>
    %720 = arith.addf %719, %718 : vector<2x32xf32>
    %721 = arith.divf %719, %720 : vector<2x32xf32>
    %722 = vector.extract_strided_slice %711 {offsets = [0, 32], sizes = [2, 32], strides = [1, 1]} : vector<2x96xf32> to vector<2x32xf32>
    %723 = vector.extract_strided_slice %706 {offsets = [0, 32], sizes = [2, 32], strides = [1, 1]} : vector<2x96xf32> to vector<2x32xf32>
    %724 = arith.addf %722, %723 : vector<2x32xf32>
    %725 = arith.negf %724 : vector<2x32xf32>
    %726 = math.exp %725 : vector<2x32xf32>
    %cst_273 = arith.constant 1.000000e+00 : f32
    %727 = vector.broadcast %cst_273 : f32 to vector<2x32xf32>
    %728 = arith.addf %727, %726 : vector<2x32xf32>
    %729 = arith.divf %727, %728 : vector<2x32xf32>
    %730 = vector.extract_strided_slice %711 {offsets = [0, 64], sizes = [2, 32], strides = [1, 1]} : vector<2x96xf32> to vector<2x32xf32>
    %731 = vector.extract_strided_slice %706 {offsets = [0, 64], sizes = [2, 32], strides = [1, 1]} : vector<2x96xf32> to vector<2x32xf32>
    %732 = arith.mulf %721, %731 : vector<2x32xf32>
    %733 = arith.addf %730, %732 : vector<2x32xf32>
    %734 = math.tanh %733 : vector<2x32xf32>
    %cst_274 = arith.constant 1.000000e+00 : f32
    %735 = vector.broadcast %cst_274 : f32 to vector<2x32xf32>
    %736 = arith.subf %735, %729 : vector<2x32xf32>
    %737 = arith.mulf %736, %734 : vector<2x32xf32>
    %738 = arith.mulf %729, %702 : vector<2x32xf32>
    %739 = arith.addf %737, %738 : vector<2x32xf32>
    %740 = vector.extract_strided_slice %713 {offsets = [0, 0], sizes = [2, 32], strides = [1, 1]} : vector<2x96xf32> to vector<2x32xf32>
    %741 = vector.extract_strided_slice %709 {offsets = [0, 0], sizes = [2, 32], strides = [1, 1]} : vector<2x96xf32> to vector<2x32xf32>
    %742 = arith.addf %740, %741 : vector<2x32xf32>
    %743 = arith.negf %742 : vector<2x32xf32>
    %744 = math.exp %743 : vector<2x32xf32>
    %cst_275 = arith.constant 1.000000e+00 : f32
    %745 = vector.broadcast %cst_275 : f32 to vector<2x32xf32>
    %746 = arith.addf %745, %744 : vector<2x32xf32>
    %747 = arith.divf %745, %746 : vector<2x32xf32>
    %748 = vector.extract_strided_slice %713 {offsets = [0, 32], sizes = [2, 32], strides = [1, 1]} : vector<2x96xf32> to vector<2x32xf32>
    %749 = vector.extract_strided_slice %709 {offsets = [0, 32], sizes = [2, 32], strides = [1, 1]} : vector<2x96xf32> to vector<2x32xf32>
    %750 = arith.addf %748, %749 : vector<2x32xf32>
    %751 = arith.negf %750 : vector<2x32xf32>
    %752 = math.exp %751 : vector<2x32xf32>
    %cst_276 = arith.constant 1.000000e+00 : f32
    %753 = vector.broadcast %cst_276 : f32 to vector<2x32xf32>
    %754 = arith.addf %753, %752 : vector<2x32xf32>
    %755 = arith.divf %753, %754 : vector<2x32xf32>
    %756 = vector.extract_strided_slice %713 {offsets = [0, 64], sizes = [2, 32], strides = [1, 1]} : vector<2x96xf32> to vector<2x32xf32>
    %757 = vector.extract_strided_slice %709 {offsets = [0, 64], sizes = [2, 32], strides = [1, 1]} : vector<2x96xf32> to vector<2x32xf32>
    %758 = arith.mulf %747, %757 : vector<2x32xf32>
    %759 = arith.addf %756, %758 : vector<2x32xf32>
    %760 = math.tanh %759 : vector<2x32xf32>
    %cst_277 = arith.constant 1.000000e+00 : f32
    %761 = vector.broadcast %cst_277 : f32 to vector<2x32xf32>
    %762 = arith.subf %761, %755 : vector<2x32xf32>
    %763 = arith.mulf %762, %760 : vector<2x32xf32>
    %764 = arith.mulf %755, %703 : vector<2x32xf32>
    %765 = arith.addf %763, %764 : vector<2x32xf32>
    %c0_278 = arith.constant 0 : index
    %c0_279 = arith.constant 0 : index
    %766 = vector.load %arg34[%c0_278, %c0_279] : memref<2x32xf32, #tpu.memory_space<vmem>>, vector<2x32xf32>
    tpu.vector_store %arg34[%c0_278, %c0_279], %739 {strides = array<i32>} : memref<2x32xf32, #tpu.memory_space<vmem>>, vector<2x32xf32>,
    %c0_280 = arith.constant 0 : index
    %c0_281 = arith.constant 0 : index
    %767 = vector.load %arg35[%c0_280, %c0_281] : memref<2x32xf32, #tpu.memory_space<vmem>>, vector<2x32xf32>
    tpu.vector_store %arg35[%c0_280, %c0_281], %765 {strides = array<i32>} : memref<2x32xf32, #tpu.memory_space<vmem>>, vector<2x32xf32>,
    %768 = arith.index_cast %701 : i32 to index
    %c0_282 = arith.constant 0 : index
    %769 = vector.load %arg32[%768, %c0_282] : memref<16x32xf32, #tpu.memory_space<vmem>>, vector<2x32xf32>
    tpu.vector_store %arg32[%768, %c0_282], %739 {strides = array<i32>} : memref<16x32xf32, #tpu.memory_space<vmem>>, vector<2x32xf32>,
    %770 = arith.index_cast %701 : i32 to index
    %c0_283 = arith.constant 0 : index
    %771 = vector.load %arg33[%770, %c0_283] : memref<16x32xf32, #tpu.memory_space<vmem>>, vector<2x32xf32>
    tpu.vector_store %arg33[%770, %c0_283], %765 {strides = array<i32>} : memref<16x32xf32, #tpu.memory_space<vmem>>, vector<2x32xf32>,
    %c2_i32_284 = arith.constant 2 : i32
    %c2_i32_285 = arith.constant 2 : i32
    %772 = arith.muli %c2_i32_284, %c2_i32_285 : i32
    %773 = tpu.assume_multiple %772, 2 : i32
    %c0_286 = arith.constant 0 : index
    %c0_287 = arith.constant 0 : index
    %774 = vector.load %arg34[%c0_286, %c0_287] : memref<2x32xf32, #tpu.memory_space<vmem>>, vector<2x32xf32>
    %c0_288 = arith.constant 0 : index
    %c0_289 = arith.constant 0 : index
    %775 = vector.load %arg35[%c0_288, %c0_289] : memref<2x32xf32, #tpu.memory_space<vmem>>, vector<2x32xf32>
    %cst_290 = arith.constant dense<0.000000e+00> : vector<2x96xf32>
    %776 = tpu.matmul %774, %624, %cst_290 {dimension_numbers = #tpu.dot_dimension_numbers<[1], [0], [0], [1], [0, 0, 1, 1], [], []>} : vector<2x32xf32>, vector<32x96xf32>, vector<2x96xf32> -> vector<2x96xf32>
    %777 = vector.broadcast %625 : vector<1x96xf32> to vector<2x96xf32>
    %778 = arith.addf %776, %777 : vector<2x96xf32>
    %cst_291 = arith.constant dense<0.000000e+00> : vector<2x96xf32>
    %779 = tpu.matmul %775, %626, %cst_291 {dimension_numbers = #tpu.dot_dimension_numbers<[1], [0], [0], [1], [0, 0, 1, 1], [], []>} : vector<2x32xf32>, vector<32x96xf32>, vector<2x96xf32> -> vector<2x96xf32>
    %780 = vector.broadcast %627 : vector<1x96xf32> to vector<2x96xf32>
    %781 = arith.addf %779, %780 : vector<2x96xf32>
    %782 = arith.index_cast %773 : i32 to index
    %c0_292 = arith.constant 0 : index
    %783 = vector.load %arg30[%782, %c0_292] : memref<16x96xf32, #tpu.memory_space<vmem>>, vector<2x96xf32>
    %784 = arith.index_cast %773 : i32 to index
    %c0_293 = arith.constant 0 : index
    %785 = vector.load %arg31[%784, %c0_293] : memref<16x96xf32, #tpu.memory_space<vmem>>, vector<2x96xf32>
    %786 = vector.extract_strided_slice %783 {offsets = [0, 0], sizes = [2, 32], strides = [1, 1]} : vector<2x96xf32> to vector<2x32xf32>
    %787 = vector.extract_strided_slice %778 {offsets = [0, 0], sizes = [2, 32], strides = [1, 1]} : vector<2x96xf32> to vector<2x32xf32>
    %788 = arith.addf %786, %787 : vector<2x32xf32>
    %789 = arith.negf %788 : vector<2x32xf32>
    %790 = math.exp %789 : vector<2x32xf32>
    %cst_294 = arith.constant 1.000000e+00 : f32
    %791 = vector.broadcast %cst_294 : f32 to vector<2x32xf32>
    %792 = arith.addf %791, %790 : vector<2x32xf32>
    %793 = arith.divf %791, %792 : vector<2x32xf32>
    %794 = vector.extract_strided_slice %783 {offsets = [0, 32], sizes = [2, 32], strides = [1, 1]} : vector<2x96xf32> to vector<2x32xf32>
    %795 = vector.extract_strided_slice %778 {offsets = [0, 32], sizes = [2, 32], strides = [1, 1]} : vector<2x96xf32> to vector<2x32xf32>
    %796 = arith.addf %794, %795 : vector<2x32xf32>
    %797 = arith.negf %796 : vector<2x32xf32>
    %798 = math.exp %797 : vector<2x32xf32>
    %cst_295 = arith.constant 1.000000e+00 : f32
    %799 = vector.broadcast %cst_295 : f32 to vector<2x32xf32>
    %800 = arith.addf %799, %798 : vector<2x32xf32>
    %801 = arith.divf %799, %800 : vector<2x32xf32>
    %802 = vector.extract_strided_slice %783 {offsets = [0, 64], sizes = [2, 32], strides = [1, 1]} : vector<2x96xf32> to vector<2x32xf32>
    %803 = vector.extract_strided_slice %778 {offsets = [0, 64], sizes = [2, 32], strides = [1, 1]} : vector<2x96xf32> to vector<2x32xf32>
    %804 = arith.mulf %793, %803 : vector<2x32xf32>
    %805 = arith.addf %802, %804 : vector<2x32xf32>
    %806 = math.tanh %805 : vector<2x32xf32>
    %cst_296 = arith.constant 1.000000e+00 : f32
    %807 = vector.broadcast %cst_296 : f32 to vector<2x32xf32>
    %808 = arith.subf %807, %801 : vector<2x32xf32>
    %809 = arith.mulf %808, %806 : vector<2x32xf32>
    %810 = arith.mulf %801, %774 : vector<2x32xf32>
    %811 = arith.addf %809, %810 : vector<2x32xf32>
    %812 = vector.extract_strided_slice %785 {offsets = [0, 0], sizes = [2, 32], strides = [1, 1]} : vector<2x96xf32> to vector<2x32xf32>
    %813 = vector.extract_strided_slice %781 {offsets = [0, 0], sizes = [2, 32], strides = [1, 1]} : vector<2x96xf32> to vector<2x32xf32>
    %814 = arith.addf %812, %813 : vector<2x32xf32>
    %815 = arith.negf %814 : vector<2x32xf32>
    %816 = math.exp %815 : vector<2x32xf32>
    %cst_297 = arith.constant 1.000000e+00 : f32
    %817 = vector.broadcast %cst_297 : f32 to vector<2x32xf32>
    %818 = arith.addf %817, %816 : vector<2x32xf32>
    %819 = arith.divf %817, %818 : vector<2x32xf32>
    %820 = vector.extract_strided_slice %785 {offsets = [0, 32], sizes = [2, 32], strides = [1, 1]} : vector<2x96xf32> to vector<2x32xf32>
    %821 = vector.extract_strided_slice %781 {offsets = [0, 32], sizes = [2, 32], strides = [1, 1]} : vector<2x96xf32> to vector<2x32xf32>
    %822 = arith.addf %820, %821 : vector<2x32xf32>
    %823 = arith.negf %822 : vector<2x32xf32>
    %824 = math.exp %823 : vector<2x32xf32>
    %cst_298 = arith.constant 1.000000e+00 : f32
    %825 = vector.broadcast %cst_298 : f32 to vector<2x32xf32>
    %826 = arith.addf %825, %824 : vector<2x32xf32>
    %827 = arith.divf %825, %826 : vector<2x32xf32>
    %828 = vector.extract_strided_slice %785 {offsets = [0, 64], sizes = [2, 32], strides = [1, 1]} : vector<2x96xf32> to vector<2x32xf32>
    %829 = vector.extract_strided_slice %781 {offsets = [0, 64], sizes = [2, 32], strides = [1, 1]} : vector<2x96xf32> to vector<2x32xf32>
    %830 = arith.mulf %819, %829 : vector<2x32xf32>
    %831 = arith.addf %828, %830 : vector<2x32xf32>
    %832 = math.tanh %831 : vector<2x32xf32>
    %cst_299 = arith.constant 1.000000e+00 : f32
    %833 = vector.broadcast %cst_299 : f32 to vector<2x32xf32>
    %834 = arith.subf %833, %827 : vector<2x32xf32>
    %835 = arith.mulf %834, %832 : vector<2x32xf32>
    %836 = arith.mulf %827, %775 : vector<2x32xf32>
    %837 = arith.addf %835, %836 : vector<2x32xf32>
    %c0_300 = arith.constant 0 : index
    %c0_301 = arith.constant 0 : index
    %838 = vector.load %arg34[%c0_300, %c0_301] : memref<2x32xf32, #tpu.memory_space<vmem>>, vector<2x32xf32>
    tpu.vector_store %arg34[%c0_300, %c0_301], %811 {strides = array<i32>} : memref<2x32xf32, #tpu.memory_space<vmem>>, vector<2x32xf32>,
    %c0_302 = arith.constant 0 : index
    %c0_303 = arith.constant 0 : index
    %839 = vector.load %arg35[%c0_302, %c0_303] : memref<2x32xf32, #tpu.memory_space<vmem>>, vector<2x32xf32>
    tpu.vector_store %arg35[%c0_302, %c0_303], %837 {strides = array<i32>} : memref<2x32xf32, #tpu.memory_space<vmem>>, vector<2x32xf32>,
    %840 = arith.index_cast %773 : i32 to index
    %c0_304 = arith.constant 0 : index
    %841 = vector.load %arg32[%840, %c0_304] : memref<16x32xf32, #tpu.memory_space<vmem>>, vector<2x32xf32>
    tpu.vector_store %arg32[%840, %c0_304], %811 {strides = array<i32>} : memref<16x32xf32, #tpu.memory_space<vmem>>, vector<2x32xf32>,
    %842 = arith.index_cast %773 : i32 to index
    %c0_305 = arith.constant 0 : index
    %843 = vector.load %arg33[%842, %c0_305] : memref<16x32xf32, #tpu.memory_space<vmem>>, vector<2x32xf32>
    tpu.vector_store %arg33[%842, %c0_305], %837 {strides = array<i32>} : memref<16x32xf32, #tpu.memory_space<vmem>>, vector<2x32xf32>,
    %c3_i32_306 = arith.constant 3 : i32
    %c2_i32_307 = arith.constant 2 : i32
    %844 = arith.muli %c3_i32_306, %c2_i32_307 : i32
    %845 = tpu.assume_multiple %844, 2 : i32
    %c0_308 = arith.constant 0 : index
    %c0_309 = arith.constant 0 : index
    %846 = vector.load %arg34[%c0_308, %c0_309] : memref<2x32xf32, #tpu.memory_space<vmem>>, vector<2x32xf32>
    %c0_310 = arith.constant 0 : index
    %c0_311 = arith.constant 0 : index
    %847 = vector.load %arg35[%c0_310, %c0_311] : memref<2x32xf32, #tpu.memory_space<vmem>>, vector<2x32xf32>
    %cst_312 = arith.constant dense<0.000000e+00> : vector<2x96xf32>
    %848 = tpu.matmul %846, %624, %cst_312 {dimension_numbers = #tpu.dot_dimension_numbers<[1], [0], [0], [1], [0, 0, 1, 1], [], []>} : vector<2x32xf32>, vector<32x96xf32>, vector<2x96xf32> -> vector<2x96xf32>
    %849 = vector.broadcast %625 : vector<1x96xf32> to vector<2x96xf32>
    %850 = arith.addf %848, %849 : vector<2x96xf32>
    %cst_313 = arith.constant dense<0.000000e+00> : vector<2x96xf32>
    %851 = tpu.matmul %847, %626, %cst_313 {dimension_numbers = #tpu.dot_dimension_numbers<[1], [0], [0], [1], [0, 0, 1, 1], [], []>} : vector<2x32xf32>, vector<32x96xf32>, vector<2x96xf32> -> vector<2x96xf32>
    %852 = vector.broadcast %627 : vector<1x96xf32> to vector<2x96xf32>
    %853 = arith.addf %851, %852 : vector<2x96xf32>
    %854 = arith.index_cast %845 : i32 to index
    %c0_314 = arith.constant 0 : index
    %855 = vector.load %arg30[%854, %c0_314] : memref<16x96xf32, #tpu.memory_space<vmem>>, vector<2x96xf32>
    %856 = arith.index_cast %845 : i32 to index
    %c0_315 = arith.constant 0 : index
    %857 = vector.load %arg31[%856, %c0_315] : memref<16x96xf32, #tpu.memory_space<vmem>>, vector<2x96xf32>
    %858 = vector.extract_strided_slice %855 {offsets = [0, 0], sizes = [2, 32], strides = [1, 1]} : vector<2x96xf32> to vector<2x32xf32>
    %859 = vector.extract_strided_slice %850 {offsets = [0, 0], sizes = [2, 32], strides = [1, 1]} : vector<2x96xf32> to vector<2x32xf32>
    %860 = arith.addf %858, %859 : vector<2x32xf32>
    %861 = arith.negf %860 : vector<2x32xf32>
    %862 = math.exp %861 : vector<2x32xf32>
    %cst_316 = arith.constant 1.000000e+00 : f32
    %863 = vector.broadcast %cst_316 : f32 to vector<2x32xf32>
    %864 = arith.addf %863, %862 : vector<2x32xf32>
    %865 = arith.divf %863, %864 : vector<2x32xf32>
    %866 = vector.extract_strided_slice %855 {offsets = [0, 32], sizes = [2, 32], strides = [1, 1]} : vector<2x96xf32> to vector<2x32xf32>
    %867 = vector.extract_strided_slice %850 {offsets = [0, 32], sizes = [2, 32], strides = [1, 1]} : vector<2x96xf32> to vector<2x32xf32>
    %868 = arith.addf %866, %867 : vector<2x32xf32>
    %869 = arith.negf %868 : vector<2x32xf32>
    %870 = math.exp %869 : vector<2x32xf32>
    %cst_317 = arith.constant 1.000000e+00 : f32
    %871 = vector.broadcast %cst_317 : f32 to vector<2x32xf32>
    %872 = arith.addf %871, %870 : vector<2x32xf32>
    %873 = arith.divf %871, %872 : vector<2x32xf32>
    %874 = vector.extract_strided_slice %855 {offsets = [0, 64], sizes = [2, 32], strides = [1, 1]} : vector<2x96xf32> to vector<2x32xf32>
    %875 = vector.extract_strided_slice %850 {offsets = [0, 64], sizes = [2, 32], strides = [1, 1]} : vector<2x96xf32> to vector<2x32xf32>
    %876 = arith.mulf %865, %875 : vector<2x32xf32>
    %877 = arith.addf %874, %876 : vector<2x32xf32>
    %878 = math.tanh %877 : vector<2x32xf32>
    %cst_318 = arith.constant 1.000000e+00 : f32
    %879 = vector.broadcast %cst_318 : f32 to vector<2x32xf32>
    %880 = arith.subf %879, %873 : vector<2x32xf32>
    %881 = arith.mulf %880, %878 : vector<2x32xf32>
    %882 = arith.mulf %873, %846 : vector<2x32xf32>
    %883 = arith.addf %881, %882 : vector<2x32xf32>
    %884 = vector.extract_strided_slice %857 {offsets = [0, 0], sizes = [2, 32], strides = [1, 1]} : vector<2x96xf32> to vector<2x32xf32>
    %885 = vector.extract_strided_slice %853 {offsets = [0, 0], sizes = [2, 32], strides = [1, 1]} : vector<2x96xf32> to vector<2x32xf32>
    %886 = arith.addf %884, %885 : vector<2x32xf32>
    %887 = arith.negf %886 : vector<2x32xf32>
    %888 = math.exp %887 : vector<2x32xf32>
    %cst_319 = arith.constant 1.000000e+00 : f32
    %889 = vector.broadcast %cst_319 : f32 to vector<2x32xf32>
    %890 = arith.addf %889, %888 : vector<2x32xf32>
    %891 = arith.divf %889, %890 : vector<2x32xf32>
    %892 = vector.extract_strided_slice %857 {offsets = [0, 32], sizes = [2, 32], strides = [1, 1]} : vector<2x96xf32> to vector<2x32xf32>
    %893 = vector.extract_strided_slice %853 {offsets = [0, 32], sizes = [2, 32], strides = [1, 1]} : vector<2x96xf32> to vector<2x32xf32>
    %894 = arith.addf %892, %893 : vector<2x32xf32>
    %895 = arith.negf %894 : vector<2x32xf32>
    %896 = math.exp %895 : vector<2x32xf32>
    %cst_320 = arith.constant 1.000000e+00 : f32
    %897 = vector.broadcast %cst_320 : f32 to vector<2x32xf32>
    %898 = arith.addf %897, %896 : vector<2x32xf32>
    %899 = arith.divf %897, %898 : vector<2x32xf32>
    %900 = vector.extract_strided_slice %857 {offsets = [0, 64], sizes = [2, 32], strides = [1, 1]} : vector<2x96xf32> to vector<2x32xf32>
    %901 = vector.extract_strided_slice %853 {offsets = [0, 64], sizes = [2, 32], strides = [1, 1]} : vector<2x96xf32> to vector<2x32xf32>
    %902 = arith.mulf %891, %901 : vector<2x32xf32>
    %903 = arith.addf %900, %902 : vector<2x32xf32>
    %904 = math.tanh %903 : vector<2x32xf32>
    %cst_321 = arith.constant 1.000000e+00 : f32
    %905 = vector.broadcast %cst_321 : f32 to vector<2x32xf32>
    %906 = arith.subf %905, %899 : vector<2x32xf32>
    %907 = arith.mulf %906, %904 : vector<2x32xf32>
    %908 = arith.mulf %899, %847 : vector<2x32xf32>
    %909 = arith.addf %907, %908 : vector<2x32xf32>
    %c0_322 = arith.constant 0 : index
    %c0_323 = arith.constant 0 : index
    %910 = vector.load %arg34[%c0_322, %c0_323] : memref<2x32xf32, #tpu.memory_space<vmem>>, vector<2x32xf32>
    tpu.vector_store %arg34[%c0_322, %c0_323], %883 {strides = array<i32>} : memref<2x32xf32, #tpu.memory_space<vmem>>, vector<2x32xf32>,
    %c0_324 = arith.constant 0 : index
    %c0_325 = arith.constant 0 : index
    %911 = vector.load %arg35[%c0_324, %c0_325] : memref<2x32xf32, #tpu.memory_space<vmem>>, vector<2x32xf32>
    tpu.vector_store %arg35[%c0_324, %c0_325], %909 {strides = array<i32>} : memref<2x32xf32, #tpu.memory_space<vmem>>, vector<2x32xf32>,
    %912 = arith.index_cast %845 : i32 to index
    %c0_326 = arith.constant 0 : index
    %913 = vector.load %arg32[%912, %c0_326] : memref<16x32xf32, #tpu.memory_space<vmem>>, vector<2x32xf32>
    tpu.vector_store %arg32[%912, %c0_326], %883 {strides = array<i32>} : memref<16x32xf32, #tpu.memory_space<vmem>>, vector<2x32xf32>,
    %914 = arith.index_cast %845 : i32 to index
    %c0_327 = arith.constant 0 : index
    %915 = vector.load %arg33[%914, %c0_327] : memref<16x32xf32, #tpu.memory_space<vmem>>, vector<2x32xf32>
    tpu.vector_store %arg33[%914, %c0_327], %909 {strides = array<i32>} : memref<16x32xf32, #tpu.memory_space<vmem>>, vector<2x32xf32>,
    %c4_i32_328 = arith.constant 4 : i32
    %c2_i32_329 = arith.constant 2 : i32
    %916 = arith.muli %c4_i32_328, %c2_i32_329 : i32
    %917 = tpu.assume_multiple %916, 2 : i32
    %c0_330 = arith.constant 0 : index
    %c0_331 = arith.constant 0 : index
    %918 = vector.load %arg34[%c0_330, %c0_331] : memref<2x32xf32, #tpu.memory_space<vmem>>, vector<2x32xf32>
    %c0_332 = arith.constant 0 : index
    %c0_333 = arith.constant 0 : index
    %919 = vector.load %arg35[%c0_332, %c0_333] : memref<2x32xf32, #tpu.memory_space<vmem>>, vector<2x32xf32>
    %cst_334 = arith.constant dense<0.000000e+00> : vector<2x96xf32>
    %920 = tpu.matmul %918, %624, %cst_334 {dimension_numbers = #tpu.dot_dimension_numbers<[1], [0], [0], [1], [0, 0, 1, 1], [], []>} : vector<2x32xf32>, vector<32x96xf32>, vector<2x96xf32> -> vector<2x96xf32>
    %921 = vector.broadcast %625 : vector<1x96xf32> to vector<2x96xf32>
    %922 = arith.addf %920, %921 : vector<2x96xf32>
    %cst_335 = arith.constant dense<0.000000e+00> : vector<2x96xf32>
    %923 = tpu.matmul %919, %626, %cst_335 {dimension_numbers = #tpu.dot_dimension_numbers<[1], [0], [0], [1], [0, 0, 1, 1], [], []>} : vector<2x32xf32>, vector<32x96xf32>, vector<2x96xf32> -> vector<2x96xf32>
    %924 = vector.broadcast %627 : vector<1x96xf32> to vector<2x96xf32>
    %925 = arith.addf %923, %924 : vector<2x96xf32>
    %926 = arith.index_cast %917 : i32 to index
    %c0_336 = arith.constant 0 : index
    %927 = vector.load %arg30[%926, %c0_336] : memref<16x96xf32, #tpu.memory_space<vmem>>, vector<2x96xf32>
    %928 = arith.index_cast %917 : i32 to index
    %c0_337 = arith.constant 0 : index
    %929 = vector.load %arg31[%928, %c0_337] : memref<16x96xf32, #tpu.memory_space<vmem>>, vector<2x96xf32>
    %930 = vector.extract_strided_slice %927 {offsets = [0, 0], sizes = [2, 32], strides = [1, 1]} : vector<2x96xf32> to vector<2x32xf32>
    %931 = vector.extract_strided_slice %922 {offsets = [0, 0], sizes = [2, 32], strides = [1, 1]} : vector<2x96xf32> to vector<2x32xf32>
    %932 = arith.addf %930, %931 : vector<2x32xf32>
    %933 = arith.negf %932 : vector<2x32xf32>
    %934 = math.exp %933 : vector<2x32xf32>
    %cst_338 = arith.constant 1.000000e+00 : f32
    %935 = vector.broadcast %cst_338 : f32 to vector<2x32xf32>
    %936 = arith.addf %935, %934 : vector<2x32xf32>
    %937 = arith.divf %935, %936 : vector<2x32xf32>
    %938 = vector.extract_strided_slice %927 {offsets = [0, 32], sizes = [2, 32], strides = [1, 1]} : vector<2x96xf32> to vector<2x32xf32>
    %939 = vector.extract_strided_slice %922 {offsets = [0, 32], sizes = [2, 32], strides = [1, 1]} : vector<2x96xf32> to vector<2x32xf32>
    %940 = arith.addf %938, %939 : vector<2x32xf32>
    %941 = arith.negf %940 : vector<2x32xf32>
    %942 = math.exp %941 : vector<2x32xf32>
    %cst_339 = arith.constant 1.000000e+00 : f32
    %943 = vector.broadcast %cst_339 : f32 to vector<2x32xf32>
    %944 = arith.addf %943, %942 : vector<2x32xf32>
    %945 = arith.divf %943, %944 : vector<2x32xf32>
    %946 = vector.extract_strided_slice %927 {offsets = [0, 64], sizes = [2, 32], strides = [1, 1]} : vector<2x96xf32> to vector<2x32xf32>
    %947 = vector.extract_strided_slice %922 {offsets = [0, 64], sizes = [2, 32], strides = [1, 1]} : vector<2x96xf32> to vector<2x32xf32>
    %948 = arith.mulf %937, %947 : vector<2x32xf32>
    %949 = arith.addf %946, %948 : vector<2x32xf32>
    %950 = math.tanh %949 : vector<2x32xf32>
    %cst_340 = arith.constant 1.000000e+00 : f32
    %951 = vector.broadcast %cst_340 : f32 to vector<2x32xf32>
    %952 = arith.subf %951, %945 : vector<2x32xf32>
    %953 = arith.mulf %952, %950 : vector<2x32xf32>
    %954 = arith.mulf %945, %918 : vector<2x32xf32>
    %955 = arith.addf %953, %954 : vector<2x32xf32>
    %956 = vector.extract_strided_slice %929 {offsets = [0, 0], sizes = [2, 32], strides = [1, 1]} : vector<2x96xf32> to vector<2x32xf32>
    %957 = vector.extract_strided_slice %925 {offsets = [0, 0], sizes = [2, 32], strides = [1, 1]} : vector<2x96xf32> to vector<2x32xf32>
    %958 = arith.addf %956, %957 : vector<2x32xf32>
    %959 = arith.negf %958 : vector<2x32xf32>
    %960 = math.exp %959 : vector<2x32xf32>
    %cst_341 = arith.constant 1.000000e+00 : f32
    %961 = vector.broadcast %cst_341 : f32 to vector<2x32xf32>
    %962 = arith.addf %961, %960 : vector<2x32xf32>
    %963 = arith.divf %961, %962 : vector<2x32xf32>
    %964 = vector.extract_strided_slice %929 {offsets = [0, 32], sizes = [2, 32], strides = [1, 1]} : vector<2x96xf32> to vector<2x32xf32>
    %965 = vector.extract_strided_slice %925 {offsets = [0, 32], sizes = [2, 32], strides = [1, 1]} : vector<2x96xf32> to vector<2x32xf32>
    %966 = arith.addf %964, %965 : vector<2x32xf32>
    %967 = arith.negf %966 : vector<2x32xf32>
    %968 = math.exp %967 : vector<2x32xf32>
    %cst_342 = arith.constant 1.000000e+00 : f32
    %969 = vector.broadcast %cst_342 : f32 to vector<2x32xf32>
    %970 = arith.addf %969, %968 : vector<2x32xf32>
    %971 = arith.divf %969, %970 : vector<2x32xf32>
    %972 = vector.extract_strided_slice %929 {offsets = [0, 64], sizes = [2, 32], strides = [1, 1]} : vector<2x96xf32> to vector<2x32xf32>
    %973 = vector.extract_strided_slice %925 {offsets = [0, 64], sizes = [2, 32], strides = [1, 1]} : vector<2x96xf32> to vector<2x32xf32>
    %974 = arith.mulf %963, %973 : vector<2x32xf32>
    %975 = arith.addf %972, %974 : vector<2x32xf32>
    %976 = math.tanh %975 : vector<2x32xf32>
    %cst_343 = arith.constant 1.000000e+00 : f32
    %977 = vector.broadcast %cst_343 : f32 to vector<2x32xf32>
    %978 = arith.subf %977, %971 : vector<2x32xf32>
    %979 = arith.mulf %978, %976 : vector<2x32xf32>
    %980 = arith.mulf %971, %919 : vector<2x32xf32>
    %981 = arith.addf %979, %980 : vector<2x32xf32>
    %c0_344 = arith.constant 0 : index
    %c0_345 = arith.constant 0 : index
    %982 = vector.load %arg34[%c0_344, %c0_345] : memref<2x32xf32, #tpu.memory_space<vmem>>, vector<2x32xf32>
    tpu.vector_store %arg34[%c0_344, %c0_345], %955 {strides = array<i32>} : memref<2x32xf32, #tpu.memory_space<vmem>>, vector<2x32xf32>,
    %c0_346 = arith.constant 0 : index
    %c0_347 = arith.constant 0 : index
    %983 = vector.load %arg35[%c0_346, %c0_347] : memref<2x32xf32, #tpu.memory_space<vmem>>, vector<2x32xf32>
    tpu.vector_store %arg35[%c0_346, %c0_347], %981 {strides = array<i32>} : memref<2x32xf32, #tpu.memory_space<vmem>>, vector<2x32xf32>,
    %984 = arith.index_cast %917 : i32 to index
    %c0_348 = arith.constant 0 : index
    %985 = vector.load %arg32[%984, %c0_348] : memref<16x32xf32, #tpu.memory_space<vmem>>, vector<2x32xf32>
    tpu.vector_store %arg32[%984, %c0_348], %955 {strides = array<i32>} : memref<16x32xf32, #tpu.memory_space<vmem>>, vector<2x32xf32>,
    %986 = arith.index_cast %917 : i32 to index
    %c0_349 = arith.constant 0 : index
    %987 = vector.load %arg33[%986, %c0_349] : memref<16x32xf32, #tpu.memory_space<vmem>>, vector<2x32xf32>
    tpu.vector_store %arg33[%986, %c0_349], %981 {strides = array<i32>} : memref<16x32xf32, #tpu.memory_space<vmem>>, vector<2x32xf32>,
    %c5_i32_350 = arith.constant 5 : i32
    %c2_i32_351 = arith.constant 2 : i32
    %988 = arith.muli %c5_i32_350, %c2_i32_351 : i32
    %989 = tpu.assume_multiple %988, 2 : i32
    %c0_352 = arith.constant 0 : index
    %c0_353 = arith.constant 0 : index
    %990 = vector.load %arg34[%c0_352, %c0_353] : memref<2x32xf32, #tpu.memory_space<vmem>>, vector<2x32xf32>
    %c0_354 = arith.constant 0 : index
    %c0_355 = arith.constant 0 : index
    %991 = vector.load %arg35[%c0_354, %c0_355] : memref<2x32xf32, #tpu.memory_space<vmem>>, vector<2x32xf32>
    %cst_356 = arith.constant dense<0.000000e+00> : vector<2x96xf32>
    %992 = tpu.matmul %990, %624, %cst_356 {dimension_numbers = #tpu.dot_dimension_numbers<[1], [0], [0], [1], [0, 0, 1, 1], [], []>} : vector<2x32xf32>, vector<32x96xf32>, vector<2x96xf32> -> vector<2x96xf32>
    %993 = vector.broadcast %625 : vector<1x96xf32> to vector<2x96xf32>
    %994 = arith.addf %992, %993 : vector<2x96xf32>
    %cst_357 = arith.constant dense<0.000000e+00> : vector<2x96xf32>
    %995 = tpu.matmul %991, %626, %cst_357 {dimension_numbers = #tpu.dot_dimension_numbers<[1], [0], [0], [1], [0, 0, 1, 1], [], []>} : vector<2x32xf32>, vector<32x96xf32>, vector<2x96xf32> -> vector<2x96xf32>
    %996 = vector.broadcast %627 : vector<1x96xf32> to vector<2x96xf32>
    %997 = arith.addf %995, %996 : vector<2x96xf32>
    %998 = arith.index_cast %989 : i32 to index
    %c0_358 = arith.constant 0 : index
    %999 = vector.load %arg30[%998, %c0_358] : memref<16x96xf32, #tpu.memory_space<vmem>>, vector<2x96xf32>
    %1000 = arith.index_cast %989 : i32 to index
    %c0_359 = arith.constant 0 : index
    %1001 = vector.load %arg31[%1000, %c0_359] : memref<16x96xf32, #tpu.memory_space<vmem>>, vector<2x96xf32>
    %1002 = vector.extract_strided_slice %999 {offsets = [0, 0], sizes = [2, 32], strides = [1, 1]} : vector<2x96xf32> to vector<2x32xf32>
    %1003 = vector.extract_strided_slice %994 {offsets = [0, 0], sizes = [2, 32], strides = [1, 1]} : vector<2x96xf32> to vector<2x32xf32>
    %1004 = arith.addf %1002, %1003 : vector<2x32xf32>
    %1005 = arith.negf %1004 : vector<2x32xf32>
    %1006 = math.exp %1005 : vector<2x32xf32>
    %cst_360 = arith.constant 1.000000e+00 : f32
    %1007 = vector.broadcast %cst_360 : f32 to vector<2x32xf32>
    %1008 = arith.addf %1007, %1006 : vector<2x32xf32>
    %1009 = arith.divf %1007, %1008 : vector<2x32xf32>
    %1010 = vector.extract_strided_slice %999 {offsets = [0, 32], sizes = [2, 32], strides = [1, 1]} : vector<2x96xf32> to vector<2x32xf32>
    %1011 = vector.extract_strided_slice %994 {offsets = [0, 32], sizes = [2, 32], strides = [1, 1]} : vector<2x96xf32> to vector<2x32xf32>
    %1012 = arith.addf %1010, %1011 : vector<2x32xf32>
    %1013 = arith.negf %1012 : vector<2x32xf32>
    %1014 = math.exp %1013 : vector<2x32xf32>
    %cst_361 = arith.constant 1.000000e+00 : f32
    %1015 = vector.broadcast %cst_361 : f32 to vector<2x32xf32>
    %1016 = arith.addf %1015, %1014 : vector<2x32xf32>
    %1017 = arith.divf %1015, %1016 : vector<2x32xf32>
    %1018 = vector.extract_strided_slice %999 {offsets = [0, 64], sizes = [2, 32], strides = [1, 1]} : vector<2x96xf32> to vector<2x32xf32>
    %1019 = vector.extract_strided_slice %994 {offsets = [0, 64], sizes = [2, 32], strides = [1, 1]} : vector<2x96xf32> to vector<2x32xf32>
    %1020 = arith.mulf %1009, %1019 : vector<2x32xf32>
    %1021 = arith.addf %1018, %1020 : vector<2x32xf32>
    %1022 = math.tanh %1021 : vector<2x32xf32>
    %cst_362 = arith.constant 1.000000e+00 : f32
    %1023 = vector.broadcast %cst_362 : f32 to vector<2x32xf32>
    %1024 = arith.subf %1023, %1017 : vector<2x32xf32>
    %1025 = arith.mulf %1024, %1022 : vector<2x32xf32>
    %1026 = arith.mulf %1017, %990 : vector<2x32xf32>
    %1027 = arith.addf %1025, %1026 : vector<2x32xf32>
    %1028 = vector.extract_strided_slice %1001 {offsets = [0, 0], sizes = [2, 32], strides = [1, 1]} : vector<2x96xf32> to vector<2x32xf32>
    %1029 = vector.extract_strided_slice %997 {offsets = [0, 0], sizes = [2, 32], strides = [1, 1]} : vector<2x96xf32> to vector<2x32xf32>
    %1030 = arith.addf %1028, %1029 : vector<2x32xf32>
    %1031 = arith.negf %1030 : vector<2x32xf32>
    %1032 = math.exp %1031 : vector<2x32xf32>
    %cst_363 = arith.constant 1.000000e+00 : f32
    %1033 = vector.broadcast %cst_363 : f32 to vector<2x32xf32>
    %1034 = arith.addf %1033, %1032 : vector<2x32xf32>
    %1035 = arith.divf %1033, %1034 : vector<2x32xf32>
    %1036 = vector.extract_strided_slice %1001 {offsets = [0, 32], sizes = [2, 32], strides = [1, 1]} : vector<2x96xf32> to vector<2x32xf32>
    %1037 = vector.extract_strided_slice %997 {offsets = [0, 32], sizes = [2, 32], strides = [1, 1]} : vector<2x96xf32> to vector<2x32xf32>
    %1038 = arith.addf %1036, %1037 : vector<2x32xf32>
    %1039 = arith.negf %1038 : vector<2x32xf32>
    %1040 = math.exp %1039 : vector<2x32xf32>
    %cst_364 = arith.constant 1.000000e+00 : f32
    %1041 = vector.broadcast %cst_364 : f32 to vector<2x32xf32>
    %1042 = arith.addf %1041, %1040 : vector<2x32xf32>
    %1043 = arith.divf %1041, %1042 : vector<2x32xf32>
    %1044 = vector.extract_strided_slice %1001 {offsets = [0, 64], sizes = [2, 32], strides = [1, 1]} : vector<2x96xf32> to vector<2x32xf32>
    %1045 = vector.extract_strided_slice %997 {offsets = [0, 64], sizes = [2, 32], strides = [1, 1]} : vector<2x96xf32> to vector<2x32xf32>
    %1046 = arith.mulf %1035, %1045 : vector<2x32xf32>
    %1047 = arith.addf %1044, %1046 : vector<2x32xf32>
    %1048 = math.tanh %1047 : vector<2x32xf32>
    %cst_365 = arith.constant 1.000000e+00 : f32
    %1049 = vector.broadcast %cst_365 : f32 to vector<2x32xf32>
    %1050 = arith.subf %1049, %1043 : vector<2x32xf32>
    %1051 = arith.mulf %1050, %1048 : vector<2x32xf32>
    %1052 = arith.mulf %1043, %991 : vector<2x32xf32>
    %1053 = arith.addf %1051, %1052 : vector<2x32xf32>
    %c0_366 = arith.constant 0 : index
    %c0_367 = arith.constant 0 : index
    %1054 = vector.load %arg34[%c0_366, %c0_367] : memref<2x32xf32, #tpu.memory_space<vmem>>, vector<2x32xf32>
    tpu.vector_store %arg34[%c0_366, %c0_367], %1027 {strides = array<i32>} : memref<2x32xf32, #tpu.memory_space<vmem>>, vector<2x32xf32>,
    %c0_368 = arith.constant 0 : index
    %c0_369 = arith.constant 0 : index
    %1055 = vector.load %arg35[%c0_368, %c0_369] : memref<2x32xf32, #tpu.memory_space<vmem>>, vector<2x32xf32>
    tpu.vector_store %arg35[%c0_368, %c0_369], %1053 {strides = array<i32>} : memref<2x32xf32, #tpu.memory_space<vmem>>, vector<2x32xf32>,
    %1056 = arith.index_cast %989 : i32 to index
    %c0_370 = arith.constant 0 : index
    %1057 = vector.load %arg32[%1056, %c0_370] : memref<16x32xf32, #tpu.memory_space<vmem>>, vector<2x32xf32>
    tpu.vector_store %arg32[%1056, %c0_370], %1027 {strides = array<i32>} : memref<16x32xf32, #tpu.memory_space<vmem>>, vector<2x32xf32>,
    %1058 = arith.index_cast %989 : i32 to index
    %c0_371 = arith.constant 0 : index
    %1059 = vector.load %arg33[%1058, %c0_371] : memref<16x32xf32, #tpu.memory_space<vmem>>, vector<2x32xf32>
    tpu.vector_store %arg33[%1058, %c0_371], %1053 {strides = array<i32>} : memref<16x32xf32, #tpu.memory_space<vmem>>, vector<2x32xf32>,
    %c6_i32_372 = arith.constant 6 : i32
    %c2_i32_373 = arith.constant 2 : i32
    %1060 = arith.muli %c6_i32_372, %c2_i32_373 : i32
    %1061 = tpu.assume_multiple %1060, 2 : i32
    %c0_374 = arith.constant 0 : index
    %c0_375 = arith.constant 0 : index
    %1062 = vector.load %arg34[%c0_374, %c0_375] : memref<2x32xf32, #tpu.memory_space<vmem>>, vector<2x32xf32>
    %c0_376 = arith.constant 0 : index
    %c0_377 = arith.constant 0 : index
    %1063 = vector.load %arg35[%c0_376, %c0_377] : memref<2x32xf32, #tpu.memory_space<vmem>>, vector<2x32xf32>
    %cst_378 = arith.constant dense<0.000000e+00> : vector<2x96xf32>
    %1064 = tpu.matmul %1062, %624, %cst_378 {dimension_numbers = #tpu.dot_dimension_numbers<[1], [0], [0], [1], [0, 0, 1, 1], [], []>} : vector<2x32xf32>, vector<32x96xf32>, vector<2x96xf32> -> vector<2x96xf32>
    %1065 = vector.broadcast %625 : vector<1x96xf32> to vector<2x96xf32>
    %1066 = arith.addf %1064, %1065 : vector<2x96xf32>
    %cst_379 = arith.constant dense<0.000000e+00> : vector<2x96xf32>
    %1067 = tpu.matmul %1063, %626, %cst_379 {dimension_numbers = #tpu.dot_dimension_numbers<[1], [0], [0], [1], [0, 0, 1, 1], [], []>} : vector<2x32xf32>, vector<32x96xf32>, vector<2x96xf32> -> vector<2x96xf32>
    %1068 = vector.broadcast %627 : vector<1x96xf32> to vector<2x96xf32>
    %1069 = arith.addf %1067, %1068 : vector<2x96xf32>
    %1070 = arith.index_cast %1061 : i32 to index
    %c0_380 = arith.constant 0 : index
    %1071 = vector.load %arg30[%1070, %c0_380] : memref<16x96xf32, #tpu.memory_space<vmem>>, vector<2x96xf32>
    %1072 = arith.index_cast %1061 : i32 to index
    %c0_381 = arith.constant 0 : index
    %1073 = vector.load %arg31[%1072, %c0_381] : memref<16x96xf32, #tpu.memory_space<vmem>>, vector<2x96xf32>
    %1074 = vector.extract_strided_slice %1071 {offsets = [0, 0], sizes = [2, 32], strides = [1, 1]} : vector<2x96xf32> to vector<2x32xf32>
    %1075 = vector.extract_strided_slice %1066 {offsets = [0, 0], sizes = [2, 32], strides = [1, 1]} : vector<2x96xf32> to vector<2x32xf32>
    %1076 = arith.addf %1074, %1075 : vector<2x32xf32>
    %1077 = arith.negf %1076 : vector<2x32xf32>
    %1078 = math.exp %1077 : vector<2x32xf32>
    %cst_382 = arith.constant 1.000000e+00 : f32
    %1079 = vector.broadcast %cst_382 : f32 to vector<2x32xf32>
    %1080 = arith.addf %1079, %1078 : vector<2x32xf32>
    %1081 = arith.divf %1079, %1080 : vector<2x32xf32>
    %1082 = vector.extract_strided_slice %1071 {offsets = [0, 32], sizes = [2, 32], strides = [1, 1]} : vector<2x96xf32> to vector<2x32xf32>
    %1083 = vector.extract_strided_slice %1066 {offsets = [0, 32], sizes = [2, 32], strides = [1, 1]} : vector<2x96xf32> to vector<2x32xf32>
    %1084 = arith.addf %1082, %1083 : vector<2x32xf32>
    %1085 = arith.negf %1084 : vector<2x32xf32>
    %1086 = math.exp %1085 : vector<2x32xf32>
    %cst_383 = arith.constant 1.000000e+00 : f32
    %1087 = vector.broadcast %cst_383 : f32 to vector<2x32xf32>
    %1088 = arith.addf %1087, %1086 : vector<2x32xf32>
    %1089 = arith.divf %1087, %1088 : vector<2x32xf32>
    %1090 = vector.extract_strided_slice %1071 {offsets = [0, 64], sizes = [2, 32], strides = [1, 1]} : vector<2x96xf32> to vector<2x32xf32>
    %1091 = vector.extract_strided_slice %1066 {offsets = [0, 64], sizes = [2, 32], strides = [1, 1]} : vector<2x96xf32> to vector<2x32xf32>
    %1092 = arith.mulf %1081, %1091 : vector<2x32xf32>
    %1093 = arith.addf %1090, %1092 : vector<2x32xf32>
    %1094 = math.tanh %1093 : vector<2x32xf32>
    %cst_384 = arith.constant 1.000000e+00 : f32
    %1095 = vector.broadcast %cst_384 : f32 to vector<2x32xf32>
    %1096 = arith.subf %1095, %1089 : vector<2x32xf32>
    %1097 = arith.mulf %1096, %1094 : vector<2x32xf32>
    %1098 = arith.mulf %1089, %1062 : vector<2x32xf32>
    %1099 = arith.addf %1097, %1098 : vector<2x32xf32>
    %1100 = vector.extract_strided_slice %1073 {offsets = [0, 0], sizes = [2, 32], strides = [1, 1]} : vector<2x96xf32> to vector<2x32xf32>
    %1101 = vector.extract_strided_slice %1069 {offsets = [0, 0], sizes = [2, 32], strides = [1, 1]} : vector<2x96xf32> to vector<2x32xf32>
    %1102 = arith.addf %1100, %1101 : vector<2x32xf32>
    %1103 = arith.negf %1102 : vector<2x32xf32>
    %1104 = math.exp %1103 : vector<2x32xf32>
    %cst_385 = arith.constant 1.000000e+00 : f32
    %1105 = vector.broadcast %cst_385 : f32 to vector<2x32xf32>
    %1106 = arith.addf %1105, %1104 : vector<2x32xf32>
    %1107 = arith.divf %1105, %1106 : vector<2x32xf32>
    %1108 = vector.extract_strided_slice %1073 {offsets = [0, 32], sizes = [2, 32], strides = [1, 1]} : vector<2x96xf32> to vector<2x32xf32>
    %1109 = vector.extract_strided_slice %1069 {offsets = [0, 32], sizes = [2, 32], strides = [1, 1]} : vector<2x96xf32> to vector<2x32xf32>
    %1110 = arith.addf %1108, %1109 : vector<2x32xf32>
    %1111 = arith.negf %1110 : vector<2x32xf32>
    %1112 = math.exp %1111 : vector<2x32xf32>
    %cst_386 = arith.constant 1.000000e+00 : f32
    %1113 = vector.broadcast %cst_386 : f32 to vector<2x32xf32>
    %1114 = arith.addf %1113, %1112 : vector<2x32xf32>
    %1115 = arith.divf %1113, %1114 : vector<2x32xf32>
    %1116 = vector.extract_strided_slice %1073 {offsets = [0, 64], sizes = [2, 32], strides = [1, 1]} : vector<2x96xf32> to vector<2x32xf32>
    %1117 = vector.extract_strided_slice %1069 {offsets = [0, 64], sizes = [2, 32], strides = [1, 1]} : vector<2x96xf32> to vector<2x32xf32>
    %1118 = arith.mulf %1107, %1117 : vector<2x32xf32>
    %1119 = arith.addf %1116, %1118 : vector<2x32xf32>
    %1120 = math.tanh %1119 : vector<2x32xf32>
    %cst_387 = arith.constant 1.000000e+00 : f32
    %1121 = vector.broadcast %cst_387 : f32 to vector<2x32xf32>
    %1122 = arith.subf %1121, %1115 : vector<2x32xf32>
    %1123 = arith.mulf %1122, %1120 : vector<2x32xf32>
    %1124 = arith.mulf %1115, %1063 : vector<2x32xf32>
    %1125 = arith.addf %1123, %1124 : vector<2x32xf32>
    %c0_388 = arith.constant 0 : index
    %c0_389 = arith.constant 0 : index
    %1126 = vector.load %arg34[%c0_388, %c0_389] : memref<2x32xf32, #tpu.memory_space<vmem>>, vector<2x32xf32>
    tpu.vector_store %arg34[%c0_388, %c0_389], %1099 {strides = array<i32>} : memref<2x32xf32, #tpu.memory_space<vmem>>, vector<2x32xf32>,
    %c0_390 = arith.constant 0 : index
    %c0_391 = arith.constant 0 : index
    %1127 = vector.load %arg35[%c0_390, %c0_391] : memref<2x32xf32, #tpu.memory_space<vmem>>, vector<2x32xf32>
    tpu.vector_store %arg35[%c0_390, %c0_391], %1125 {strides = array<i32>} : memref<2x32xf32, #tpu.memory_space<vmem>>, vector<2x32xf32>,
    %1128 = arith.index_cast %1061 : i32 to index
    %c0_392 = arith.constant 0 : index
    %1129 = vector.load %arg32[%1128, %c0_392] : memref<16x32xf32, #tpu.memory_space<vmem>>, vector<2x32xf32>
    tpu.vector_store %arg32[%1128, %c0_392], %1099 {strides = array<i32>} : memref<16x32xf32, #tpu.memory_space<vmem>>, vector<2x32xf32>,
    %1130 = arith.index_cast %1061 : i32 to index
    %c0_393 = arith.constant 0 : index
    %1131 = vector.load %arg33[%1130, %c0_393] : memref<16x32xf32, #tpu.memory_space<vmem>>, vector<2x32xf32>
    tpu.vector_store %arg33[%1130, %c0_393], %1125 {strides = array<i32>} : memref<16x32xf32, #tpu.memory_space<vmem>>, vector<2x32xf32>,
    %c7_i32_394 = arith.constant 7 : i32
    %c2_i32_395 = arith.constant 2 : i32
    %1132 = arith.muli %c7_i32_394, %c2_i32_395 : i32
    %1133 = tpu.assume_multiple %1132, 2 : i32
    %c0_396 = arith.constant 0 : index
    %c0_397 = arith.constant 0 : index
    %1134 = vector.load %arg34[%c0_396, %c0_397] : memref<2x32xf32, #tpu.memory_space<vmem>>, vector<2x32xf32>
    %c0_398 = arith.constant 0 : index
    %c0_399 = arith.constant 0 : index
    %1135 = vector.load %arg35[%c0_398, %c0_399] : memref<2x32xf32, #tpu.memory_space<vmem>>, vector<2x32xf32>
    %cst_400 = arith.constant dense<0.000000e+00> : vector<2x96xf32>
    %1136 = tpu.matmul %1134, %624, %cst_400 {dimension_numbers = #tpu.dot_dimension_numbers<[1], [0], [0], [1], [0, 0, 1, 1], [], []>} : vector<2x32xf32>, vector<32x96xf32>, vector<2x96xf32> -> vector<2x96xf32>
    %1137 = vector.broadcast %625 : vector<1x96xf32> to vector<2x96xf32>
    %1138 = arith.addf %1136, %1137 : vector<2x96xf32>
    %cst_401 = arith.constant dense<0.000000e+00> : vector<2x96xf32>
    %1139 = tpu.matmul %1135, %626, %cst_401 {dimension_numbers = #tpu.dot_dimension_numbers<[1], [0], [0], [1], [0, 0, 1, 1], [], []>} : vector<2x32xf32>, vector<32x96xf32>, vector<2x96xf32> -> vector<2x96xf32>
    %1140 = vector.broadcast %627 : vector<1x96xf32> to vector<2x96xf32>
    %1141 = arith.addf %1139, %1140 : vector<2x96xf32>
    %1142 = arith.index_cast %1133 : i32 to index
    %c0_402 = arith.constant 0 : index
    %1143 = vector.load %arg30[%1142, %c0_402] : memref<16x96xf32, #tpu.memory_space<vmem>>, vector<2x96xf32>
    %1144 = arith.index_cast %1133 : i32 to index
    %c0_403 = arith.constant 0 : index
    %1145 = vector.load %arg31[%1144, %c0_403] : memref<16x96xf32, #tpu.memory_space<vmem>>, vector<2x96xf32>
    %1146 = vector.extract_strided_slice %1143 {offsets = [0, 0], sizes = [2, 32], strides = [1, 1]} : vector<2x96xf32> to vector<2x32xf32>
    %1147 = vector.extract_strided_slice %1138 {offsets = [0, 0], sizes = [2, 32], strides = [1, 1]} : vector<2x96xf32> to vector<2x32xf32>
    %1148 = arith.addf %1146, %1147 : vector<2x32xf32>
    %1149 = arith.negf %1148 : vector<2x32xf32>
    %1150 = math.exp %1149 : vector<2x32xf32>
    %cst_404 = arith.constant 1.000000e+00 : f32
    %1151 = vector.broadcast %cst_404 : f32 to vector<2x32xf32>
    %1152 = arith.addf %1151, %1150 : vector<2x32xf32>
    %1153 = arith.divf %1151, %1152 : vector<2x32xf32>
    %1154 = vector.extract_strided_slice %1143 {offsets = [0, 32], sizes = [2, 32], strides = [1, 1]} : vector<2x96xf32> to vector<2x32xf32>
    %1155 = vector.extract_strided_slice %1138 {offsets = [0, 32], sizes = [2, 32], strides = [1, 1]} : vector<2x96xf32> to vector<2x32xf32>
    %1156 = arith.addf %1154, %1155 : vector<2x32xf32>
    %1157 = arith.negf %1156 : vector<2x32xf32>
    %1158 = math.exp %1157 : vector<2x32xf32>
    %cst_405 = arith.constant 1.000000e+00 : f32
    %1159 = vector.broadcast %cst_405 : f32 to vector<2x32xf32>
    %1160 = arith.addf %1159, %1158 : vector<2x32xf32>
    %1161 = arith.divf %1159, %1160 : vector<2x32xf32>
    %1162 = vector.extract_strided_slice %1143 {offsets = [0, 64], sizes = [2, 32], strides = [1, 1]} : vector<2x96xf32> to vector<2x32xf32>
    %1163 = vector.extract_strided_slice %1138 {offsets = [0, 64], sizes = [2, 32], strides = [1, 1]} : vector<2x96xf32> to vector<2x32xf32>
    %1164 = arith.mulf %1153, %1163 : vector<2x32xf32>
    %1165 = arith.addf %1162, %1164 : vector<2x32xf32>
    %1166 = math.tanh %1165 : vector<2x32xf32>
    %cst_406 = arith.constant 1.000000e+00 : f32
    %1167 = vector.broadcast %cst_406 : f32 to vector<2x32xf32>
    %1168 = arith.subf %1167, %1161 : vector<2x32xf32>
    %1169 = arith.mulf %1168, %1166 : vector<2x32xf32>
    %1170 = arith.mulf %1161, %1134 : vector<2x32xf32>
    %1171 = arith.addf %1169, %1170 : vector<2x32xf32>
    %1172 = vector.extract_strided_slice %1145 {offsets = [0, 0], sizes = [2, 32], strides = [1, 1]} : vector<2x96xf32> to vector<2x32xf32>
    %1173 = vector.extract_strided_slice %1141 {offsets = [0, 0], sizes = [2, 32], strides = [1, 1]} : vector<2x96xf32> to vector<2x32xf32>
    %1174 = arith.addf %1172, %1173 : vector<2x32xf32>
    %1175 = arith.negf %1174 : vector<2x32xf32>
    %1176 = math.exp %1175 : vector<2x32xf32>
    %cst_407 = arith.constant 1.000000e+00 : f32
    %1177 = vector.broadcast %cst_407 : f32 to vector<2x32xf32>
    %1178 = arith.addf %1177, %1176 : vector<2x32xf32>
    %1179 = arith.divf %1177, %1178 : vector<2x32xf32>
    %1180 = vector.extract_strided_slice %1145 {offsets = [0, 32], sizes = [2, 32], strides = [1, 1]} : vector<2x96xf32> to vector<2x32xf32>
    %1181 = vector.extract_strided_slice %1141 {offsets = [0, 32], sizes = [2, 32], strides = [1, 1]} : vector<2x96xf32> to vector<2x32xf32>
    %1182 = arith.addf %1180, %1181 : vector<2x32xf32>
    %1183 = arith.negf %1182 : vector<2x32xf32>
    %1184 = math.exp %1183 : vector<2x32xf32>
    %cst_408 = arith.constant 1.000000e+00 : f32
    %1185 = vector.broadcast %cst_408 : f32 to vector<2x32xf32>
    %1186 = arith.addf %1185, %1184 : vector<2x32xf32>
    %1187 = arith.divf %1185, %1186 : vector<2x32xf32>
    %1188 = vector.extract_strided_slice %1145 {offsets = [0, 64], sizes = [2, 32], strides = [1, 1]} : vector<2x96xf32> to vector<2x32xf32>
    %1189 = vector.extract_strided_slice %1141 {offsets = [0, 64], sizes = [2, 32], strides = [1, 1]} : vector<2x96xf32> to vector<2x32xf32>
    %1190 = arith.mulf %1179, %1189 : vector<2x32xf32>
    %1191 = arith.addf %1188, %1190 : vector<2x32xf32>
    %1192 = math.tanh %1191 : vector<2x32xf32>
    %cst_409 = arith.constant 1.000000e+00 : f32
    %1193 = vector.broadcast %cst_409 : f32 to vector<2x32xf32>
    %1194 = arith.subf %1193, %1187 : vector<2x32xf32>
    %1195 = arith.mulf %1194, %1192 : vector<2x32xf32>
    %1196 = arith.mulf %1187, %1135 : vector<2x32xf32>
    %1197 = arith.addf %1195, %1196 : vector<2x32xf32>
    %c0_410 = arith.constant 0 : index
    %c0_411 = arith.constant 0 : index
    %1198 = vector.load %arg34[%c0_410, %c0_411] : memref<2x32xf32, #tpu.memory_space<vmem>>, vector<2x32xf32>
    tpu.vector_store %arg34[%c0_410, %c0_411], %1171 {strides = array<i32>} : memref<2x32xf32, #tpu.memory_space<vmem>>, vector<2x32xf32>,
    %c0_412 = arith.constant 0 : index
    %c0_413 = arith.constant 0 : index
    %1199 = vector.load %arg35[%c0_412, %c0_413] : memref<2x32xf32, #tpu.memory_space<vmem>>, vector<2x32xf32>
    tpu.vector_store %arg35[%c0_412, %c0_413], %1197 {strides = array<i32>} : memref<2x32xf32, #tpu.memory_space<vmem>>, vector<2x32xf32>,
    %1200 = arith.index_cast %1133 : i32 to index
    %c0_414 = arith.constant 0 : index
    %1201 = vector.load %arg32[%1200, %c0_414] : memref<16x32xf32, #tpu.memory_space<vmem>>, vector<2x32xf32>
    tpu.vector_store %arg32[%1200, %c0_414], %1171 {strides = array<i32>} : memref<16x32xf32, #tpu.memory_space<vmem>>, vector<2x32xf32>,
    %1202 = arith.index_cast %1133 : i32 to index
    %c0_415 = arith.constant 0 : index
    %1203 = vector.load %arg33[%1202, %c0_415] : memref<16x32xf32, #tpu.memory_space<vmem>>, vector<2x32xf32>
    tpu.vector_store %arg33[%1202, %c0_415], %1197 {strides = array<i32>} : memref<16x32xf32, #tpu.memory_space<vmem>>, vector<2x32xf32>,
    %c8_i32_416 = arith.constant 8 : i32
    %c0_417 = arith.constant 0 : index
    %c0_418 = arith.constant 0 : index
    %1204 = vector.load %arg34[%c0_417, %c0_418] : memref<2x32xf32, #tpu.memory_space<vmem>>, vector<2x32xf32>
    %c1_419 = arith.constant 1 : index
    %c0_420 = arith.constant 0 : index
    %c0_421 = arith.constant 0 : index
    %1205 = vector.load %arg29[%c1_419, %c0_420, %c0_421] : memref<2x2x32xf32, #tpu.memory_space<vmem>>, vector<1x2x32xf32>
    %1206 = vector.shape_cast %1205 : vector<1x2x32xf32> to vector<2x32xf32>
    %1207 = vector.shape_cast %1204 : vector<2x32xf32> to vector<1x2x32xf32>
    tpu.vector_store %arg29[%c1_419, %c0_420, %c0_421], %1207 {strides = array<i32>} : memref<2x2x32xf32, #tpu.memory_space<vmem>>, vector<1x2x32xf32>,
    %c0_422 = arith.constant 0 : index
    %c0_423 = arith.constant 0 : index
    %1208 = vector.load %arg32[%c0_422, %c0_423] : memref<16x32xf32, #tpu.memory_space<vmem>>, vector<16x32xf32>
    %c0_424 = arith.constant 0 : index
    %c0_425 = arith.constant 0 : index
    %1209 = vector.load %arg33[%c0_424, %c0_425] : memref<16x32xf32, #tpu.memory_space<vmem>>, vector<16x32xf32>
    %c0_426 = arith.constant 0 : index
    %c0_427 = arith.constant 0 : index
    %1210 = vector.load %arg18[%c0_426, %c0_427] : memref<32x128xf32, #tpu.memory_space<vmem>>, vector<32x128xf32>
    %cst_428 = arith.constant dense<0.000000e+00> : vector<16x128xf32>
    %1211 = tpu.matmul %1208, %1210, %cst_428 {dimension_numbers = #tpu.dot_dimension_numbers<[1], [0], [0], [1], [0, 0, 1, 1], [], []>} : vector<16x32xf32>, vector<32x128xf32>, vector<16x128xf32> -> vector<16x128xf32>
    %c0_429 = arith.constant 0 : index
    %c0_430 = arith.constant 0 : index
    %1212 = vector.load %arg19[%c0_429, %c0_430] : memref<1x128xf32, #tpu.memory_space<vmem>>, vector<1x128xf32>
    %1213 = vector.broadcast %1212 : vector<1x128xf32> to vector<16x128xf32>
    %1214 = arith.addf %1211, %1213 : vector<16x128xf32>
    %1215 = vector.extract_strided_slice %1214 {offsets = [0, 0], sizes = [16, 64], strides = [1, 1]} : vector<16x128xf32> to vector<16x64xf32>
    %1216 = vector.extract_strided_slice %1214 {offsets = [0, 64], sizes = [16, 64], strides = [1, 1]} : vector<16x128xf32> to vector<16x64xf32>
    %cst_431 = arith.constant 0.000000e+00 : f32
    %1217 = vector.broadcast %cst_431 : f32 to vector<16x64xf32>
    %1218 = arith.cmpf ogt, %1215, %1217 : vector<16x64xf32>
    %cst_432 = arith.constant 0.00999999977 : f32
    %1219 = vector.broadcast %cst_432 : f32 to vector<16x64xf32>
    %1220 = arith.mulf %1219, %1215 : vector<16x64xf32>
    %1221 = arith.select %1218, %1215, %1220 : vector<16x64xi1>, vector<16x64xf32>
    %c0_433 = arith.constant 0 : index
    %c0_434 = arith.constant 0 : index
    %1222 = vector.load %arg20[%c0_433, %c0_434] : memref<64x16xf32, #tpu.memory_space<vmem>>, vector<64x16xf32>
    %cst_435 = arith.constant dense<0.000000e+00> : vector<16x16xf32>
    %1223 = tpu.matmul %1221, %1222, %cst_435 {dimension_numbers = #tpu.dot_dimension_numbers<[1], [0], [0], [1], [0, 0, 1, 1], [], []>} : vector<16x64xf32>, vector<64x16xf32>, vector<16x16xf32> -> vector<16x16xf32>
    %c0_436 = arith.constant 0 : index
    %c0_437 = arith.constant 0 : index
    %1224 = vector.load %arg21[%c0_436, %c0_437] : memref<1x16xf32, #tpu.memory_space<vmem>>, vector<1x16xf32>
    %1225 = vector.broadcast %1224 : vector<1x16xf32> to vector<16x16xf32>
    %1226 = arith.addf %1223, %1225 : vector<16x16xf32>
    %cst_438 = arith.constant 0.000000e+00 : f32
    %1227 = vector.broadcast %cst_438 : f32 to vector<16x64xf32>
    %1228 = arith.cmpf ogt, %1216, %1227 : vector<16x64xf32>
    %cst_439 = arith.constant 0.00999999977 : f32
    %1229 = vector.broadcast %cst_439 : f32 to vector<16x64xf32>
    %1230 = arith.mulf %1229, %1216 : vector<16x64xf32>
    %1231 = arith.select %1228, %1216, %1230 : vector<16x64xi1>, vector<16x64xf32>
    %c0_440 = arith.constant 0 : index
    %c0_441 = arith.constant 0 : index
    %1232 = vector.load %arg22[%c0_440, %c0_441] : memref<64x16xf32, #tpu.memory_space<vmem>>, vector<64x16xf32>
    %cst_442 = arith.constant dense<0.000000e+00> : vector<16x16xf32>
    %1233 = tpu.matmul %1231, %1232, %cst_442 {dimension_numbers = #tpu.dot_dimension_numbers<[1], [0], [0], [1], [0, 0, 1, 1], [], []>} : vector<16x64xf32>, vector<64x16xf32>, vector<16x16xf32> -> vector<16x16xf32>
    %c0_443 = arith.constant 0 : index
    %c0_444 = arith.constant 0 : index
    %1234 = vector.load %arg23[%c0_443, %c0_444] : memref<1x16xf32, #tpu.memory_space<vmem>>, vector<1x16xf32>
    %1235 = vector.broadcast %1234 : vector<1x16xf32> to vector<16x16xf32>
    %1236 = arith.addf %1233, %1235 : vector<16x16xf32>
    %c0_445 = arith.constant 0 : index
    %c0_446 = arith.constant 0 : index
    %1237 = vector.load %arg24[%c0_445, %c0_446] : memref<32x64xf32, #tpu.memory_space<vmem>>, vector<32x64xf32>
    %cst_447 = arith.constant dense<0.000000e+00> : vector<16x64xf32>
    %1238 = tpu.matmul %1209, %1237, %cst_447 {dimension_numbers = #tpu.dot_dimension_numbers<[1], [0], [0], [1], [0, 0, 1, 1], [], []>} : vector<16x32xf32>, vector<32x64xf32>, vector<16x64xf32> -> vector<16x64xf32>
    %c0_448 = arith.constant 0 : index
    %c0_449 = arith.constant 0 : index
    %1239 = vector.load %arg25[%c0_448, %c0_449] : memref<1x64xf32, #tpu.memory_space<vmem>>, vector<1x64xf32>
    %1240 = vector.broadcast %1239 : vector<1x64xf32> to vector<16x64xf32>
    %1241 = arith.addf %1238, %1240 : vector<16x64xf32>
    %cst_450 = arith.constant 0.000000e+00 : f32
    %1242 = vector.broadcast %cst_450 : f32 to vector<16x64xf32>
    %1243 = arith.cmpf ogt, %1241, %1242 : vector<16x64xf32>
    %cst_451 = arith.constant 0.00999999977 : f32
    %1244 = vector.broadcast %cst_451 : f32 to vector<16x64xf32>
    %1245 = arith.mulf %1244, %1241 : vector<16x64xf32>
    %1246 = arith.select %1243, %1241, %1245 : vector<16x64xi1>, vector<16x64xf32>
    %c0_452 = arith.constant 0 : index
    %c0_453 = arith.constant 0 : index
    %1247 = vector.load %arg26[%c0_452, %c0_453] : memref<64x16xf32, #tpu.memory_space<vmem>>, vector<64x16xf32>
    %cst_454 = arith.constant dense<0.000000e+00> : vector<16x16xf32>
    %1248 = tpu.matmul %1246, %1247, %cst_454 {dimension_numbers = #tpu.dot_dimension_numbers<[1], [0], [0], [1], [0, 0, 1, 1], [], []>} : vector<16x64xf32>, vector<64x16xf32>, vector<16x16xf32> -> vector<16x16xf32>
    %c0_455 = arith.constant 0 : index
    %c0_456 = arith.constant 0 : index
    %1249 = vector.load %arg27[%c0_455, %c0_456] : memref<1x16xf32, #tpu.memory_space<vmem>>, vector<1x16xf32>
    %1250 = vector.broadcast %1249 : vector<1x16xf32> to vector<16x16xf32>
    %1251 = arith.addf %1248, %1250 : vector<16x16xf32>
    %1252 = arith.negf %1236 : vector<16x16xf32>
    %1253 = math.exp %1252 : vector<16x16xf32>
    %cst_457 = arith.constant 1.000000e+00 : f32
    %1254 = vector.broadcast %cst_457 : f32 to vector<16x16xf32>
    %1255 = arith.addf %1254, %1253 : vector<16x16xf32>
    %1256 = arith.divf %1254, %1255 : vector<16x16xf32>
    %1257 = arith.mulf %1256, %1251 : vector<16x16xf32>
    %1258 = arith.addf %1257, %1226 : vector<16x16xf32>
    %c0_458 = arith.constant 0 : index
    %c0_459 = arith.constant 0 : index
    %1259 = vector.load %arg28[%c0_458, %c0_459] : memref<16x16xf32, #tpu.memory_space<vmem>>, vector<16x16xf32>
    tpu.vector_store %arg28[%c0_458, %c0_459], %1258 {strides = array<i32>} : memref<16x16xf32, #tpu.memory_space<vmem>>, vector<16x16xf32>,
    return
  }
}

</mosaic_0001>

<bundles_post_ra>
// kernel: tpu_custom_call.1
= control target key start
LH: loop header
LB: loop body
LE: loop exit
PB: predicated region body
PF: predicated region fallthrough
CT: control target
= control target key end

     0   :  { %s7126_s6 = smov 1   ;;  %s7127_s10 = smov 2   ;;  %s8088_s0 = inlined_call_operand.smem [shape: u32[30], index: -1, kind: input, shape index: {}] }
   0x1   :  { %s7204_s5 = sld [smem:[%s8088_s0]]   ;;  %s7128_s14 = smov 3  }
   0x2   :  { %s7209_s9 = sld [smem:[%s8088_s0 + %s7126_s6]]   ;;  %s7129_s18 = smov 4  }
   0x3   :  { %s7214_s13 = sld [smem:[%s8088_s0 + %s7127_s10]]   ;;  %s7130_s22 = smov 5  }
   0x4   :  { %s7219_s17 = sld [smem:[%s8088_s0 + %s7128_s14]]   ;;  %s7131_s26 = smov 6  }
   0x5   :  { %s7224_s21 = sld [smem:[%s8088_s0 + %s7129_s18]]   ;;  %s7132_s30 = smov 7  }
   0x6   :  { %s7229_s25 = sld [smem:[%s8088_s0 + %s7130_s22]]   ;;  %s7133_s4 = smov 8  }
   0x7   :  { %s7234_s29 = sld [smem:[%s8088_s0 + %s7131_s26]]   ;;  %s7134_s10 = smov 9  }
   0x8   :  { %s7239_s3 = sld [smem:[%s8088_s0 + %s7132_s30]]   ;;  %s7135_s15 = smov 10  }
   0x9   :  { %8101 = sst [smem:[#allocation72_spill]] %s7214_s13  ;;  %s7136_s20 = smov 11  }
   0xa   :  { %s7244_s8 = sld [smem:[%s8088_s0 + %s7133_s4]]   ;;  %s7137_s26 = smov 12  }
   0xb   :  { %8102 = sst [smem:[#allocation73_spill]] %s7224_s21  ;;  %s7138_s1 = smov 13  }
   0xc   :  { %s7249_s14 = sld [smem:[%s8088_s0 + %s7134_s10]]   ;;  %s7139_s7 = smov 14  }
   0xd   :  { %8103 = sst [smem:[#allocation74_spill]] %s7234_s29  ;;  %s7141_s22 = smov 16  }
   0xe   :  { %s7254_s19 = sld [smem:[%s8088_s0 + %s7135_s15]]   ;;  %s7140_s15 = smov 15  }
   0xf   :  { %s7259_s24 = sld [smem:[%s8088_s0 + %s7136_s20]]   ;;  %s7142_s28 = smov 17  }
  0x10   :  { %8104 = sst [smem:[#allocation75_spill]] %s7244_s8 }
  0x11   :  { %s7264_s30 = sld [smem:[%s8088_s0 + %s7137_s26]]  }
  0x12   :  { %s7269_s6 = sld [smem:[%s8088_s0 + %s7138_s1]]  }
  0x13   :  { %s7274_s12 = sld [smem:[%s8088_s0 + %s7139_s7]]   ;;  %s7143_s7 = smov 18  }
  0x14   :  { %8105 = sst [smem:[#allocation76_spill]] %s7254_s19 }
  0x15   :  { %s7279_s20 = sld [smem:[%s8088_s0 + %s7140_s15]]   ;;  %s7144_s15 = smov 19  }
  0x16   :  { %s7284_s27 = sld [smem:[%s8088_s0 + %s7141_s22]]   ;;  %s7145_s22 = smov 20  }
  0x17   :  { %8106 = sst [smem:[#allocation77_spill]] %s7264_s30 }
  0x18   :  { %s7289_s4 = sld [smem:[%s8088_s0 + %s7142_s28]]   ;;  %s7146_s28 = smov 21  }
  0x19   :  { %8107 = sst [smem:[#allocation78_spill]] %s7274_s12 }
  0x1a   :  { %s7294_s12 = sld [smem:[%s8088_s0 + %s7143_s7]]   ;;  %s7147_s7 = smov 22  }
  0x1b   :  { %s7299_s30 = sld [smem:[%s8088_s0 + %s7144_s15]]   ;;  %s7148_s15 = smov 23  }
  0x1c   :  { %8108 = sst [smem:[#allocation79_spill]] %s7284_s27 }
  0x1d   :  { %s7304_s27 = sld [smem:[%s8088_s0 + %s7145_s22]]   ;;  %s7149_s22 = smov 24  }
  0x1e   :  { %s7309_s19 = sld [smem:[%s8088_s0 + %s7146_s28]]   ;;  %s7150_s28 = smov 25  }
  0x1f   :  { %s7319_s8 = sld [smem:[%s8088_s0 + %s7148_s15]]   ;;  %s7152_s15 = smov 27  }
  0x20   :  { %8109 = sst [smem:[#allocation80_spill]] %s7294_s12 }
  0x21   :  { %s7314_s12 = sld [smem:[%s8088_s0 + %s7147_s7]]   ;;  %s7151_s7 = smov 26  }
  0x22   :  { %s7329_s29 = sld [smem:[%s8088_s0 + %s7150_s28]]   ;;  %s7154_s28 = smov 29  }
  0x23   :  { %8110 = sst [smem:[#allocation81_spill]] %s7304_s27 }
  0x24   :  { %s7324_s27 = sld [smem:[%s8088_s0 + %s7149_s22]]   ;;  %s7153_s22 = smov 28  }
  0x25   :  { %s7339_s21 = sld [smem:[%s8088_s0 + %s7152_s15]]  }
  0x26   :  { %s7349_s13 = sld [smem:[%s8088_s0 + %s7154_s28]]  }
  0x27   :  { %8111 = sst [smem:[#allocation82_spill]] %s7314_s12 }
  0x28   :  { %s7334_s12 = sld [smem:[%s8088_s0 + %s7151_s7]]  }
  0x2a   :  { %8112 = sst [smem:[#allocation83_spill]] %s7324_s27 }
  0x2b   :  { %s7344_s27 = sld [smem:[%s8088_s0 + %s7153_s22]]  }
  0x2c   :  { %65 = vsyncpa [#allocation9], 0 }
  0x2d   :  { %66 = vsyncpa [#allocation12], 0 }
  0x2e   :  { %67 = vsyncpa [#allocation15], 0 }
  0x2f   :  { %68 = vsyncpa [#allocation18], 0 }
  0x30   :  { %69 = vsyncpa [#allocation21], 0 }
  0x31   :  { %70 = vsyncpa [#allocation24], 0 }
  0x32   :  { %71 = vsyncpa [#allocation27], 0 }
  0x33   :  { %72 = vsyncpa [#allocation30], 0 }
  0x34   :  { %73 = vsyncpa [#allocation33], 0 }
  0x35   :  { %74 = vsyncpa [#allocation36], 0 }
  0x36   :  { %75 = vsyncpa [#allocation39], 0 }
  0x37   :  { %76 = vsyncpa [#allocation42], 0 }
  0x38   :  { %77 = vsyncpa [#allocation45], 0 }
  0x39   :  { %78 = vsyncpa [#allocation48], 0 }
  0x3a   :  { %79 = vsyncpa [#allocation51], 0 }
  0x3b   :  { %80 = vsyncpa [#allocation10], 0 }
  0x3c   :  { %81 = vsyncpa [#allocation54], 0  ;;  %s7155_s0 = smov [#allocation11]   ;;  %s6432_s10 = scalar_lea.hbm %s7209_s9, 64 }
  0x3d   :  { %s99_s7 = sshll.u32 %s7155_s0, 4  ;;  %p6433_p0 = scmp.ne.s32.totalorder %s7209_s9, %s6432_s10  ;;  %s100_s7 = int_to_ptr.vmem [resolvable:$true] %s99_s7 }
  0x3e   :  { %p6436_p1 = scmp.lt.u32.totalorder %s6432_s10, %s7209_s9 }
  0x40   :  { %p6438_p2 = pnand %p6436_p1, %p6433_p0 }
  0x42   :  { %6441 = shalt.err (!%p6438_p2)
}
  0x43   :  { %s6442_s11 = scalar_lea.vmem %s100_s7, 64  ;;  %p6447_p4 = scmp.lt.s32.totalorder %s100_s7, %s100_s7 }
  0x44   :  { %p6443_p3 = scmp.ne.s32.totalorder %s100_s7, %s6442_s11  ;;  %p6448_p5 = scmp.lt.s32.totalorder %s6442_s11, %s6442_s11 }
  0x46   :  { %p6449_p6 = por %p6448_p5, %p6447_p4 }
  0x48   :  { %p6450_p7 = pnand %p6449_p6, %p6443_p3 }
  0x4a   :  { %6453 = shalt.err (!%p6450_p7)
}
  0x4b   :  { %s7156_s15 = smov 32   ;;  %s7157_s16 = smov 2  }
  0x4c   :  { %105 = dma.hbm_to_vmem [thread:$0]  %s7209_s9, 64, %s100_s7, [#allocation12], %s7156_s15, %s7156_s15, %s7157_s16  }
  0x4d   :  { %s7158_s18 = smov [#allocation14]   ;;  %s7159_s23 = smov [#allocation17]  }
  0x4e   :  { %s123_s22 = sshll.u32 %s7158_s18, 4  ;;  %s146_s26 = sshll.u32 %s7159_s23, 4  ;;  %s124_s22 = int_to_ptr.vmem [resolvable:$true] %s123_s22  ;;  %s147_s26 = int_to_ptr.vmem [resolvable:$true] %s146_s26 }
  0x4f   :  { %s6454_s28 = scalar_lea.hbm %s7219_s17, 512 }
  0x50   :  { %p6455_p8 = scmp.ne.s32.totalorder %s7219_s17, %s6454_s28  ;;  %p6458_p9 = scmp.lt.u32.totalorder %s6454_s28, %s7219_s17 }
  0x52   :  { %p6460_p10 = pnand %p6458_p9, %p6455_p8 }
  0x54   :  { %6463 = shalt.err (!%p6460_p10)
}
  0x55   :  { %s6464_s1 = scalar_lea.vmem %s124_s22, 512  ;;  %p6469_p12 = scmp.lt.s32.totalorder %s124_s22, %s124_s22 }
  0x56   :  { %p6465_p11 = scmp.ne.s32.totalorder %s124_s22, %s6464_s1  ;;  %p6470_p13 = scmp.lt.s32.totalorder %s6464_s1, %s6464_s1 }
  0x58   :  { %p6471_p0 = por %p6470_p13, %p6469_p12 }
  0x5a   :  { %p6472_p1 = pnand %p6471_p0, %p6465_p11 }
  0x5c   :  { %6475 = shalt.err (!%p6472_p1)
}
  0x5d   :  { %s7160_s2 = smov 128   ;;  %s7161_s9 = smov 8  }
  0x5e   :  { %129 = dma.hbm_to_vmem [thread:$0]  %s7219_s17, 512, %s124_s22, [#allocation15], %s7160_s2, %s7160_s2, %s7161_s9  }
  0x5f   :  { %s6476_s0 = scalar_lea.hbm %s7229_s25, 16 }
  0x60   :  { %p6477_p2 = scmp.ne.s32.totalorder %s7229_s25, %s6476_s0  ;;  %p6480_p3 = scmp.lt.u32.totalorder %s6476_s0, %s7229_s25 }
  0x62   :  { %p6482_p4 = pnand %p6480_p3, %p6477_p2 }
  0x64   :  { %6485 = shalt.err (!%p6482_p4)
}
  0x65   :  { %s6486_s7 = scalar_lea.vmem %s147_s26, 16  ;;  %s6490_s10 = scalar_lea.vmem %s147_s26, 32 }
  0x66   :  { %p6487_p5 = scmp.ne.s32.totalorder %s147_s26, %s6486_s7  ;;  %p6491_p6 = scmp.lt.s32.totalorder %s147_s26, %s147_s26 }
  0x67   :  { %p6492_p7 = scmp.lt.s32.totalorder %s6490_s10, %s6486_s7 }
  0x69   :  { %p6493_p8 = por %p6492_p7, %p6491_p6 }
  0x6b   :  { %p6494_p9 = pnand %p6493_p8, %p6487_p5 }
  0x6d   :  { %6497 = shalt.err (!%p6494_p9)
}
  0x6e   :  { %149 = dma.hbm_to_vmem [thread:$0]  %s7229_s25, 16, %s147_s26, [#allocation18]  }
  0x6f   :  { %s7162_s17 = smov [#allocation20]   ;;  %s7163_s18 = smov [#allocation23]  }
  0x70   :  { %s167_s11 = sshll.u32 %s7162_s17, 4  ;;  %s190_s22 = sshll.u32 %s7163_s18, 4  ;;  %s168_s11 = int_to_ptr.vmem [resolvable:$true] %s167_s11  ;;  %s191_s22 = int_to_ptr.vmem [resolvable:$true] %s190_s22 }
  0x71   :  { %s6498_s23 = scalar_lea.hbm %s7239_s3, 512 }
  0x72   :  { %p6499_p10 = scmp.ne.s32.totalorder %s7239_s3, %s6498_s23  ;;  %p6502_p11 = scmp.lt.u32.totalorder %s6498_s23, %s7239_s3 }
  0x74   :  { %p6504_p12 = pnand %p6502_p11, %p6499_p10 }
  0x76   :  { %6507 = shalt.err (!%p6504_p12)
}
  0x77   :  { %s6508_s28 = scalar_lea.vmem %s168_s11, 512  ;;  %p6513_p0 = scmp.lt.s32.totalorder %s168_s11, %s168_s11 }
  0x78   :  { %p6509_p13 = scmp.ne.s32.totalorder %s168_s11, %s6508_s28  ;;  %p6514_p1 = scmp.lt.s32.totalorder %s6508_s28, %s6508_s28 }
  0x7a   :  { %p6515_p2 = por %p6514_p1, %p6513_p0 }
  0x7c   :  { %p6516_p3 = pnand %p6515_p2, %p6509_p13 }
  0x7e   :  { %6519 = shalt.err (!%p6516_p3)
}
  0x7f   :  { %173 = dma.hbm_to_vmem [thread:$0]  %s7239_s3, 512, %s168_s11, [#allocation21], %s7160_s2, %s7160_s2, %s7161_s9  }
  0x80   :  { %s6520_s25 = scalar_lea.hbm %s7249_s14, 16 }
  0x81   :  { %p6521_p4 = scmp.ne.s32.totalorder %s7249_s14, %s6520_s25  ;;  %p6524_p5 = scmp.lt.u32.totalorder %s6520_s25, %s7249_s14 }
  0x83   :  { %p6526_p6 = pnand %p6524_p5, %p6521_p4 }
  0x85   :  { %6529 = shalt.err (!%p6526_p6)
}
  0x86   :  { %s6530_s26 = scalar_lea.vmem %s191_s22, 16  ;;  %s6534_s1 = scalar_lea.vmem %s191_s22, 32 }
  0x87   :  { %p6531_p7 = scmp.ne.s32.totalorder %s191_s22, %s6530_s26  ;;  %p6535_p8 = scmp.lt.s32.totalorder %s191_s22, %s191_s22 }
  0x88   :  { %p6536_p9 = scmp.lt.s32.totalorder %s6534_s1, %s6530_s26 }
  0x8a   :  { %p6537_p10 = por %p6536_p9, %p6535_p8 }
  0x8c   :  { %p6538_p11 = pnand %p6537_p10, %p6531_p7 }
  0x8e   :  { %6541 = shalt.err (!%p6538_p11)
}
  0x8f   :  { %193 = dma.hbm_to_vmem [thread:$0]  %s7249_s14, 16, %s191_s22, [#allocation24]  }
  0x90   :  { %s7164_s3 = smov [#allocation26]   ;;  %s7165_s7 = smov [#allocation29]  }
  0x91   :  { %s209_s0 = sshll.u32 %s7164_s3, 4  ;;  %s232_s10 = sshll.u32 %s7165_s7, 4  ;;  %s210_s0 = int_to_ptr.vmem [resolvable:$true] %s209_s0  ;;  %s233_s10 = int_to_ptr.vmem [resolvable:$true] %s232_s10 }
  0x92   :  { %s6542_s17 = scalar_lea.hbm %s7259_s24, 512 }
  0x93   :  { %p6543_p12 = scmp.ne.s32.totalorder %s7259_s24, %s6542_s17  ;;  %p6546_p13 = scmp.lt.u32.totalorder %s6542_s17, %s7259_s24 }
  0x95   :  { %p6548_p0 = pnand %p6546_p13, %p6543_p12 }
  0x97   :  { %6551 = shalt.err (!%p6548_p0)
}
  0x98   :  { %s6552_s11 = scalar_lea.vmem %s210_s0, 512  ;;  %p6557_p2 = scmp.lt.s32.totalorder %s210_s0, %s210_s0 }
  0x99   :  { %p6553_p1 = scmp.ne.s32.totalorder %s210_s0, %s6552_s11  ;;  %p6558_p3 = scmp.lt.s32.totalorder %s6552_s11, %s6552_s11 }
  0x9b   :  { %p6559_p4 = por %p6558_p3, %p6557_p2 }
  0x9d   :  { %p6560_p5 = pnand %p6559_p4, %p6553_p1 }
  0x9f   :  { %6563 = shalt.err (!%p6560_p5)
}
  0xa0   :  { %215 = dma.hbm_to_vmem [thread:$0]  %s7259_s24, 512, %s210_s0, [#allocation27], %s7160_s2, %s7160_s2, %s7161_s9  }
  0xa1   :  { %s6564_s14 = scalar_lea.hbm %s7269_s6, 16 }
  0xa2   :  { %p6565_p6 = scmp.ne.s32.totalorder %s7269_s6, %s6564_s14  ;;  %p6568_p7 = scmp.lt.u32.totalorder %s6564_s14, %s7269_s6 }
  0xa4   :  { %p6570_p8 = pnand %p6568_p7, %p6565_p6 }
  0xa6   :  { %6573 = shalt.err (!%p6570_p8)
}
  0xa7   :  { %s6574_s18 = scalar_lea.vmem %s233_s10, 16  ;;  %s6578_s22 = scalar_lea.vmem %s233_s10, 32 }
  0xa8   :  { %p6575_p9 = scmp.ne.s32.totalorder %s233_s10, %s6574_s18  ;;  %p6579_p10 = scmp.lt.s32.totalorder %s233_s10, %s233_s10 }
  0xa9   :  { %p6580_p11 = scmp.lt.s32.totalorder %s6578_s22, %s6574_s18 }
  0xab   :  { %p6581_p12 = por %p6580_p11, %p6579_p10 }
  0xad   :  { %p6582_p13 = pnand %p6581_p12, %p6575_p9 }
  0xaf   :  { %6585 = shalt.err (!%p6582_p13)
}
  0xb0   :  { %235 = dma.hbm_to_vmem [thread:$0]  %s7269_s6, 16, %s233_s10, [#allocation30]  }
  0xb1   :  { %s7166_s24 = smov [#allocation32]   ;;  %s7167_s28 = smov [#allocation35]  }
  0xb2   :  { %s253_s23 = sshll.u32 %s7166_s24, 4  ;;  %s276_s25 = sshll.u32 %s7167_s28, 4  ;;  %s254_s23 = int_to_ptr.vmem [resolvable:$true] %s253_s23  ;;  %s277_s25 = int_to_ptr.vmem [resolvable:$true] %s276_s25 }
  0xb3   :  { %s6586_s26 = scalar_lea.hbm %s7279_s20, 512 }
  0xb4   :  { %p6587_p0 = scmp.ne.s32.totalorder %s7279_s20, %s6586_s26  ;;  %p6590_p1 = scmp.lt.u32.totalorder %s6586_s26, %s7279_s20 }
  0xb6   :  { %p6592_p2 = pnand %p6590_p1, %p6587_p0 }
  0xb8   :  { %6595 = shalt.err (!%p6592_p2)
}
  0xb9   :  { %s6596_s1 = scalar_lea.vmem %s254_s23, 512  ;;  %p6601_p4 = scmp.lt.s32.totalorder %s254_s23, %s254_s23 }
  0xba   :  { %p6597_p3 = scmp.ne.s32.totalorder %s254_s23, %s6596_s1  ;;  %p6602_p5 = scmp.lt.s32.totalorder %s6596_s1, %s6596_s1 }
  0xbc   :  { %p6603_p6 = por %p6602_p5, %p6601_p4 }
  0xbe   :  { %p6604_p7 = pnand %p6603_p6, %p6597_p3 }
  0xc0   :  { %6607 = shalt.err (!%p6604_p7)
}
  0xc1   :  { %259 = dma.hbm_to_vmem [thread:$0]  %s7279_s20, 512, %s254_s23, [#allocation33], %s7160_s2, %s7160_s2, %s7161_s9  }
  0xc2   :  { %s6608_s6 = scalar_lea.hbm %s7289_s4, 16 }
  0xc3   :  { %p6609_p8 = scmp.ne.s32.totalorder %s7289_s4, %s6608_s6  ;;  %p6612_p9 = scmp.lt.u32.totalorder %s6608_s6, %s7289_s4 }
  0xc5   :  { %p6614_p10 = pnand %p6612_p9, %p6609_p8 }
  0xc7   :  { %6617 = shalt.err (!%p6614_p10)
}
  0xc8   :  { %s6618_s3 = scalar_lea.vmem %s277_s25, 16  ;;  %s6622_s0 = scalar_lea.vmem %s277_s25, 32 }
  0xc9   :  { %p6619_p11 = scmp.ne.s32.totalorder %s277_s25, %s6618_s3  ;;  %p6623_p12 = scmp.lt.s32.totalorder %s277_s25, %s277_s25 }
  0xca   :  { %p6624_p13 = scmp.lt.s32.totalorder %s6622_s0, %s6618_s3 }
  0xcc   :  { %p6625_p0 = por %p6624_p13, %p6623_p12 }
  0xce   :  { %p6626_p1 = pnand %p6625_p0, %p6619_p11 }
  0xd0   :  { %6629 = shalt.err (!%p6626_p1)
}
  0xd1   :  { %279 = dma.hbm_to_vmem [thread:$0]  %s7289_s4, 16, %s277_s25, [#allocation36]  }
  0xd2   :  { %s7168_s20 = smov [#allocation38]   ;;  %s7169_s10 = smov [#allocation41]  }
  0xd3   :  { %s298_s7 = sshll.u32 %s7168_s20, 4  ;;  %s320_s17 = sshll.u32 %s7169_s10, 4  ;;  %s299_s7 = int_to_ptr.vmem [resolvable:$true] %s298_s7  ;;  %s321_s17 = int_to_ptr.vmem [resolvable:$true] %s320_s17 }
  0xd4   :  { %s6630_s11 = scalar_lea.hbm %s7299_s30, 16 }
  0xd5   :  { %p6631_p2 = scmp.ne.s32.totalorder %s7299_s30, %s6630_s11  ;;  %p6634_p3 = scmp.lt.u32.totalorder %s6630_s11, %s7299_s30 }
  0xd7   :  { %p6636_p4 = pnand %p6634_p3, %p6631_p2 }
  0xd9   :  { %6639 = shalt.err (!%p6636_p4)
}
  0xda   :  { %s6640_s14 = scalar_lea.vmem %s299_s7, 16  ;;  %s6644_s18 = scalar_lea.vmem %s299_s7, 32 }
  0xdb   :  { %p6641_p5 = scmp.ne.s32.totalorder %s299_s7, %s6640_s14  ;;  %p6645_p6 = scmp.lt.s32.totalorder %s299_s7, %s299_s7 }
  0xdc   :  { %p6646_p7 = scmp.lt.s32.totalorder %s6644_s18, %s6640_s14 }
  0xde   :  { %p6647_p8 = por %p6646_p7, %p6645_p6 }
  0xe0   :  { %p6648_p9 = pnand %p6647_p8, %p6641_p5 }
  0xe2   :  { %6651 = shalt.err (!%p6648_p9)
}
  0xe3   :  { %301 = dma.hbm_to_vmem [thread:$0]  %s7299_s30, 16, %s299_s7, [#allocation39]  }
  0xe4   :  { %s6652_s4 = scalar_lea.hbm %s7309_s19, 16 }
  0xe5   :  { %p6653_p10 = scmp.ne.s32.totalorder %s7309_s19, %s6652_s4  ;;  %p6656_p11 = scmp.lt.u32.totalorder %s6652_s4, %s7309_s19 }
  0xe7   :  { %p6658_p12 = pnand %p6656_p11, %p6653_p10 }
  0xe9   :  { %6661 = shalt.err (!%p6658_p12)
}
  0xea   :  { %s6662_s22 = scalar_lea.vmem %s321_s17, 16  ;;  %s6666_s24 = scalar_lea.vmem %s321_s17, 32 }
  0xeb   :  { %p6663_p13 = scmp.ne.s32.totalorder %s321_s17, %s6662_s22  ;;  %p6667_p0 = scmp.lt.s32.totalorder %s321_s17, %s321_s17 }
  0xec   :  { %p6668_p1 = scmp.lt.s32.totalorder %s6666_s24, %s6662_s22 }
  0xee   :  { %p6669_p2 = por %p6668_p1, %p6667_p0 }
  0xf0   :  { %p6670_p3 = pnand %p6669_p2, %p6663_p13 }
  0xf2   :  { %6673 = shalt.err (!%p6670_p3)
}
  0xf3   :  { %323 = dma.hbm_to_vmem [thread:$0]  %s7309_s19, 16, %s321_s17, [#allocation42]  }
  0xf4   :  { %s7170_s30 = smov [#allocation44]   ;;  %s7171_s28 = smov [#allocation47]  }
  0xf5   :  { %s342_s23 = sshll.u32 %s7170_s30, 4  ;;  %s364_s25 = sshll.u32 %s7171_s28, 4  ;;  %s343_s23 = int_to_ptr.vmem [resolvable:$true] %s342_s23  ;;  %s365_s25 = int_to_ptr.vmem [resolvable:$true] %s364_s25 }
  0xf6   :  { %s6674_s26 = scalar_lea.hbm %s7319_s8, 16 }
  0xf7   :  { %p6675_p4 = scmp.ne.s32.totalorder %s7319_s8, %s6674_s26  ;;  %p6678_p5 = scmp.lt.u32.totalorder %s6674_s26, %s7319_s8 }
  0xf9   :  { %p6680_p6 = pnand %p6678_p5, %p6675_p4 }
  0xfb   :  { %6683 = shalt.err (!%p6680_p6)
}
  0xfc   :  { %s6684_s1 = scalar_lea.vmem %s343_s23, 16  ;;  %s6688_s6 = scalar_lea.vmem %s343_s23, 32 }
  0xfd   :  { %p6685_p7 = scmp.ne.s32.totalorder %s343_s23, %s6684_s1  ;;  %p6689_p8 = scmp.lt.s32.totalorder %s343_s23, %s343_s23 }
  0xfe   :  { %p6690_p9 = scmp.lt.s32.totalorder %s6688_s6, %s6684_s1 }
 0x100   :  { %p6691_p10 = por %p6690_p9, %p6689_p8 }
 0x102   :  { %p6692_p11 = pnand %p6691_p10, %p6685_p7 }
 0x104   :  { %6695 = shalt.err (!%p6692_p11)
}
 0x105   :  { %345 = dma.hbm_to_vmem [thread:$0]  %s7319_s8, 16, %s343_s23, [#allocation45]  }
 0x106   :  { %s6696_s19 = scalar_lea.hbm %s7329_s29, 16 }
 0x107   :  { %p6697_p12 = scmp.ne.s32.totalorder %s7329_s29, %s6696_s19  ;;  %p6700_p13 = scmp.lt.u32.totalorder %s6696_s19, %s7329_s29 }
 0x109   :  { %p6702_p0 = pnand %p6700_p13, %p6697_p12 }
 0x10b   :  { %6705 = shalt.err (!%p6702_p0)
}
 0x10c   :  { %s6706_s3 = scalar_lea.vmem %s365_s25, 16  ;;  %s6710_s0 = scalar_lea.vmem %s365_s25, 32 }
 0x10d   :  { %p6707_p1 = scmp.ne.s32.totalorder %s365_s25, %s6706_s3  ;;  %p6711_p2 = scmp.lt.s32.totalorder %s365_s25, %s365_s25 }
 0x10e   :  { %p6712_p3 = scmp.lt.s32.totalorder %s6710_s0, %s6706_s3 }
 0x110   :  { %p6713_p4 = por %p6712_p3, %p6711_p2 }
 0x112   :  { %p6714_p5 = pnand %p6713_p4, %p6707_p1 }
 0x114   :  { %6717 = shalt.err (!%p6714_p5)
}
 0x115   :  { %367 = dma.hbm_to_vmem [thread:$0]  %s7329_s29, 16, %s365_s25, [#allocation48]  }
 0x116   :  { %s7172_s8 = smov [#allocation8]   ;;  %s6718_s7 = scalar_lea.hbm %s7204_s5, 512 }
 0x117   :  { %s87_s20 = sshll.u32 %s7172_s8, 4  ;;  %p6719_p6 = scmp.ne.s32.totalorder %s7204_s5, %s6718_s7  ;;  %s88_s20 = int_to_ptr.vmem [resolvable:$true] %s87_s20 }
 0x118   :  { %p6722_p7 = scmp.lt.u32.totalorder %s6718_s7, %s7204_s5 }
 0x11a   :  { %p6724_p8 = pnand %p6722_p7, %p6719_p6 }
 0x11c   :  { %6727 = shalt.err (!%p6724_p8)
}
 0x11d   :  { %s6728_s10 = scalar_lea.vmem %s88_s20, 512  ;;  %p6733_p10 = scmp.lt.s32.totalorder %s88_s20, %s88_s20 }
 0x11e   :  { %p6729_p9 = scmp.ne.s32.totalorder %s88_s20, %s6728_s10  ;;  %p6734_p11 = scmp.lt.s32.totalorder %s6728_s10, %s6728_s10 }
 0x120   :  { %p6735_p12 = por %p6734_p11, %p6733_p10 }
 0x122   :  { %p6736_p13 = pnand %p6735_p12, %p6729_p9 }
 0x124   :  { %6739 = shalt.err (!%p6736_p13)
}
 0x125   :  { %s7173_s17 = smov 256   ;;  %s8113_s11 = sld [smem:[#allocation72_spill]] }
 0x126   :  { %s7174_s29 = smov 16   ;;  %s7175_s14 = smov [#allocation13]  }
 0x127   :  { %93 = dma.hbm_to_vmem [thread:$0]  %s7204_s5, 512, %s88_s20, [#allocation9], %s7173_s17, %s7173_s17, %s7174_s29  }
 0x128   :  { %s111_s18 = sshll.u32 %s7175_s14, 4  ;;  %s7176_s4 = smov [#allocation16]   ;;  %s112_s18 = int_to_ptr.vmem [resolvable:$true] %s111_s18 }
 0x129   :  { %s136_s22 = sshll.u32 %s7176_s4, 4  ;;  %s137_s22 = int_to_ptr.vmem [resolvable:$true] %s136_s22 }
 0x12b   :  { %s6740_s24 = scalar_lea.hbm %s8113_s11, 3456 }
 0x12c   :  { %p6741_p0 = scmp.ne.s32.totalorder %s8113_s11, %s6740_s24  ;;  %p6744_p1 = scmp.lt.u32.totalorder %s6740_s24, %s8113_s11 }
 0x12e   :  { %p6746_p2 = pnand %p6744_p1, %p6741_p0 }
 0x130   :  { %6749 = shalt.err (!%p6746_p2)
}
 0x131   :  { %s6750_s30 = scalar_lea.vmem %s112_s18, 3456  ;;  %p6755_p4 = scmp.lt.s32.totalorder %s112_s18, %s112_s18 }
 0x132   :  { %p6751_p3 = scmp.ne.s32.totalorder %s112_s18, %s6750_s30  ;;  %p6756_p5 = scmp.lt.s32.totalorder %s6750_s30, %s6750_s30 }
 0x134   :  { %p6757_p6 = por %p6756_p5, %p6755_p4 }
 0x136   :  { %p6758_p7 = pnand %p6757_p6, %p6751_p3 }
 0x138   :  { %6761 = shalt.err (!%p6758_p7)
}
 0x139   :  { %s8114_s5 = sld [smem:[#allocation73_spill]] }
 0x13a   :  { %117 = dma.hbm_to_vmem [thread:$0]  %s8113_s11, 3456, %s112_s18, [#allocation12], %s7160_s2, %s7160_s2, %s7161_s9  }
 0x13f   :  { %s6762_s23 = scalar_lea.hbm %s8114_s5, 16 }
 0x140   :  { %p6763_p8 = scmp.ne.s32.totalorder %s8114_s5, %s6762_s23  ;;  %p6766_p9 = scmp.lt.u32.totalorder %s6762_s23, %s8114_s5 }
 0x142   :  { %p6768_p10 = pnand %p6766_p9, %p6763_p8 }
 0x144   :  { %6771 = shalt.err (!%p6768_p10)
}
 0x145   :  { %s6772_s28 = scalar_lea.vmem %s137_s22, 16  ;;  %s6776_s25 = scalar_lea.vmem %s137_s22, 32 }
 0x146   :  { %p6773_p11 = scmp.ne.s32.totalorder %s137_s22, %s6772_s28  ;;  %p6777_p12 = scmp.lt.s32.totalorder %s137_s22, %s137_s22 }
 0x147   :  { %p6778_p13 = scmp.lt.s32.totalorder %s6776_s25, %s6772_s28 }
 0x149   :  { %p6779_p0 = por %p6778_p13, %p6777_p12 }
 0x14b   :  { %p6780_p1 = pnand %p6779_p0, %p6773_p11 }
 0x14d   :  { %6783 = shalt.err (!%p6780_p1)
}
 0x14e   :  { %s8115_s26 = sld [smem:[#allocation74_spill]]  ;;  %s7177_s1 = smov [#allocation19]  }
 0x14f   :  { %139 = dma.hbm_to_vmem [thread:$0]  %s8114_s5, 16, %s137_s22, [#allocation15]  }
 0x150   :  { %s155_s6 = sshll.u32 %s7177_s1, 4  ;;  %s7178_s19 = smov [#allocation22]   ;;  %s156_s6 = int_to_ptr.vmem [resolvable:$true] %s155_s6 }
 0x151   :  { %s180_s3 = sshll.u32 %s7178_s19, 4  ;;  %s181_s3 = int_to_ptr.vmem [resolvable:$true] %s180_s3 }
 0x154   :  { %s6784_s0 = scalar_lea.hbm %s8115_s26, 512 }
 0x155   :  { %p6785_p2 = scmp.ne.s32.totalorder %s8115_s26, %s6784_s0  ;;  %p6788_p3 = scmp.lt.u32.totalorder %s6784_s0, %s8115_s26 }
 0x157   :  { %p6790_p4 = pnand %p6788_p3, %p6785_p2 }
 0x159   :  { %6793 = shalt.err (!%p6790_p4)
}
 0x15a   :  { %s6794_s8 = scalar_lea.vmem %s156_s6, 512  ;;  %p6799_p6 = scmp.lt.s32.totalorder %s156_s6, %s156_s6 }
 0x15b   :  { %p6795_p5 = scmp.ne.s32.totalorder %s156_s6, %s6794_s8  ;;  %p6800_p7 = scmp.lt.s32.totalorder %s6794_s8, %s6794_s8 }
 0x15d   :  { %p6801_p8 = por %p6800_p7, %p6799_p6 }
 0x15f   :  { %p6802_p9 = pnand %p6801_p8, %p6795_p5 }
 0x161   :  { %6805 = shalt.err (!%p6802_p9)
}
 0x162   :  { %s8116_s20 = sld [smem:[#allocation75_spill]] }
 0x163   :  { %161 = dma.hbm_to_vmem [thread:$0]  %s8115_s26, 512, %s156_s6, [#allocation18], %s7160_s2, %s7160_s2, %s7161_s9  }
 0x168   :  { %s6806_s7 = scalar_lea.hbm %s8116_s20, 16 }
 0x169   :  { %p6807_p10 = scmp.ne.s32.totalorder %s8116_s20, %s6806_s7  ;;  %p6810_p11 = scmp.lt.u32.totalorder %s6806_s7, %s8116_s20 }
 0x16b   :  { %p6812_p12 = pnand %p6810_p11, %p6807_p10 }
 0x16d   :  { %6815 = shalt.err (!%p6812_p12)
}
 0x16e   :  { %s6816_s10 = scalar_lea.vmem %s181_s3, 16  ;;  %s6820_s17 = scalar_lea.vmem %s181_s3, 32 }
 0x16f   :  { %p6817_p13 = scmp.ne.s32.totalorder %s181_s3, %s6816_s10  ;;  %p6821_p0 = scmp.lt.s32.totalorder %s181_s3, %s181_s3 }
 0x170   :  { %p6822_p1 = scmp.lt.s32.totalorder %s6820_s17, %s6816_s10 }
 0x172   :  { %p6823_p2 = por %p6822_p1, %p6821_p0 }
 0x174   :  { %p6824_p3 = pnand %p6823_p2, %p6817_p13 }
 0x176   :  { %6827 = shalt.err (!%p6824_p3)
}
 0x177   :  { %s8117_s11 = sld [smem:[#allocation76_spill]]  ;;  %s7179_s29 = smov [#allocation25]  }
 0x178   :  { %183 = dma.hbm_to_vmem [thread:$0]  %s8116_s20, 16, %s181_s3, [#allocation21]  }
 0x179   :  { %s200_s14 = sshll.u32 %s7179_s29, 4  ;;  %s7180_s18 = smov [#allocation28]   ;;  %s201_s14 = int_to_ptr.vmem [resolvable:$true] %s200_s14 }
 0x17a   :  { %s222_s4 = sshll.u32 %s7180_s18, 4  ;;  %s223_s4 = int_to_ptr.vmem [resolvable:$true] %s222_s4 }
 0x17d   :  { %s6828_s22 = scalar_lea.hbm %s8117_s11, 128 }
 0x17e   :  { %p6829_p4 = scmp.ne.s32.totalorder %s8117_s11, %s6828_s22  ;;  %p6832_p5 = scmp.lt.u32.totalorder %s6828_s22, %s8117_s11 }
 0x180   :  { %p6834_p6 = pnand %p6832_p5, %p6829_p4 }
 0x182   :  { %6837 = shalt.err (!%p6834_p6)
}
 0x183   :  { %s6838_s24 = scalar_lea.vmem %s201_s14, 128  ;;  %p6843_p8 = scmp.lt.s32.totalorder %s201_s14, %s201_s14 }
 0x184   :  { %p6839_p7 = scmp.ne.s32.totalorder %s201_s14, %s6838_s24  ;;  %p6844_p9 = scmp.lt.s32.totalorder %s6838_s24, %s6838_s24 }
 0x186   :  { %p6845_p10 = por %p6844_p9, %p6843_p8 }
 0x188   :  { %p6846_p11 = pnand %p6845_p10, %p6839_p7 }
 0x18a   :  { %6849 = shalt.err (!%p6846_p11)
}
 0x18b   :  { %s8118_s30 = sld [smem:[#allocation77_spill]] }
 0x18c   :  { %203 = dma.hbm_to_vmem [thread:$0]  %s8117_s11, 128, %s201_s14, [#allocation24]  }
 0x191   :  { %s6850_s5 = scalar_lea.hbm %s8118_s30, 16 }
 0x192   :  { %p6851_p12 = scmp.ne.s32.totalorder %s8118_s30, %s6850_s5  ;;  %p6854_p13 = scmp.lt.u32.totalorder %s6850_s5, %s8118_s30 }
 0x194   :  { %p6856_p0 = pnand %p6854_p13, %p6851_p12 }
 0x196   :  { %6859 = shalt.err (!%p6856_p0)
}
 0x197   :  { %s6860_s23 = scalar_lea.vmem %s223_s4, 16  ;;  %s6864_s28 = scalar_lea.vmem %s223_s4, 32 }
 0x198   :  { %p6861_p1 = scmp.ne.s32.totalorder %s223_s4, %s6860_s23  ;;  %p6865_p2 = scmp.lt.s32.totalorder %s223_s4, %s223_s4 }
 0x199   :  { %p6866_p3 = scmp.lt.s32.totalorder %s6864_s28, %s6860_s23 }
 0x19b   :  { %p6867_p4 = por %p6866_p3, %p6865_p2 }
 0x19d   :  { %p6868_p5 = pnand %p6867_p4, %p6861_p1 }
 0x19f   :  { %6871 = shalt.err (!%p6868_p5)
}
 0x1a0   :  { %s8119_s25 = sld [smem:[#allocation78_spill]]  ;;  %s7181_s26 = smov [#allocation31]  }
 0x1a1   :  { %225 = dma.hbm_to_vmem [thread:$0]  %s8118_s30, 16, %s223_s4, [#allocation27]  }
 0x1a2   :  { %s241_s1 = sshll.u32 %s7181_s26, 4  ;;  %s7182_s6 = smov [#allocation34]   ;;  %s242_s1 = int_to_ptr.vmem [resolvable:$true] %s241_s1 }
 0x1a3   :  { %s266_s19 = sshll.u32 %s7182_s6, 4  ;;  %s267_s19 = int_to_ptr.vmem [resolvable:$true] %s266_s19 }
 0x1a6   :  { %s6872_s3 = scalar_lea.hbm %s8119_s25, 512 }
 0x1a7   :  { %p6873_p6 = scmp.ne.s32.totalorder %s8119_s25, %s6872_s3  ;;  %p6876_p7 = scmp.lt.u32.totalorder %s6872_s3, %s8119_s25 }
 0x1a9   :  { %p6878_p8 = pnand %p6876_p7, %p6873_p6 }
 0x1ab   :  { %6881 = shalt.err (!%p6878_p8)
}
 0x1ac   :  { %s6882_s0 = scalar_lea.vmem %s242_s1, 512  ;;  %p6887_p10 = scmp.lt.s32.totalorder %s242_s1, %s242_s1 }
 0x1ad   :  { %p6883_p9 = scmp.ne.s32.totalorder %s242_s1, %s6882_s0  ;;  %p6888_p11 = scmp.lt.s32.totalorder %s6882_s0, %s6882_s0 }
 0x1af   :  { %p6889_p12 = por %p6888_p11, %p6887_p10 }
 0x1b1   :  { %p6890_p13 = pnand %p6889_p12, %p6883_p9 }
 0x1b3   :  { %6893 = shalt.err (!%p6890_p13)
}
 0x1b4   :  { %s8120_s8 = sld [smem:[#allocation79_spill]] }
 0x1b5   :  { %247 = dma.hbm_to_vmem [thread:$0]  %s8119_s25, 512, %s242_s1, [#allocation30], %s7160_s2, %s7160_s2, %s7161_s9  }
 0x1ba   :  { %s6894_s20 = scalar_lea.hbm %s8120_s8, 16 }
 0x1bb   :  { %p6895_p0 = scmp.ne.s32.totalorder %s8120_s8, %s6894_s20  ;;  %p6898_p1 = scmp.lt.u32.totalorder %s6894_s20, %s8120_s8 }
 0x1bd   :  { %p6900_p2 = pnand %p6898_p1, %p6895_p0 }
 0x1bf   :  { %6903 = shalt.err (!%p6900_p2)
}
 0x1c0   :  { %s6904_s7 = scalar_lea.vmem %s267_s19, 16  ;;  %s6908_s10 = scalar_lea.vmem %s267_s19, 32 }
 0x1c1   :  { %p6905_p3 = scmp.ne.s32.totalorder %s267_s19, %s6904_s7  ;;  %p6909_p4 = scmp.lt.s32.totalorder %s267_s19, %s267_s19 }
 0x1c2   :  { %p6910_p5 = scmp.lt.s32.totalorder %s6908_s10, %s6904_s7 }
 0x1c4   :  { %p6911_p6 = por %p6910_p5, %p6909_p4 }
 0x1c6   :  { %p6912_p7 = pnand %p6911_p6, %p6905_p3 }
 0x1c8   :  { %6915 = shalt.err (!%p6912_p7)
}
 0x1c9   :  { %s8121_s17 = sld [smem:[#allocation80_spill]]  ;;  %s7183_s11 = smov [#allocation37]  }
 0x1ca   :  { %269 = dma.hbm_to_vmem [thread:$0]  %s8120_s8, 16, %s267_s19, [#allocation33]  }
 0x1cb   :  { %s285_s29 = sshll.u32 %s7183_s11, 4  ;;  %s7184_s14 = smov [#allocation40]   ;;  %s286_s29 = int_to_ptr.vmem [resolvable:$true] %s285_s29 }
 0x1cc   :  { %s307_s18 = sshll.u32 %s7184_s14, 4  ;;  %s7463_s18 = int_to_ptr.vmem [resolvable:$true] %s307_s18 }
 0x1cf   :  { %s6916_s4 = scalar_lea.hbm %s8121_s17, 512 }
 0x1d0   :  { %p6917_p8 = scmp.ne.s32.totalorder %s8121_s17, %s6916_s4  ;;  %p6920_p9 = scmp.lt.u32.totalorder %s6916_s4, %s8121_s17 }
 0x1d2   :  { %p6922_p10 = pnand %p6920_p9, %p6917_p8 }
 0x1d4   :  { %6925 = shalt.err (!%p6922_p10)
}
 0x1d5   :  { %s6926_s22 = scalar_lea.vmem %s286_s29, 512  ;;  %p6931_p12 = scmp.lt.s32.totalorder %s286_s29, %s286_s29 }
 0x1d6   :  { %p6927_p11 = scmp.ne.s32.totalorder %s286_s29, %s6926_s22  ;;  %p6932_p13 = scmp.lt.s32.totalorder %s6926_s22, %s6926_s22 }
 0x1d8   :  { %p6933_p0 = por %p6932_p13, %p6931_p12 }
 0x1da   :  { %p6934_p1 = pnand %p6933_p0, %p6927_p11 }
 0x1dc   :  { %6937 = shalt.err (!%p6934_p1)
}
 0x1dd   :  { %s8122_s24 = sld [smem:[#allocation81_spill]] }
 0x1de   :  { %291 = dma.hbm_to_vmem [thread:$0]  %s8121_s17, 512, %s286_s29, [#allocation36], %s7160_s2, %s7160_s2, %s7161_s9  }
 0x1e3   :  { %s6938_s30 = scalar_lea.hbm %s8122_s24, 1024 }
 0x1e4   :  { %p6939_p2 = scmp.ne.s32.totalorder %s8122_s24, %s6938_s30  ;;  %p6942_p3 = scmp.lt.u32.totalorder %s6938_s30, %s8122_s24 }
 0x1e6   :  { %p6944_p4 = pnand %p6942_p3, %p6939_p2 }
 0x1e8   :  { %6947 = shalt.err (!%p6944_p4)
}
 0x1e9   :  { %s6948_s5 = scalar_lea.vmem %s7463_s18, 1024  ;;  %p6953_p6 = scmp.lt.s32.totalorder %s7463_s18, %s7463_s18 }
 0x1ea   :  { %p6949_p5 = scmp.ne.s32.totalorder %s7463_s18, %s6948_s5  ;;  %p6954_p7 = scmp.lt.s32.totalorder %s6948_s5, %s6948_s5 }
 0x1ec   :  { %p6955_p8 = por %p6954_p7, %p6953_p6 }
 0x1ee   :  { %p6956_p9 = pnand %p6955_p8, %p6949_p5 }
 0x1f0   :  { %6959 = shalt.err (!%p6956_p9)
}
 0x1f1   :  { %s8123_s23 = sld [smem:[#allocation82_spill]]  ;;  %s7185_s28 = smov [#allocation43]  }
 0x1f2   :  { %313 = dma.hbm_to_vmem [thread:$0]  %s8122_s24, 1024, %s7463_s18, [#allocation39], %s7160_s2, %s7160_s2, %s7161_s9  }
 0x1f3   :  { %s329_s25 = sshll.u32 %s7185_s28, 4  ;;  %s7186_s26 = smov [#allocation46]   ;;  %s330_s25 = int_to_ptr.vmem [resolvable:$true] %s329_s25 }
 0x1f4   :  { %s351_s1 = sshll.u32 %s7186_s26, 4  ;;  %s7484_s1 = int_to_ptr.vmem [resolvable:$true] %s351_s1 }
 0x1f7   :  { %s6960_s6 = scalar_lea.hbm %s8123_s23, 1024 }
 0x1f8   :  { %p6961_p10 = scmp.ne.s32.totalorder %s8123_s23, %s6960_s6  ;;  %p6964_p11 = scmp.lt.u32.totalorder %s6960_s6, %s8123_s23 }
 0x1fa   :  { %p6966_p12 = pnand %p6964_p11, %p6961_p10 }
 0x1fc   :  { %6969 = shalt.err (!%p6966_p12)
}
 0x1fd   :  { %s6970_s19 = scalar_lea.vmem %s330_s25, 1024  ;;  %p6975_p0 = scmp.lt.s32.totalorder %s330_s25, %s330_s25 }
 0x1fe   :  { %p6971_p13 = scmp.ne.s32.totalorder %s330_s25, %s6970_s19  ;;  %p6976_p1 = scmp.lt.s32.totalorder %s6970_s19, %s6970_s19 }
 0x200   :  { %p6977_p2 = por %p6976_p1, %p6975_p0 }
 0x202   :  { %p6978_p3 = pnand %p6977_p2, %p6971_p13 }
 0x204   :  { %6981 = shalt.err (!%p6978_p3)
}
 0x205   :  { %s8124_s3 = sld [smem:[#allocation83_spill]] }
 0x206   :  { %335 = dma.hbm_to_vmem [thread:$0]  %s8123_s23, 1024, %s330_s25, [#allocation42], %s7160_s2, %s7160_s2, %s7161_s9  }
 0x20b   :  { %s6982_s0 = scalar_lea.hbm %s8124_s3, 512 }
 0x20c   :  { %p6983_p4 = scmp.ne.s32.totalorder %s8124_s3, %s6982_s0  ;;  %p6986_p5 = scmp.lt.u32.totalorder %s6982_s0, %s8124_s3 }
 0x20e   :  { %p6988_p6 = pnand %p6986_p5, %p6983_p4 }
 0x210   :  { %6991 = shalt.err (!%p6988_p6)
}
 0x211   :  { %s6992_s8 = scalar_lea.vmem %s7484_s1, 512  ;;  %p6997_p8 = scmp.lt.s32.totalorder %s7484_s1, %s7484_s1 }
 0x212   :  { %p6993_p7 = scmp.ne.s32.totalorder %s7484_s1, %s6992_s8  ;;  %p6998_p9 = scmp.lt.s32.totalorder %s6992_s8, %s6992_s8 }
 0x214   :  { %p6999_p10 = por %p6998_p9, %p6997_p8 }
 0x216   :  { %p7000_p11 = pnand %p6999_p10, %p6993_p7 }
 0x218   :  { %7003 = shalt.err (!%p7000_p11)
}
 0x219   :  { %357 = dma.hbm_to_vmem [thread:$0]  %s8124_s3, 512, %s7484_s1, [#allocation45], %s7160_s2, %s7160_s2, %s7161_s9  }
 0x21a   :  { %s7187_s20 = smov [#allocation49]   ;;  %s7188_s10 = smov [#allocation50]  }
 0x21b   :  { %s373_s7 = sshll.u32 %s7187_s20, 4  ;;  %s386_s17 = sshll.u32 %s7188_s10, 4  ;;  %s374_s7 = int_to_ptr.vmem [resolvable:$true] %s373_s7  ;;  %s387_s17 = int_to_ptr.vmem [resolvable:$true] %s386_s17 }
 0x21c   :  { %s7004_s11 = scalar_lea.hbm %s7334_s12, 1024 }
 0x21d   :  { %p7005_p12 = scmp.ne.s32.totalorder %s7334_s12, %s7004_s11  ;;  %p7008_p13 = scmp.lt.u32.totalorder %s7004_s11, %s7334_s12 }
 0x21f   :  { %p7010_p0 = pnand %p7008_p13, %p7005_p12 }
 0x221   :  { %7013 = shalt.err (!%p7010_p0)
}
 0x222   :  { %s7014_s29 = scalar_lea.vmem %s374_s7, 1024  ;;  %p7019_p2 = scmp.lt.s32.totalorder %s374_s7, %s374_s7 }
 0x223   :  { %p7015_p1 = scmp.ne.s32.totalorder %s374_s7, %s7014_s29  ;;  %p7020_p3 = scmp.lt.s32.totalorder %s7014_s29, %s7014_s29 }
 0x225   :  { %p7021_p4 = por %p7020_p3, %p7019_p2 }
 0x227   :  { %p7022_p5 = pnand %p7021_p4, %p7015_p1 }
 0x229   :  { %7025 = shalt.err (!%p7022_p5)
}
 0x22a   :  { %379 = dma.hbm_to_vmem [thread:$0]  %s7334_s12, 1024, %s374_s7, [#allocation48], %s7160_s2, %s7160_s2, %s7161_s9  }
 0x22b   :  { %s7026_s14 = scalar_lea.hbm %s7339_s21, 16 }
 0x22c   :  { %p7027_p6 = scmp.ne.s32.totalorder %s7339_s21, %s7026_s14  ;;  %p7030_p7 = scmp.lt.u32.totalorder %s7026_s14, %s7339_s21 }
 0x22e   :  { %p7032_p8 = pnand %p7030_p7, %p7027_p6 }
 0x230   :  { %7035 = shalt.err (!%p7032_p8)
}
 0x231   :  { %s7036_s18 = scalar_lea.vmem %s387_s17, 16  ;;  %s7040_s4 = scalar_lea.vmem %s387_s17, 32 }
 0x232   :  { %p7037_p9 = scmp.ne.s32.totalorder %s387_s17, %s7036_s18  ;;  %p7041_p10 = scmp.lt.s32.totalorder %s387_s17, %s387_s17 }
 0x233   :  { %p7042_p11 = scmp.lt.s32.totalorder %s7040_s4, %s7036_s18 }
 0x235   :  { %p7043_p12 = por %p7042_p11, %p7041_p10 }
 0x237   :  { %p7044_p13 = pnand %p7043_p12, %p7037_p9 }
 0x239   :  { %7047 = shalt.err (!%p7044_p13)
}
 0x23a   :  { %389 = dma.hbm_to_vmem [thread:$0]  %s7339_s21, 16, %s387_s17, [#allocation51]  }
 0x23b   :  { %7092 = dma.done.wait [#allocation9], 512  }
 0x23c   :  { %7093 = vsyncadd [#allocation9], 4294966784 }
 0x23d   :  { %7094 = dma.done.wait [#allocation12], 3520  }
 0x23e   :  { %7095 = vsyncadd [#allocation12], 4294963776 }
 0x23f   :  { %7096 = dma.done.wait [#allocation15], 528  }
 0x240   :  { %7097 = vsyncadd [#allocation15], 4294966768 }
 0x241   :  { %7098 = dma.done.wait [#allocation18], 528  }
 0x242   :  { %7099 = vsyncadd [#allocation18], 4294966768 }
 0x243   :  { %7100 = dma.done.wait [#allocation21], 528  }
 0x244   :  { %7101 = vsyncadd [#allocation21], 4294966768 }
 0x245   :  { %7102 = dma.done.wait [#allocation24], 144  }
 0x246   :  { %7103 = vsyncadd [#allocation24], 4294967152 }
 0x247   :  { %7104 = dma.done.wait [#allocation27], 528  }
 0x248   :  { %7105 = vsyncadd [#allocation27], 4294966768 }
 0x249   :  { %7106 = dma.done.wait [#allocation30], 528  }
 0x24a   :  { %7107 = vsyncadd [#allocation30], 4294966768 }
 0x24b   :  { %7108 = dma.done.wait [#allocation33], 528  }
 0x24c   :  { %7109 = vsyncadd [#allocation33], 4294966768 }
 0x24d   :  { %7110 = dma.done.wait [#allocation36], 528  }
 0x24e   :  { %7111 = vsyncadd [#allocation36], 4294966768 }
 0x24f   :  { %7112 = dma.done.wait [#allocation39], 1040  }
 0x250   :  { %7113 = vsyncadd [#allocation39], 4294966256 }
 0x251   :  { %7114 = dma.done.wait [#allocation42], 1040  }
 0x252   :  { %7115 = vsyncadd [#allocation42], 4294966256 }
 0x253   :  { %7116 = dma.done.wait [#allocation45], 528  }
 0x254   :  { %7117 = vsyncadd [#allocation45], 4294966768 }
 0x255   :  { %7118 = dma.done.wait [#allocation48], 1040  }
 0x256   :  { %7119 = vsyncadd [#allocation48], 4294966256 }
 0x257   :  { %7120 = dma.done.wait [#allocation51], 16  }
 0x258   :  { %7121 = vsyncadd [#allocation51], 4294967280  ;;  %v7189_v0 = vmov 0.0|0.0   ;;  %v478_v1 = vld [vmem:[#allocation13] sm:$0xff]  ;;  %v479_v2 = vld [vmem:[#allocation13 + $0x8] sm:$0xff]  ;;  %vm512_vm0 = vcmask 719872  }
 0x259   :  { %5847 = vmatprep.subr.bf16.mxu0 %v7189_v0  ;;  %v480_v3 = vld [vmem:[#allocation13 + $0x10] sm:$0xff]  ;;  %v5848_v4 = vpack.c.bf16 %v479_v2, %v478_v1  ;;  %v481_v5 = vld [vmem:[#allocation13 + $0x18] sm:$0xff]  ;;  %v482_v7 = vld [vmem:[#allocation13 + $0x20] sm:$0xff]  ;;  %vm690_vm1 = vcmask 254976   ;;  %v7190_v44 = vmov 0.0   ;;  %vm7191_vm2 = vmmov 0  }
 0x25a   :  { %v5851_v6 = vpack.c.bf16 %v481_v5, %v480_v3  ;;  %v483_v8 = vld [vmem:[#allocation13 + $0x28] sm:$0xff]  ;;  %v484_v10 = vld [vmem:[#allocation13 + $0x30] sm:$0xff]  ;;  %v485_v11 = vld [vmem:[#allocation13 + $0x38] sm:$0xff]  ;;  %vm712_vm3 = vcmask 261120   ;;  %vm605_vm4 = vcmask 64512   ;;  %vm594_vm5 = vcmask 785408  }
 0x25b   :  { %5849 = vmatpush1.bf16.msra.mxu0 %v5848_v4  ;;  %v5854_v9 = vpack.c.bf16 %v483_v8, %v482_v7  ;;  %v475_v12 = vld [vmem:[#allocation8 + $0x8] sm:$0xff]  ;;  %v5857_v13 = vpack.c.bf16 %v485_v11, %v484_v10  ;;  %v689_v14 = vld [vmem:[#allocation11] sm:$0x3]  ;;  %v488_v18 = vld [vmem:[#allocation13 + $0x50] sm:$0xff]  ;;  %s7192_s21 = smov 64   ;;  %s7193_s12 = smov 96  }
 0x25c   :  { %5850 = vmatprep.subr.bf16.mxu0 %v7189_v0  ;;  %5076 = vmatprep.mubr.msk.f32.mxu0 %vm512_vm0, %v475_v12  ;;  %v486_v15 = vld [vmem:[#allocation13 + $0x40] sm:$0xff]  ;;  %v487_v16 = vld [vmem:[#allocation13 + $0x48] sm:$0xff]  ;;  %691 = vst.msk [vmem:[#allocation6] sm:$0x3] %vm690_vm1, %v689_v14  ;;  %v489_v19 = vld [vmem:[#allocation13 + $0x58] sm:$0xff]  ;;  %vm4606_vm8 = vcmask 523264  }
 0x25d   :  { %v5860_v17 = vpack.c.bf16 %v487_v16, %v486_v15  ;;  %v5863_v20 = vpack.c.bf16 %v489_v19, %v488_v18  ;;  %v490_v21 = vld [vmem:[#allocation13 + $0x60] sm:$0xff]  ;;  %v491_v22 = vld [vmem:[#allocation13 + $0x68] sm:$0xff]  ;;  %v492_v24 = vld [vmem:[#allocation13 + $0x70] sm:$0xff]  ;;  %s7194_s22 = smov [#allocation53]  }
 0x25e   :  { %v5866_v23 = vpack.c.bf16 %v491_v22, %v490_v21  ;;  %v493_v25 = vld [vmem:[#allocation13 + $0x78] sm:$0xff]  ;;  %v494_v27 = vld [vmem:[#allocation13 + $0x80] sm:$0xff]  ;;  %v495_v28 = vld [vmem:[#allocation13 + $0x88] sm:$0xff]  ;;  %s5016_s24 = sshll.u32 %s7194_s22, 4  ;;  %s5017_s24 = int_to_ptr.vmem [resolvable:$true] %s5016_s24 }
 0x25f   :  { %5852 = vmatpush1.bf16.msra.mxu0 %v5851_v6  ;;  %v5869_v26 = vpack.c.bf16 %v493_v25, %v492_v24  ;;  %v5872_v29 = vpack.c.bf16 %v495_v28, %v494_v27  ;;  %v496_v30 = vld [vmem:[#allocation13 + $0x90] sm:$0xff]  ;;  %v497_v31 = vld [vmem:[#allocation13 + $0x98] sm:$0xff]  ;;  %v498_v33 = vld [vmem:[#allocation13 + $0xa0] sm:$0xff]  ;;  %s7048_s30 = scalar_lea.vmem %s5017_s24, 64  ;;  %p7053_p1 = scmp.lt.s32.totalorder %s5017_s24, %s5017_s24 }
 0x260   :  { %5853 = vmatprep.subr.bf16.mxu0 %v7189_v0  ;;  %v5875_v32 = vpack.c.bf16 %v497_v31, %v496_v30  ;;  %v499_v34 = vld [vmem:[#allocation13 + $0xa8] sm:$0xff]  ;;  %v500_v36 = vld [vmem:[#allocation13 + $0xb0] sm:$0xff]  ;;  %v501_v37 = vld [vmem:[#allocation13 + $0xb8] sm:$0xff]  ;;  %p7049_p0 = scmp.ne.s32.totalorder %s5017_s24, %s7048_s30  ;;  %p7054_p2 = scmp.lt.s32.totalorder %s7048_s30, %s7048_s30 }
 0x261   :  { %v5878_v35 = vpack.c.bf16 %v499_v34, %v498_v33  ;;  %v5881_v38 = vpack.c.bf16 %v501_v37, %v500_v36  ;;  %v502_v39 = vld [vmem:[#allocation13 + $0xc0] sm:$0xff]  ;;  %v503_v40 = vld [vmem:[#allocation13 + $0xc8] sm:$0xff]  ;;  %v694_v42 = vld [vmem:[#allocation14] sm:$0xff] }
 0x262   :  { %v5884_v41 = vpack.c.bf16 %v503_v40, %v502_v39  ;;  %v695_v43 = vld [vmem:[#allocation14 + $0x8] sm:$0xff]  ;;  %v504_v45 = vld [vmem:[#allocation13 + $0xd0] sm:$0xff]  ;;  %v696_v49 = vld [vmem:[#allocation14 + $0x10] sm:$0xff]  ;;  %p7055_p3 = por %p7054_p2, %p7053_p1 }
 0x263   :  { %5855 = vmatpush1.bf16.msra.mxu0 %v5854_v9  ;;  %v474_v46 = vld [vmem:[#allocation8] sm:$0xff]  ;;  %v7532_v47 = vpack.c.bf16 %v695_v43, %v694_v42  ;;  %v477_v48 = vld [vmem:[#allocation8 + $0x18] sm:$0xff]  ;;  %v476_v51 = vld [vmem:[#allocation8 + $0x10] sm:$0xff] }
 0x264   :  { %5856 = vmatprep.subr.bf16.mxu0 %v7189_v0  ;;  %v697_v50 = vld [vmem:[#allocation14 + $0x18] sm:$0xff]  ;;  %v7543_v53 = vld [vmem:[#allocation6] sm:$0x3]  ;;  %v597_v54 = vld [vmem:[#allocation25] sm:$0xff]  ;;  %5391 = vmatprep.mubr.msk.f32.mxu1 %vm605_vm4, %v474_v46  ;;  %p7056_p4 = pnand %p7055_p3, %p7049_p0 }
 0x265   :  { %v7537_v52 = vpack.c.bf16 %v697_v50, %v696_v49  ;;  %v699_v55 = vld [vmem:[#allocation26] sm:$0xff]  ;;  %v700_v56 = vld [vmem:[#allocation26 + $0x8] sm:$0xff]  ;;  %5389 = vmatprep.subr.mxu1 %v597_v54  ;;  %v701_v58 = vld [vmem:[#allocation26 + $0x10] sm:$0xff] }
 0x266   :  { %v7550_v57 = vpack.c.bf16 %v700_v56, %v699_v55  ;;  %v702_v59 = vld [vmem:[#allocation26 + $0x18] sm:$0xff]  ;;  %v692_v60 = vld [vmem:[#allocation11] sm:$0x3]  ;;  %5390 = vmatpush3.msra.mxu1 %v597_v54  ;;  %v5075_v63 = vld [vmem:[#allocation16] ss:$0 sm:$0xff] }
 0x267   :  { %5858 = vmatpush1.bf16.msra.mxu0 %v5857_v13  ;;  %693 = vst.msk [vmem:[#allocation7] sm:$0x3] %vm690_vm1, %v692_v60  ;;  %5892 = vmatprep.subr.bf16.mxu1 %v7189_v0  ;;  %v7555_v61 = vpack.c.bf16 %v702_v59, %v701_v58  ;;  %v7577_v7 = vld [vmem:[#allocation17] ss:$0 sm:$0xff] }
 0x268   :  { %5859 = vmatprep.subr.bf16.mxu0 %v7189_v0  ;;  %5392 = vmatmul.mubr.msk.f32.vlgmr.msra.gmra.mrb[0].mxu1 %vm605_vm4, %v476_v51 }
 0x269   :  { %5894 = vmatpush3.bf16.msra.mxu1 %v7550_v57  ;;  %5413 = vmatprep.mubr.msk.f32.mxu1 %vm7191_vm2, %v7190_v44 }
 0x26a   :  { %5895 = vmatprep.subr.bf16.mxu1 %v7189_v0 }
 0x26b   :  { %5861 = vmatpush1.bf16.msra.mxu0 %v5860_v17  ;;  %v5078_v17 = vld [vmem:[#allocation28] ss:$0 sm:$0xff] }
 0x26c   :  { %5862 = vmatprep.subr.bf16.mxu0 %v7189_v0 }
 0x26d   :  { %5897 = vmatpush3.bf16.msra.mxu1 %v7555_v61 }
 0x26e   :  { %v7563_v62 = vld [vmem:[#allocation7] sm:$0x3]  ;;  %5898 = vmatprep.subr.bf16.mxu1 %v7189_v0 }
 0x26f   :  { %5864 = vmatpush1.bf16.msra.mxu0 %v5863_v20 }
 0x270   :  { %5865 = vmatprep.subr.bf16.mxu0 %v7189_v0  ;;  %5414 = vmatmul.mubr.msk.f32.vlgmr.msra.gmra.mrb[2].mxu1 %vm712_vm3, %v7563_v62 }
 0x271   :  { %5900 = vmatpush3.bf16.msra.mxu1 %v7532_v47  ;;  %5424 = vmatprep.mubr.msk.f32.mxu1 %vm7191_vm2, %v7190_v44 }
 0x272   :  { %5901 = vmatprep.subr.bf16.mxu1 %v7189_v0 }
 0x273   :  { %5867 = vmatpush1.bf16.msra.mxu0 %v5866_v23 }
 0x274   :  { %5868 = vmatprep.subr.bf16.mxu0 %v7189_v0 }
 0x275   :  { %5903 = vmatpush3.bf16.msra.mxu1 %v7537_v52 }
 0x276   :  { %5904 = vmatprep.subr.bf16.mxu1 %v7189_v0 }
 0x277   :  { %5870 = vmatpush1.bf16.msra.mxu0 %v5869_v26 }
 0x278   :  { %5871 = vmatprep.subr.bf16.mxu0 %v7189_v0 }
 0x27b   :  { %5873 = vmatpush1.bf16.msra.mxu0 %v5872_v29  ;;  %v7586_v29 = vld [vmem:[#allocation29] ss:$0 sm:$0xff] }
 0x27c   :  { %5874 = vmatprep.subr.bf16.mxu0 %v7189_v0 }
 0x27f   :  { %5876 = vmatpush1.bf16.msra.mxu0 %v5875_v32 }
 0x280   :  { %5877 = vmatprep.subr.bf16.mxu0 %v7189_v0 }
 0x283   :  { %5879 = vmatpush1.bf16.msra.mxu0 %v5878_v35 }
 0x284   :  { %5880 = vmatprep.subr.bf16.mxu0 %v7189_v0 }
 0x287   :  { %5882 = vmatpush1.bf16.msra.mxu0 %v5881_v38 }
 0x288   :  { %5883 = vmatprep.subr.bf16.mxu0 %v7189_v0 }
 0x28b   :  { %5885 = vmatpush1.bf16.msra.mxu0 %v5884_v41 }
 0x28c   :  { %571 = vmatprep.subr.mxu0 %v7190_v44 }
 0x28f   :  { %572 = vmatpush1.msra.mxu0 %v504_v45 }
 0x290   :  { %584 = vmatmul.mubr.f32.vlgmr.msra.gmra.mrb[0].mxu0 %v474_v46  ;;  %5886 = vmatprep.subr.bf16.mxu0 %v7189_v0 }
 0x291   :  { %5888 = vmatpush3.bf16.msra.mxu0 %v7532_v47  ;;  %5077 = vmatprep.mubr.msk.f32.mxu0 %vm512_vm0, %v477_v48 }
 0x292   :  { %5889 = vmatprep.subr.bf16.mxu0 %v7189_v0 }
 0x294   :  { %589 = vmatmul.mubr.f32.gmra.mrb[2].mxu0 %v476_v51 }
 0x295   :  { %5891 = vmatpush3.bf16.msra.mxu0 %v7537_v52  ;;  %5402 = vmatprep.mubr.msk.f32.mxu0 %vm7191_vm2, %v7190_v44 }
 0x296   :  { %5928 = vmatprep.subr.bf16.mxu0 %v7189_v0 }
 0x298   :  { %5403 = vmatmul.mubr.msk.f32.vlgmr.msra.gmra.mrb[4].mxu0 %vm712_vm3, %v7543_v53 }
 0x299   :  { %5479 = vmatprep.mubr.msk.f32.mxu0 %vm7191_vm2, %v7190_v44  ;;  %5930 = vmatpush3.bf16.msra.mxu0 %v7550_v57 }
 0x29a   :  { %5931 = vmatprep.subr.bf16.mxu0 %v7189_v0 }
 0x29d   :  { %5933 = vmatpush3.bf16.msra.mxu0 %v7555_v61 }
 0x29e   :  { %5940 = vmatprep.subr.bf16.mxu0 %v7189_v0 }
 0x33b   :  { %v5393_v16 = vpop.f32.mrb[0].mxu1 }
 0x33c   :  { %v684_v18 = vadd.f32 %v5393_v16, %v5078_v17  ;;  %v678_v22 = vpop.f32.mrb[1].mxu1 }
 0x33d   :  { %v679_v23 = vadd.f32 %v5078_v17, %v678_v22 }
 0x33e   :  { %688 = vst.msk [vmem:[#allocation3 + $0x8] sm:$0xff] %vm594_vm5, %v684_v18 }
 0x33f   :  { %687 = vst.msk [vmem:[#allocation3] sm:$0xff] %vm594_vm5, %v679_v23 }
 0x343   :  { %v861_v24 = vpop.f32.mrb[2].mxu1 }
 0x344   :  { %v5415_v25 = vpop.f32.mrb[3].mxu1  ;;  %v862_v30 = vadd.f32 %v7586_v29, %v861_v24 }
 0x346   :  { %v866_v31 = vld [vmem:[#allocation3] sm:$0x3]  ;;  %v1088_v18 = vld [vmem:[#allocation3 + $0x2] sm:$0x3] }
 0x347   :  { %v896_v32 = vadd.f32 %v866_v31, %v862_v30 }
 0x349   :  { %v5086_v33 = vmul.f32 -1.442695, %v896_v32 }
 0x363   :  { %v585_v1 = vpop.f32.mrb[0].mxu0 }
 0x364   :  { %v586_v2 = vadd.f32 %v5075_v63, %v585_v1  ;;  %v587_v3 = vpop.f32.mrb[1].mxu0 }
 0x366   :  { %595 = vst.msk [vmem:[#allocation2] sm:$0xff] %vm594_vm5, %v586_v2 }
 0x367   :  { %v590_v4 = vpop.f32.mrb[2].mxu0 }
 0x368   :  { %v591_v5 = vadd.f32 %v5075_v63, %v590_v4  ;;  %v592_v6 = vpop.f32.mrb[3].mxu0 }
 0x36a   :  { %596 = vst.msk [vmem:[#allocation2 + $0x8] sm:$0xff] %vm594_vm5, %v591_v5 }
 0x36b   :  { %v782_v8 = vpop.f32.mrb[4].mxu0 }
 0x36c   :  { %v783_v9 = vadd.f32 %v7577_v7, %v782_v8  ;;  %v5404_v10 = vpop.f32.mrb[5].mxu0 }
 0x36d   :  { %v865_v11 = vld [vmem:[#allocation2] sm:$0x3]  ;;  %v1086_v3 = vld [vmem:[#allocation2 + $0x2] sm:$0x3] }
 0x36e   :  { %875 = vrot.lane.b32.xlu0 %v783_v9, %s7192_s21  ;;  %v867_v12 = vadd.f32 %v865_v11, %v783_v9 }
 0x370   :  { %v5085_v13 = vmul.f32 -1.442695, %v867_v12 }
 0x372   :  { %6228 = vpow2.f32 %v5085_v13 }
 0x37c   :  { %v6229_v14 = vpop.eup %6228 }
 0x37d   :  { %v871_v15 = vadd.f32 1.0, %v6229_v14 }
 0x37f   :  { %6230 = vrcp.f32 %v871_v15 }
 0x389   :  { %v6231_v19 = vpop.eup %6230 }
 0x38a   :  { %v885_v37 = vsub.f32 1.0, %v6231_v19 }
 0x3e0   :  { %v876_v20 = vpop.permute.xlu0 %875 }
 0x3e1   :  { %v878_v21 = vmul.f32 %v6231_v19, %v876_v20 }
 0x3e3   :  { %880 = vrot.lane.b32.xlu0 %v878_v21, %s7192_s21 }
 0x455   :  { %v881_v26 = vpop.permute.xlu0 %880 }
 0x456   :  { %v883_v27 = vadd.f32 %v881_v26, %v865_v11 }
 0x458   :  { %6232 = vtanh.f32 %v883_v27 }
 0x459   :  { %6234 = vpow2.f32 %v5086_v33 }
 0x462   :  { %v6233_v28 = vpop.eup %6232 }
 0x463   :  { %887 = vrot.lane.b32.xlu1 %v6233_v28, %s7193_s12  ;;  %v6235_v34 = vpop.eup %6234 }
 0x464   :  { %v900_v35 = vadd.f32 1.0, %v6235_v34 }
 0x466   :  { %6236 = vrcp.f32 %v900_v35 }
 0x467   :  { %891 = vrot.lane.b32.xlu1 %v7543_v53, %s7156_s15 }
 0x46b   :  { %904 = vrot.lane.b32.xlu1 %v862_v30, %s7192_s21 }
 0x470   :  { %v6237_v43 = vpop.eup %6236 }
 0x471   :  { %v914_v54 = vsub.f32 1.0, %v6237_v43 }
 0x4d5   :  { %v888_v36 = vpop.permute.xlu1 %887 }
 0x4d6   :  { %v890_v39 = vmul.f32 %v888_v36, %v885_v37 }
 0x4d9   :  { %v892_v38 = vpop.permute.xlu1 %891 }
 0x4da   :  { %v894_v40 = vmul.f32 %v6231_v19, %v892_v38 }
 0x4dc   :  { %v895_v41 = vadd.f32 %v894_v40, %v890_v39 }
 0x4dd   :  { %v905_v42 = vpop.permute.xlu1 %904 }
 0x4de   :  { %926 = vrot.lane.b32.xlu0 %v895_v41, %s7193_s12  ;;  %v907_v45 = vmul.f32 %v6237_v43, %v905_v42 }
 0x4e2   :  { %909 = vrot.lane.b32.xlu0 %v907_v45, %s7192_s21 }
 0x4e6   :  { %920 = vrot.lane.b32.xlu0 %v7563_v62, %s7156_s15 }
 0x550   :  { %v927_v46 = vpop.permute.xlu0 %926 }
 0x551   :  { %929 = vst.msk [vmem:[#allocation6] sm:$0x3] %vm690_vm1, %v927_v46  ;;  %935 = vst.msk [vmem:[#allocation4] sm:$0x3] %vm690_vm1, %v927_v46 }
 0x554   :  { %v910_v48 = vpop.permute.xlu0 %909 }
 0x555   :  { %v912_v49 = vadd.f32 %v910_v48, %v866_v31 }
 0x557   :  { %6238 = vtanh.f32 %v912_v49 }
 0x558   :  { %v937_v50 = vld [vmem:[#allocation6] sm:$0x3]  ;;  %v921_v53 = vpop.permute.xlu0 %920 }
 0x559   :  { %5425 = vmatmul.mubr.msk.f32.vlgmr.msra.gmra.mrb[4].mxu1 %vm712_vm3, %v937_v50  ;;  %v923_v56 = vmul.f32 %v6237_v43, %v921_v53 }
 0x55a   :  { %5906 = vmatpush3.bf16.msra.mxu1 %v7550_v57  ;;  %5435 = vmatprep.mubr.msk.f32.mxu1 %vm7191_vm2, %v7190_v44 }
 0x55b   :  { %5907 = vmatprep.subr.bf16.mxu1 %v7189_v0 }
 0x55e   :  { %5909 = vmatpush3.bf16.msra.mxu1 %v7555_v61 }
 0x55f   :  { %5910 = vmatprep.subr.bf16.mxu1 %v7189_v0 }
 0x561   :  { %v6239_v51 = vpop.eup %6238 }
 0x562   :  { %916 = vrot.lane.b32.xlu1 %v6239_v51, %s7193_s12  ;;  %v1310_v51 = vld [vmem:[#allocation2 + $0x4] sm:$0x3] }
 0x5d4   :  { %v917_v55 = vpop.permute.xlu1 %916 }
 0x5d5   :  { %v919_v58 = vmul.f32 %v917_v55, %v914_v54 }
 0x5d7   :  { %v924_v59 = vadd.f32 %v923_v56, %v919_v58 }
 0x5d9   :  { %931 = vrot.lane.b32.xlu1 %v924_v59, %s7193_s12 }
 0x62c   :  { %v1008_v60 = vpop.f32.mrb[4].mxu1 }
 0x62d   :  { %v1009_v62 = vadd.f32 %v7577_v7, %v1008_v60  ;;  %v5426_v63 = vpop.f32.mrb[5].mxu1 }
 0x62f   :  { %1097 = vrot.lane.b32.xlu0 %v1009_v62, %s7192_s21  ;;  %v1089_v4 = vadd.f32 %v1086_v3, %v1009_v62 }
 0x631   :  { %v5089_v5 = vmul.f32 -1.442695, %v1089_v4 }
 0x633   :  { %6240 = vpow2.f32 %v5089_v5  ;;  %v1312_v5 = vld [vmem:[#allocation3 + $0x4] sm:$0x3] }
 0x63d   :  { %v6241_v6 = vpop.eup %6240 }
 0x63e   :  { %v1093_v8 = vadd.f32 1.0, %v6241_v6 }
 0x640   :  { %6242 = vrcp.f32 %v1093_v8 }
 0x64a   :  { %v6243_v9 = vpop.eup %6242 }
 0x64b   :  { %v932_v1 = vpop.permute.xlu1 %931  ;;  %v1107_v24 = vsub.f32 1.0, %v6243_v9 }
 0x64c   :  { %934 = vst.msk [vmem:[#allocation7] sm:$0x3] %vm690_vm1, %v932_v1  ;;  %936 = vst.msk [vmem:[#allocation5] sm:$0x3] %vm690_vm1, %v932_v1 }
 0x653   :  { %v938_v2 = vld [vmem:[#allocation7] sm:$0x3] }
 0x654   :  { %5436 = vmatmul.mubr.msk.f32.vlgmr.msra.gmra.mrb[6].mxu1 %vm712_vm3, %v938_v2 }
 0x655   :  { %5912 = vmatpush3.bf16.msra.mxu1 %v7532_v47  ;;  %5446 = vmatprep.mubr.msk.f32.mxu1 %vm7191_vm2, %v7190_v44 }
 0x656   :  { %5913 = vmatprep.subr.bf16.mxu1 %v7189_v0 }
 0x659   :  { %5915 = vmatpush3.bf16.msra.mxu1 %v7537_v52 }
 0x65a   :  { %5916 = vmatprep.subr.bf16.mxu1 %v7189_v0 }
 0x6a1   :  { %v1098_v10 = vpop.permute.xlu0 %1097 }
 0x6a2   :  { %v1100_v11 = vmul.f32 %v6243_v9, %v1098_v10 }
 0x6a4   :  { %1102 = vrot.lane.b32.xlu1 %v1100_v11, %s7192_s21 }
 0x6a8   :  { %1113 = vrot.lane.b32.xlu1 %v937_v50, %s7156_s15 }
 0x716   :  { %v1103_v12 = vpop.permute.xlu1 %1102 }
 0x717   :  { %v1105_v13 = vadd.f32 %v1103_v12, %v1086_v3 }
 0x719   :  { %6244 = vtanh.f32 %v1105_v13 }
 0x71a   :  { %v1114_v23 = vpop.permute.xlu1 %1113 }
 0x71b   :  { %v1116_v26 = vmul.f32 %v6243_v9, %v1114_v23 }
 0x723   :  { %v6245_v14 = vpop.eup %6244 }
 0x724   :  { %1109 = vrot.lane.b32.xlu0 %v6245_v14, %s7193_s12 }
 0x727   :  { %v1081_v15 = vpop.f32.mrb[6].mxu1 }
 0x728   :  { %v1082_v16 = vadd.f32 %v7586_v29, %v1081_v15  ;;  %v5437_v17 = vpop.f32.mrb[7].mxu1 }
 0x72a   :  { %1126 = vrot.lane.b32.xlu1 %v1082_v16, %s7192_s21  ;;  %v1118_v19 = vadd.f32 %v1088_v18, %v1082_v16 }
 0x72c   :  { %v5090_v20 = vmul.f32 -1.442695, %v1118_v19 }
 0x72e   :  { %6246 = vpow2.f32 %v5090_v20 }
 0x738   :  { %v6247_v21 = vpop.eup %6246 }
 0x739   :  { %v1122_v22 = vadd.f32 1.0, %v6247_v21 }
 0x73b   :  { %6248 = vrcp.f32 %v1122_v22 }
 0x745   :  { %v6249_v30 = vpop.eup %6248 }
 0x746   :  { %v1136_v39 = vsub.f32 1.0, %v6249_v30 }
 0x796   :  { %v1110_v25 = vpop.permute.xlu0 %1109 }
 0x797   :  { %v1112_v27 = vmul.f32 %v1110_v25, %v1107_v24 }
 0x799   :  { %v1117_v28 = vadd.f32 %v1116_v26, %v1112_v27 }
 0x79b   :  { %1148 = vrot.lane.b32.xlu0 %v1117_v28, %s7193_s12 }
 0x79c   :  { %v1127_v31 = vpop.permute.xlu1 %1126 }
 0x79d   :  { %v1129_v32 = vmul.f32 %v6249_v30, %v1127_v31 }
 0x79f   :  { %1131 = vrot.lane.b32.xlu0 %v1129_v32, %s7192_s21 }
 0x7a3   :  { %1142 = vrot.lane.b32.xlu0 %v938_v2, %s7156_s15 }
 0x80d   :  { %v1149_v33 = vpop.permute.xlu0 %1148 }
 0x80e   :  { %1151 = vst.msk [vmem:[#allocation6] sm:$0x3] %vm690_vm1, %v1149_v33  ;;  %1158 = vst.msk [vmem:[#allocation4 + $0x2] sm:$0x3] %vm690_vm1, %v1149_v33 }
 0x811   :  { %v1132_v34 = vpop.permute.xlu0 %1131 }
 0x812   :  { %v1134_v35 = vadd.f32 %v1132_v34, %v1088_v18 }
 0x814   :  { %6250 = vtanh.f32 %v1134_v35 }
 0x815   :  { %v1161_v36 = vld [vmem:[#allocation6] sm:$0x3]  ;;  %v1143_v38 = vpop.permute.xlu0 %1142 }
 0x816   :  { %5447 = vmatmul.mubr.msk.f32.vlgmr.msra.gmra.mrb[8].mxu1 %vm712_vm3, %v1161_v36  ;;  %v1145_v41 = vmul.f32 %v6249_v30, %v1143_v38 }
 0x817   :  { %5918 = vmatpush3.bf16.msra.mxu1 %v7550_v57  ;;  %5457 = vmatprep.mubr.msk.f32.mxu1 %vm7191_vm2, %v7190_v44 }
 0x818   :  { %5919 = vmatprep.subr.bf16.mxu1 %v7189_v0 }
 0x81b   :  { %5921 = vmatpush3.bf16.msra.mxu1 %v7555_v61 }
 0x81c   :  { %5922 = vmatprep.subr.bf16.mxu1 %v7189_v0 }
 0x81e   :  { %v6251_v37 = vpop.eup %6250 }
 0x81f   :  { %1138 = vrot.lane.b32.xlu1 %v6251_v37, %s7193_s12  ;;  %v1534_v37 = vld [vmem:[#allocation2 + $0x6] sm:$0x3] }
 0x891   :  { %v1139_v40 = vpop.permute.xlu1 %1138 }
 0x892   :  { %v1141_v42 = vmul.f32 %v1139_v40, %v1136_v39 }
 0x894   :  { %v1146_v43 = vadd.f32 %v1145_v41, %v1141_v42 }
 0x896   :  { %1153 = vrot.lane.b32.xlu1 %v1146_v43, %s7193_s12 }
 0x8e9   :  { %v1232_v45 = vpop.f32.mrb[8].mxu1 }
 0x8ea   :  { %v1233_v46 = vadd.f32 %v7577_v7, %v1232_v45  ;;  %v5448_v48 = vpop.f32.mrb[9].mxu1 }
 0x8ec   :  { %1321 = vrot.lane.b32.xlu0 %v1233_v46, %s7192_s21  ;;  %v1313_v53 = vadd.f32 %v1310_v51, %v1233_v46 }
 0x8ee   :  { %v5093_v54 = vmul.f32 -1.442695, %v1313_v53 }
 0x8f0   :  { %6252 = vpow2.f32 %v5093_v54  ;;  %v1536_v54 = vld [vmem:[#allocation3 + $0x6] sm:$0x3] }
 0x8fa   :  { %v6253_v55 = vpop.eup %6252 }
 0x8fb   :  { %v1317_v56 = vadd.f32 1.0, %v6253_v55 }
 0x8fd   :  { %6254 = vrcp.f32 %v1317_v56 }
 0x907   :  { %v6255_v58 = vpop.eup %6254 }
 0x908   :  { %v1154_v49 = vpop.permute.xlu1 %1153  ;;  %v1331_v12 = vsub.f32 1.0, %v6255_v58 }
 0x909   :  { %1156 = vst.msk [vmem:[#allocation7] sm:$0x3] %vm690_vm1, %v1154_v49  ;;  %1160 = vst.msk [vmem:[#allocation5 + $0x2] sm:$0x3] %vm690_vm1, %v1154_v49 }
 0x910   :  { %v1162_v50 = vld [vmem:[#allocation7] sm:$0x3] }
 0x911   :  { %5458 = vmatmul.mubr.msk.f32.vlgmr.msra.gmra.mrb[10].mxu1 %vm712_vm3, %v1162_v50 }
 0x912   :  { %5924 = vmatpush3.bf16.msra.mxu1 %v7532_v47  ;;  %5468 = vmatprep.mubr.msk.f32.mxu1 %vm7191_vm2, %v7190_v44 }
 0x913   :  { %5925 = vmatprep.subr.bf16.mxu1 %v7189_v0 }
 0x916   :  { %5927 = vmatpush3.bf16.msra.mxu1 %v7537_v52 }
 0x917   :  { %5934 = vmatprep.subr.bf16.mxu1 %v7189_v0 }
 0x95e   :  { %v1322_v59 = vpop.permute.xlu0 %1321 }
 0x95f   :  { %v1324_v60 = vmul.f32 %v6255_v58, %v1322_v59 }
 0x961   :  { %1326 = vrot.lane.b32.xlu1 %v1324_v60, %s7192_s21 }
 0x965   :  { %1337 = vrot.lane.b32.xlu1 %v1161_v36, %s7156_s15 }
 0x9d3   :  { %v1327_v62 = vpop.permute.xlu1 %1326 }
 0x9d4   :  { %v1329_v63 = vadd.f32 %v1327_v62, %v1310_v51 }
 0x9d6   :  { %6256 = vtanh.f32 %v1329_v63 }
 0x9d7   :  { %v1338_v11 = vpop.permute.xlu1 %1337 }
 0x9d8   :  { %v1340_v14 = vmul.f32 %v6255_v58, %v1338_v11 }
 0x9e0   :  { %v6257_v1 = vpop.eup %6256 }
 0x9e1   :  { %1333 = vrot.lane.b32.xlu0 %v6257_v1, %s7193_s12 }
 0x9e4   :  { %v1305_v2 = vpop.f32.mrb[10].mxu1 }
 0x9e5   :  { %v1306_v3 = vadd.f32 %v7586_v29, %v1305_v2  ;;  %v5459_v4 = vpop.f32.mrb[11].mxu1 }
 0x9e7   :  { %1350 = vrot.lane.b32.xlu1 %v1306_v3, %s7192_s21  ;;  %v1342_v6 = vadd.f32 %v1312_v5, %v1306_v3 }
 0x9e9   :  { %v5094_v8 = vmul.f32 -1.442695, %v1342_v6 }
 0x9eb   :  { %6258 = vpow2.f32 %v5094_v8 }
 0x9f5   :  { %v6259_v9 = vpop.eup %6258 }
 0x9f6   :  { %v1346_v10 = vadd.f32 1.0, %v6259_v9 }
 0x9f8   :  { %6260 = vrcp.f32 %v1346_v10 }
 0xa02   :  { %v6261_v17 = vpop.eup %6260 }
 0xa03   :  { %v1360_v26 = vsub.f32 1.0, %v6261_v17 }
 0xa53   :  { %v1334_v13 = vpop.permute.xlu0 %1333 }
 0xa54   :  { %v1336_v15 = vmul.f32 %v1334_v13, %v1331_v12 }
 0xa56   :  { %v1341_v16 = vadd.f32 %v1340_v14, %v1336_v15 }
 0xa58   :  { %1372 = vrot.lane.b32.xlu0 %v1341_v16, %s7193_s12 }
 0xa59   :  { %v1351_v18 = vpop.permute.xlu1 %1350 }
 0xa5a   :  { %v1353_v19 = vmul.f32 %v6261_v17, %v1351_v18 }
 0xa5c   :  { %1355 = vrot.lane.b32.xlu0 %v1353_v19, %s7192_s21 }
 0xa60   :  { %1366 = vrot.lane.b32.xlu0 %v1162_v50, %s7156_s15 }
 0xaca   :  { %v1373_v20 = vpop.permute.xlu0 %1372 }
 0xacb   :  { %1375 = vst.msk [vmem:[#allocation6] sm:$0x3] %vm690_vm1, %v1373_v20  ;;  %1382 = vst.msk [vmem:[#allocation4 + $0x4] sm:$0x3] %vm690_vm1, %v1373_v20 }
 0xace   :  { %v1356_v21 = vpop.permute.xlu0 %1355 }
 0xacf   :  { %v1358_v22 = vadd.f32 %v1356_v21, %v1312_v5 }
 0xad1   :  { %6262 = vtanh.f32 %v1358_v22 }
 0xad2   :  { %v1385_v23 = vld [vmem:[#allocation6] sm:$0x3]  ;;  %v1367_v25 = vpop.permute.xlu0 %1366 }
 0xad3   :  { %5469 = vmatmul.mubr.msk.f32.vlgmr.msra.gmra.mrb[12].mxu1 %vm712_vm3, %v1385_v23  ;;  %v1369_v28 = vmul.f32 %v6261_v17, %v1367_v25 }
 0xad4   :  { %5936 = vmatpush3.bf16.msra.mxu1 %v7532_v47  ;;  %5490 = vmatprep.mubr.msk.f32.mxu1 %vm7191_vm2, %v7190_v44 }
 0xad5   :  { %5937 = vmatprep.subr.bf16.mxu1 %v7189_v0 }
 0xad8   :  { %5939 = vmatpush3.bf16.msra.mxu1 %v7537_v52 }
 0xad9   :  { %5946 = vmatprep.subr.bf16.mxu1 %v7189_v0 }
 0xadb   :  { %v6263_v24 = vpop.eup %6262 }
 0xadc   :  { %1362 = vrot.lane.b32.xlu1 %v6263_v24, %s7193_s12  ;;  %v1758_v24 = vld [vmem:[#allocation2 + $0x8] sm:$0x3] }
 0xb4e   :  { %v1363_v27 = vpop.permute.xlu1 %1362 }
 0xb4f   :  { %v1365_v30 = vmul.f32 %v1363_v27, %v1360_v26 }
 0xb51   :  { %v1370_v31 = vadd.f32 %v1369_v28, %v1365_v30 }
 0xb53   :  { %1377 = vrot.lane.b32.xlu1 %v1370_v31, %s7193_s12 }
 0xba6   :  { %v1456_v32 = vpop.f32.mrb[12].mxu1 }
 0xba7   :  { %v1457_v33 = vadd.f32 %v7577_v7, %v1456_v32  ;;  %v5470_v34 = vpop.f32.mrb[13].mxu1 }
 0xba9   :  { %1545 = vrot.lane.b32.xlu0 %v1457_v33, %s7192_s21  ;;  %v1537_v38 = vadd.f32 %v1534_v37, %v1457_v33 }
 0xbab   :  { %v5097_v39 = vmul.f32 -1.442695, %v1537_v38 }
 0xbad   :  { %6264 = vpow2.f32 %v5097_v39  ;;  %v1760_v39 = vld [vmem:[#allocation3 + $0x8] sm:$0x3] }
 0xbb7   :  { %v6265_v40 = vpop.eup %6264 }
 0xbb8   :  { %v1541_v41 = vadd.f32 1.0, %v6265_v40 }
 0xbba   :  { %6266 = vrcp.f32 %v1541_v41 }
 0xbc4   :  { %v6267_v42 = vpop.eup %6266 }
 0xbc5   :  { %v1378_v35 = vpop.permute.xlu1 %1377  ;;  %v1555_v62 = vsub.f32 1.0, %v6267_v42 }
 0xbc6   :  { %1380 = vst.msk [vmem:[#allocation7] sm:$0x3] %vm690_vm1, %v1378_v35  ;;  %1384 = vst.msk [vmem:[#allocation5 + $0x4] sm:$0x3] %vm690_vm1, %v1378_v35 }
 0xbcd   :  { %v1386_v36 = vld [vmem:[#allocation7] sm:$0x3] }
 0xbce   :  { %5480 = vmatmul.mubr.msk.f32.vlgmr.msra.gmra.mrb[6].mxu0 %vm712_vm3, %v1386_v36 }
 0xbcf   :  { %5942 = vmatpush3.bf16.msra.mxu0 %v7550_v57  ;;  %5501 = vmatprep.mubr.msk.f32.mxu0 %vm7191_vm2, %v7190_v44 }
 0xbd0   :  { %5943 = vmatprep.subr.bf16.mxu0 %v7189_v0 }
 0xbd3   :  { %5945 = vmatpush3.bf16.msra.mxu0 %v7555_v61 }
 0xbd4   :  { %5952 = vmatprep.subr.bf16.mxu0 %v7189_v0 }
 0xc1b   :  { %v1546_v43 = vpop.permute.xlu0 %1545 }
 0xc1c   :  { %v1548_v45 = vmul.f32 %v6267_v42, %v1546_v43 }
 0xc1e   :  { %1550 = vrot.lane.b32.xlu1 %v1548_v45, %s7192_s21 }
 0xc22   :  { %1561 = vrot.lane.b32.xlu1 %v1385_v23, %s7156_s15 }
 0xc90   :  { %v1551_v46 = vpop.permute.xlu1 %1550 }
 0xc91   :  { %v1553_v48 = vadd.f32 %v1551_v46, %v1534_v37 }
 0xc93   :  { %6268 = vtanh.f32 %v1553_v48 }
 0xc94   :  { %v1562_v60 = vpop.permute.xlu1 %1561 }
 0xc95   :  { %v1564_v1 = vmul.f32 %v6267_v42, %v1562_v60 }
 0xc9d   :  { %v6269_v49 = vpop.eup %6268 }
 0xc9e   :  { %1557 = vrot.lane.b32.xlu0 %v6269_v49, %s7193_s12 }
 0xca1   :  { %v1529_v50 = vpop.f32.mrb[6].mxu0 }
 0xca2   :  { %v1530_v51 = vadd.f32 %v7586_v29, %v1529_v50  ;;  %v5481_v53 = vpop.f32.mrb[7].mxu0 }
 0xca4   :  { %1574 = vrot.lane.b32.xlu1 %v1530_v51, %s7192_s21  ;;  %v1566_v55 = vadd.f32 %v1536_v54, %v1530_v51 }
 0xca6   :  { %v5098_v56 = vmul.f32 -1.442695, %v1566_v55 }
 0xca8   :  { %6270 = vpow2.f32 %v5098_v56 }
 0xcb2   :  { %v6271_v58 = vpop.eup %6270 }
 0xcb3   :  { %v1570_v59 = vadd.f32 1.0, %v6271_v58 }
 0xcb5   :  { %6272 = vrcp.f32 %v1570_v59 }
 0xcbf   :  { %v6273_v4 = vpop.eup %6272 }
 0xcc0   :  { %v1584_v14 = vsub.f32 1.0, %v6273_v4 }
 0xd10   :  { %v1558_v63 = vpop.permute.xlu0 %1557 }
 0xd11   :  { %v1560_v2 = vmul.f32 %v1558_v63, %v1555_v62 }
 0xd13   :  { %v1565_v3 = vadd.f32 %v1564_v1, %v1560_v2 }
 0xd15   :  { %1596 = vrot.lane.b32.xlu0 %v1565_v3, %s7193_s12 }
 0xd16   :  { %v1575_v5 = vpop.permute.xlu1 %1574 }
 0xd17   :  { %v1577_v6 = vmul.f32 %v6273_v4, %v1575_v5 }
 0xd19   :  { %1579 = vrot.lane.b32.xlu0 %v1577_v6, %s7192_s21 }
 0xd1d   :  { %1590 = vrot.lane.b32.xlu0 %v1386_v36, %s7156_s15 }
 0xd87   :  { %v1597_v8 = vpop.permute.xlu0 %1596 }
 0xd88   :  { %1599 = vst.msk [vmem:[#allocation6] sm:$0x3] %vm690_vm1, %v1597_v8  ;;  %1606 = vst.msk [vmem:[#allocation4 + $0x6] sm:$0x3] %vm690_vm1, %v1597_v8 }
 0xd8b   :  { %v1580_v9 = vpop.permute.xlu0 %1579 }
 0xd8c   :  { %v1582_v10 = vadd.f32 %v1580_v9, %v1536_v54 }
 0xd8e   :  { %6274 = vtanh.f32 %v1582_v10 }
 0xd8f   :  { %v1609_v11 = vld [vmem:[#allocation6] sm:$0x3]  ;;  %v1591_v13 = vpop.permute.xlu0 %1590 }
 0xd90   :  { %5491 = vmatmul.mubr.msk.f32.vlgmr.msra.gmra.mrb[14].mxu1 %vm712_vm3, %v1609_v11  ;;  %v1593_v16 = vmul.f32 %v6273_v4, %v1591_v13 }
 0xd91   :  { %5948 = vmatpush3.bf16.msra.mxu1 %v7532_v47  ;;  %5512 = vmatprep.mubr.msk.f32.mxu1 %vm7191_vm2, %v7190_v44 }
 0xd92   :  { %5949 = vmatprep.subr.bf16.mxu1 %v7189_v0 }
 0xd95   :  { %5951 = vmatpush3.bf16.msra.mxu1 %v7537_v52 }
 0xd96   :  { %5958 = vmatprep.subr.bf16.mxu1 %v7189_v0 }
 0xd98   :  { %v6275_v12 = vpop.eup %6274 }
 0xd99   :  { %1586 = vrot.lane.b32.xlu1 %v6275_v12, %s7193_s12  ;;  %v1982_v12 = vld [vmem:[#allocation2 + $0xa] sm:$0x3] }
 0xe0b   :  { %v1587_v15 = vpop.permute.xlu1 %1586 }
 0xe0c   :  { %v1589_v17 = vmul.f32 %v1587_v15, %v1584_v14 }
 0xe0e   :  { %v1594_v18 = vadd.f32 %v1593_v16, %v1589_v17 }
 0xe10   :  { %1601 = vrot.lane.b32.xlu1 %v1594_v18, %s7193_s12 }
 0xe63   :  { %v1680_v19 = vpop.f32.mrb[14].mxu1 }
 0xe64   :  { %v1681_v20 = vadd.f32 %v7577_v7, %v1680_v19  ;;  %v5492_v21 = vpop.f32.mrb[15].mxu1 }
 0xe66   :  { %1769 = vrot.lane.b32.xlu0 %v1681_v20, %s7192_s21  ;;  %v1761_v25 = vadd.f32 %v1758_v24, %v1681_v20 }
 0xe68   :  { %v5101_v26 = vmul.f32 -1.442695, %v1761_v25 }
 0xe6a   :  { %6276 = vpow2.f32 %v5101_v26  ;;  %v1984_v26 = vld [vmem:[#allocation3 + $0xa] sm:$0x3] }
 0xe74   :  { %v6277_v27 = vpop.eup %6276 }
 0xe75   :  { %v1765_v28 = vadd.f32 1.0, %v6277_v27 }
 0xe77   :  { %6278 = vrcp.f32 %v1765_v28 }
 0xe81   :  { %v6279_v30 = vpop.eup %6278 }
 0xe82   :  { %v1602_v22 = vpop.permute.xlu1 %1601  ;;  %v1779_v46 = vsub.f32 1.0, %v6279_v30 }
 0xe83   :  { %1604 = vst.msk [vmem:[#allocation7] sm:$0x3] %vm690_vm1, %v1602_v22  ;;  %1608 = vst.msk [vmem:[#allocation5 + $0x6] sm:$0x3] %vm690_vm1, %v1602_v22 }
 0xe8a   :  { %v1610_v23 = vld [vmem:[#allocation7] sm:$0x3] }
 0xe8b   :  { %5502 = vmatmul.mubr.msk.f32.vlgmr.msra.gmra.mrb[8].mxu0 %vm712_vm3, %v1610_v23 }
 0xe8c   :  { %5954 = vmatpush3.bf16.msra.mxu0 %v7550_v57  ;;  %5523 = vmatprep.mubr.msk.f32.mxu0 %vm7191_vm2, %v7190_v44 }
 0xe8d   :  { %5955 = vmatprep.subr.bf16.mxu0 %v7189_v0 }
 0xe90   :  { %5957 = vmatpush3.bf16.msra.mxu0 %v7555_v61 }
 0xe91   :  { %5964 = vmatprep.subr.bf16.mxu0 %v7189_v0 }
 0xed8   :  { %v1770_v31 = vpop.permute.xlu0 %1769 }
 0xed9   :  { %v1772_v32 = vmul.f32 %v6279_v30, %v1770_v31 }
 0xedb   :  { %1774 = vrot.lane.b32.xlu1 %v1772_v32, %s7192_s21 }
 0xedf   :  { %1785 = vrot.lane.b32.xlu1 %v1609_v11, %s7156_s15 }
 0xf4d   :  { %v1775_v33 = vpop.permute.xlu1 %1774 }
 0xf4e   :  { %v1777_v34 = vadd.f32 %v1775_v33, %v1758_v24 }
 0xf50   :  { %6280 = vtanh.f32 %v1777_v34 }
 0xf51   :  { %v1786_v45 = vpop.permute.xlu1 %1785 }
 0xf52   :  { %v1788_v49 = vmul.f32 %v6279_v30, %v1786_v45 }
 0xf5a   :  { %v6281_v35 = vpop.eup %6280 }
 0xf5b   :  { %1781 = vrot.lane.b32.xlu0 %v6281_v35, %s7193_s12 }
 0xf5e   :  { %v1753_v36 = vpop.f32.mrb[8].mxu0 }
 0xf5f   :  { %v1754_v37 = vadd.f32 %v7586_v29, %v1753_v36  ;;  %v5503_v38 = vpop.f32.mrb[9].mxu0 }
 0xf61   :  { %1798 = vrot.lane.b32.xlu1 %v1754_v37, %s7192_s21  ;;  %v1790_v40 = vadd.f32 %v1760_v39, %v1754_v37 }
 0xf63   :  { %v5102_v41 = vmul.f32 -1.442695, %v1790_v40 }
 0xf65   :  { %6282 = vpow2.f32 %v5102_v41 }
 0xf6f   :  { %v6283_v42 = vpop.eup %6282 }
 0xf70   :  { %v1794_v43 = vadd.f32 1.0, %v6283_v42 }
 0xf72   :  { %6284 = vrcp.f32 %v1794_v43 }
 0xf7c   :  { %v6285_v53 = vpop.eup %6284 }
 0xf7d   :  { %v1808_v1 = vsub.f32 1.0, %v6285_v53 }
 0xfcd   :  { %v1782_v48 = vpop.permute.xlu0 %1781 }
 0xfce   :  { %v1784_v50 = vmul.f32 %v1782_v48, %v1779_v46 }
 0xfd0   :  { %v1789_v51 = vadd.f32 %v1788_v49, %v1784_v50 }
 0xfd2   :  { %1820 = vrot.lane.b32.xlu0 %v1789_v51, %s7193_s12 }
 0xfd3   :  { %v1799_v54 = vpop.permute.xlu1 %1798 }
 0xfd4   :  { %v1801_v55 = vmul.f32 %v6285_v53, %v1799_v54 }
 0xfd6   :  { %1803 = vrot.lane.b32.xlu0 %v1801_v55, %s7192_s21 }
 0xfda   :  { %1814 = vrot.lane.b32.xlu0 %v1610_v23, %s7156_s15 }
0x1044   :  { %v1821_v56 = vpop.permute.xlu0 %1820 }
0x1045   :  { %1823 = vst.msk [vmem:[#allocation6] sm:$0x3] %vm690_vm1, %v1821_v56  ;;  %1830 = vst.msk [vmem:[#allocation4 + $0x8] sm:$0x3] %vm690_vm1, %v1821_v56 }
0x1048   :  { %v1804_v58 = vpop.permute.xlu0 %1803 }
0x1049   :  { %v1806_v59 = vadd.f32 %v1804_v58, %v1760_v39 }
0x104b   :  { %6286 = vtanh.f32 %v1806_v59 }
0x104c   :  { %v1833_v60 = vld [vmem:[#allocation6] sm:$0x3]  ;;  %v1815_v63 = vpop.permute.xlu0 %1814 }
0x104d   :  { %5513 = vmatmul.mubr.msk.f32.vlgmr.msra.gmra.mrb[16].mxu1 %vm712_vm3, %v1833_v60  ;;  %v1817_v3 = vmul.f32 %v6285_v53, %v1815_v63 }
0x104e   :  { %5960 = vmatpush3.bf16.msra.mxu1 %v7532_v47  ;;  %5534 = vmatprep.mubr.msk.f32.mxu1 %vm7191_vm2, %v7190_v44 }
0x104f   :  { %5961 = vmatprep.subr.bf16.mxu1 %v7189_v0 }
0x1052   :  { %5963 = vmatpush3.bf16.msra.mxu1 %v7537_v52 }
0x1053   :  { %5970 = vmatprep.subr.bf16.mxu1 %v7189_v0 }
0x1055   :  { %v6287_v62 = vpop.eup %6286 }
0x1056   :  { %1810 = vrot.lane.b32.xlu1 %v6287_v62, %s7193_s12 }
0x10c8   :  { %v1811_v2 = vpop.permute.xlu1 %1810 }
0x10c9   :  { %v1813_v4 = vmul.f32 %v1811_v2, %v1808_v1 }
0x10cb   :  { %v1818_v5 = vadd.f32 %v1817_v3, %v1813_v4 }
0x10cd   :  { %1825 = vrot.lane.b32.xlu1 %v1818_v5, %s7193_s12 }
0x1120   :  { %v1904_v6 = vpop.f32.mrb[16].mxu1 }
0x1121   :  { %v1905_v8 = vadd.f32 %v7577_v7, %v1904_v6  ;;  %v5514_v9 = vpop.f32.mrb[17].mxu1 }
0x1122   :  { %v2208_v9 = vld [vmem:[#allocation3 + $0xc] sm:$0x3] }
0x1123   :  { %1993 = vrot.lane.b32.xlu0 %v1905_v8, %s7192_s21  ;;  %v1985_v13 = vadd.f32 %v1982_v12, %v1905_v8 }
0x1125   :  { %v5105_v14 = vmul.f32 -1.442695, %v1985_v13 }
0x1127   :  { %6288 = vpow2.f32 %v5105_v14 }
0x1131   :  { %v6289_v15 = vpop.eup %6288 }
0x1132   :  { %v1989_v16 = vadd.f32 1.0, %v6289_v15 }
0x1134   :  { %6290 = vrcp.f32 %v1989_v16 }
0x113e   :  { %v6291_v17 = vpop.eup %6290 }
0x113f   :  { %v1826_v10 = vpop.permute.xlu1 %1825  ;;  %v2003_v33 = vsub.f32 1.0, %v6291_v17 }
0x1140   :  { %1828 = vst.msk [vmem:[#allocation7] sm:$0x3] %vm690_vm1, %v1826_v10  ;;  %1832 = vst.msk [vmem:[#allocation5 + $0x8] sm:$0x3] %vm690_vm1, %v1826_v10 }
0x1147   :  { %v1834_v11 = vld [vmem:[#allocation7] sm:$0x3] }
0x1148   :  { %5524 = vmatmul.mubr.msk.f32.vlgmr.msra.gmra.mrb[10].mxu0 %vm712_vm3, %v1834_v11 }
0x1149   :  { %5966 = vmatpush3.bf16.msra.mxu0 %v7550_v57  ;;  %5545 = vmatprep.mubr.msk.f32.mxu0 %vm7191_vm2, %v7190_v44 }
0x114a   :  { %5967 = vmatprep.subr.bf16.mxu0 %v7189_v0 }
0x114d   :  { %5969 = vmatpush3.bf16.msra.mxu0 %v7555_v61 }
0x114e   :  { %5976 = vmatprep.subr.bf16.mxu0 %v7189_v0 }
0x1195   :  { %v1994_v18 = vpop.permute.xlu0 %1993 }
0x1196   :  { %v1996_v19 = vmul.f32 %v6291_v17, %v1994_v18 }
0x1198   :  { %1998 = vrot.lane.b32.xlu1 %v1996_v19, %s7192_s21 }
0x119c   :  { %2009 = vrot.lane.b32.xlu1 %v1833_v60, %s7156_s15 }
0x120a   :  { %v1999_v20 = vpop.permute.xlu1 %1998 }
0x120b   :  { %v2001_v21 = vadd.f32 %v1999_v20, %v1982_v12 }
0x120d   :  { %6292 = vtanh.f32 %v2001_v21 }
0x120e   :  { %v2010_v32 = vpop.permute.xlu1 %2009 }
0x120f   :  { %v2012_v35 = vmul.f32 %v6291_v17, %v2010_v32 }
0x1217   :  { %v6293_v22 = vpop.eup %6292 }
0x1218   :  { %2005 = vrot.lane.b32.xlu0 %v6293_v22, %s7193_s12 }
0x121b   :  { %v1977_v23 = vpop.f32.mrb[10].mxu0 }
0x121c   :  { %v1978_v24 = vadd.f32 %v7586_v29, %v1977_v23  ;;  %v5525_v25 = vpop.f32.mrb[11].mxu0 }
0x121e   :  { %2022 = vrot.lane.b32.xlu1 %v1978_v24, %s7192_s21  ;;  %v2014_v27 = vadd.f32 %v1984_v26, %v1978_v24 }
0x1220   :  { %v5106_v28 = vmul.f32 -1.442695, %v2014_v27 }
0x1222   :  { %6294 = vpow2.f32 %v5106_v28 }
0x122c   :  { %v6295_v30 = vpop.eup %6294 }
0x122d   :  { %v2018_v31 = vadd.f32 1.0, %v6295_v30 }
0x122f   :  { %6296 = vrcp.f32 %v2018_v31 }
0x1239   :  { %v6297_v38 = vpop.eup %6296 }
0x123a   :  { %v2032_v49 = vsub.f32 1.0, %v6297_v38 }
0x128a   :  { %v2006_v34 = vpop.permute.xlu0 %2005 }
0x128b   :  { %v2008_v36 = vmul.f32 %v2006_v34, %v2003_v33 }
0x128d   :  { %v2013_v37 = vadd.f32 %v2012_v35, %v2008_v36  ;;  %v6428_v36 = vld [vmem:[#allocation17] ss:$0 sm:$0xff] }
0x128f   :  { %2044 = vrot.lane.b32.xlu0 %v2013_v37, %s7193_s12 }
0x1290   :  { %v2023_v39 = vpop.permute.xlu1 %2022 }
0x1291   :  { %v2025_v40 = vmul.f32 %v6297_v38, %v2023_v39 }
0x1293   :  { %2027 = vrot.lane.b32.xlu0 %v2025_v40, %s7192_s21 }
0x1297   :  { %2038 = vrot.lane.b32.xlu0 %v1834_v11, %s7156_s15 }
0x1301   :  { %v2045_v41 = vpop.permute.xlu0 %2044 }
0x1302   :  { %2047 = vst.msk [vmem:[#allocation6] sm:$0x3] %vm690_vm1, %v2045_v41  ;;  %2054 = vst.msk [vmem:[#allocation4 + $0xa] sm:$0x3] %vm690_vm1, %v2045_v41  ;;  %v2509_v41 = vld [vmem:[#allocation5] sm:$0xff] }
0x1305   :  { %v2028_v42 = vpop.permute.xlu0 %2027 }
0x1306   :  { %v2030_v43 = vadd.f32 %v2028_v42, %v1984_v26  ;;  %v2507_v26 = vld [vmem:[#allocation4] sm:$0xff]  ;;  %v2430_v42 = vld [vmem:[#allocation2 + $0xe] sm:$0x3] }
0x1308   :  { %6298 = vtanh.f32 %v2030_v43 }
0x1309   :  { %v2057_v45 = vld [vmem:[#allocation6] sm:$0x3]  ;;  %v2039_v48 = vpop.permute.xlu0 %2038 }
0x130a   :  { %5535 = vmatmul.mubr.msk.f32.vlgmr.msra.gmra.mrb[18].mxu1 %vm712_vm3, %v2057_v45  ;;  %v2041_v51 = vmul.f32 %v6297_v38, %v2039_v48 }
0x130b   :  { %5972 = vmatpush3.bf16.msra.mxu1 %v7532_v47  ;;  %5556 = vmatprep.mubr.msk.f32.mxu1 %vm7191_vm2, %v7190_v44 }
0x130c   :  { %5973 = vmatprep.subr.bf16.mxu1 %v7189_v0 }
0x130f   :  { %5975 = vmatpush3.bf16.msra.mxu1 %v7537_v52 }
0x1312   :  { %v6299_v46 = vpop.eup %6298 }
0x1313   :  { %2034 = vrot.lane.b32.xlu1 %v6299_v46, %s7193_s12 }
0x1385   :  { %v2035_v50 = vpop.permute.xlu1 %2034 }
0x1386   :  { %v2037_v53 = vmul.f32 %v2035_v50, %v2032_v49 }
0x1388   :  { %v2042_v54 = vadd.f32 %v2041_v51, %v2037_v53 }
0x138a   :  { %2049 = vrot.lane.b32.xlu1 %v2042_v54, %s7193_s12 }
0x13dd   :  { %v2128_v55 = vpop.f32.mrb[18].mxu1 }
0x13de   :  { %v2129_v47 = vadd.f32 %v7577_v7, %v2128_v55  ;;  %v5536_v56 = vpop.f32.mrb[19].mxu1  ;;  %v2206_v7 = vld [vmem:[#allocation2 + $0xc] sm:$0x3] }
0x13df   :  { %v6429_v56 = vld [vmem:[#allocation29] ss:$0 sm:$0xff] }
0x13e0   :  { %2217 = vrot.lane.b32.xlu0 %v2129_v47, %s7192_s21  ;;  %v2209_v59 = vadd.f32 %v2206_v7, %v2129_v47 }
0x13e2   :  { %v5109_v60 = vmul.f32 -1.442695, %v2209_v59 }
0x13e4   :  { %6300 = vpow2.f32 %v5109_v60 }
0x13ee   :  { %v6301_v62 = vpop.eup %6300 }
0x13ef   :  { %v2213_v63 = vadd.f32 1.0, %v6301_v62 }
0x13f1   :  { %6302 = vrcp.f32 %v2213_v63  ;;  %v2511_v63 = vld [vmem:[#allocation19] sm:$0xff] }
0x13fb   :  { %v6303_v1 = vpop.eup %6302 }
0x13fc   :  { %v2050_v58 = vpop.permute.xlu1 %2049  ;;  %v2227_v15 = vsub.f32 1.0, %v6303_v1 }
0x13fd   :  { %2052 = vst.msk [vmem:[#allocation7] sm:$0x3] %vm690_vm1, %v2050_v58  ;;  %2056 = vst.msk [vmem:[#allocation5 + $0xa] sm:$0x3] %vm690_vm1, %v2050_v58 }
0x1404   :  { %v2058_v52 = vld [vmem:[#allocation7] sm:$0x3] }
0x1405   :  { %5546 = vmatmul.mubr.msk.f32.vlgmr.msra.gmra.mrb[12].mxu0 %vm712_vm3, %v2058_v52 }
0x1406   :  { %5978 = vmatpush3.bf16.msra.mxu0 %v7550_v57  ;;  %5567 = vmatprep.mubr.msk.f32.mxu0 %vm7191_vm2, %v7190_v44 }
0x1407   :  { %5979 = vmatprep.subr.bf16.mxu0 %v7189_v0 }
0x140a   :  { %5981 = vmatpush3.bf16.msra.mxu0 %v7555_v61 }
0x1452   :  { %v2218_v2 = vpop.permute.xlu0 %2217 }
0x1453   :  { %v2220_v3 = vmul.f32 %v6303_v1, %v2218_v2 }
0x1455   :  { %2222 = vrot.lane.b32.xlu1 %v2220_v3, %s7192_s21 }
0x1459   :  { %2233 = vrot.lane.b32.xlu1 %v2057_v45, %s7156_s15 }
0x14c7   :  { %v2223_v57 = vpop.permute.xlu1 %2222 }
0x14c8   :  { %v2225_v4 = vadd.f32 %v2223_v57, %v2206_v7  ;;  %v2432_v7 = vld [vmem:[#allocation3 + $0xe] sm:$0x3]  ;;  %v2513_v57 = vld [vmem:[#allocation19 + $0x10] sm:$0xff] }
0x14ca   :  { %6304 = vtanh.f32 %v2225_v4  ;;  %v2514_v4 = vld [vmem:[#allocation19 + $0x18] sm:$0xff] }
0x14cb   :  { %v2234_v14 = vpop.permute.xlu1 %2233 }
0x14cc   :  { %v2236_v17 = vmul.f32 %v6303_v1, %v2234_v14  ;;  %v2512_v1 = vld [vmem:[#allocation19 + $0x8] sm:$0xff] }
0x14cd   :  { %v5982_v2 = vpack.c.bf16 %v2512_v1, %v2511_v63 }
0x14cf   :  { %5983 = vmatprep.subr.bf16.mxu1 %v5982_v2 }
0x14d4   :  { %v6305_v5 = vpop.eup %6304 }
0x14d5   :  { %2229 = vrot.lane.b32.xlu0 %v6305_v5, %s7193_s12  ;;  %v5986_v5 = vpack.c.bf16 %v2514_v4, %v2513_v57 }
0x14d8   :  { %v2201_v61 = vpop.f32.mrb[12].mxu0 }
0x14d9   :  { %v2202_v6 = vadd.f32 %v7586_v29, %v2201_v61  ;;  %v5547_v8 = vpop.f32.mrb[13].mxu0 }
0x14db   :  { %2246 = vrot.lane.b32.xlu1 %v2202_v6, %s7192_s21  ;;  %v2238_v10 = vadd.f32 %v2208_v9, %v2202_v6 }
0x14dd   :  { %v5110_v11 = vmul.f32 -1.442695, %v2238_v10 }
0x14df   :  { %6306 = vpow2.f32 %v5110_v11 }
0x14e9   :  { %v6307_v12 = vpop.eup %6306 }
0x14ea   :  { %v2242_v13 = vadd.f32 1.0, %v6307_v12 }
0x14ec   :  { %6308 = vrcp.f32 %v2242_v13 }
0x14f6   :  { %v6309_v20 = vpop.eup %6308 }
0x14f7   :  { %v2256_v30 = vsub.f32 1.0, %v6309_v20 }
0x1547   :  { %v2230_v16 = vpop.permute.xlu0 %2229 }
0x1548   :  { %v2232_v18 = vmul.f32 %v2230_v16, %v2227_v15  ;;  %v2704_v16 = vld [vmem:[#allocation20] sm:$0xff] }
0x154a   :  { %v2237_v19 = vadd.f32 %v2236_v17, %v2232_v18  ;;  %v2705_v17 = vld [vmem:[#allocation20 + $0x8] sm:$0xff] }
0x154c   :  { %2268 = vrot.lane.b32.xlu0 %v2237_v19, %s7193_s12 }
0x154d   :  { %v2247_v29 = vpop.permute.xlu1 %2246 }
0x154e   :  { %v2249_v21 = vmul.f32 %v6309_v20, %v2247_v29  ;;  %v2700_v29 = vld [vmem:[#allocation11 + $0x2] sm:$0x3] }
0x1550   :  { %2251 = vrot.lane.b32.xlu0 %v2249_v21, %s7192_s21  ;;  %v2706_v21 = vld [vmem:[#allocation20 + $0x10] sm:$0xff] }
0x1554   :  { %2262 = vrot.lane.b32.xlu0 %v2058_v52, %s7156_s15 }
0x15be   :  { %v2269_v22 = vpop.permute.xlu0 %2268 }
0x15bf   :  { %2271 = vst.msk [vmem:[#allocation6] sm:$0x3] %vm690_vm1, %v2269_v22  ;;  %2278 = vst.msk [vmem:[#allocation4 + $0xc] sm:$0x3] %vm690_vm1, %v2269_v22  ;;  %v2707_v22 = vld [vmem:[#allocation20 + $0x18] sm:$0xff] }
0x15c2   :  { %v2252_v23 = vpop.permute.xlu0 %2251 }
0x15c3   :  { %v2254_v24 = vadd.f32 %v2252_v23, %v2208_v9 }
0x15c5   :  { %6310 = vtanh.f32 %v2254_v24 }
0x15c6   :  { %v2281_v25 = vld [vmem:[#allocation6] sm:$0x3]  ;;  %v2263_v28 = vpop.permute.xlu0 %2262 }
0x15c7   :  { %5557 = vmatmul.mubr.msk.f32.vlgmr.msra.gmra.mrb[20].mxu1 %vm712_vm3, %v2281_v25  ;;  %v2265_v32 = vmul.f32 %v6309_v20, %v2263_v28  ;;  %v7795_v20 = vpack.c.bf16 %v2705_v17, %v2704_v16  ;;  %v2605_v28 = vld [vmem:[#allocation31] sm:$0xff] }
0x15c8   :  { %5578 = vmatprep.mubr.msk.f32.mxu1 %vm712_vm3, %v2507_v26  ;;  %5985 = vmatpush3.bf16.msra.mxu1 %v5982_v2 }
0x15c9   :  { %5987 = vmatprep.subr.bf16.mxu1 %v5986_v5 }
0x15cc   :  { %5989 = vmatpush3.bf16.msra.mxu1 %v5986_v5 }
0x15cd   :  { %5998 = vmatprep.subr.bf16.mxu1 %v7189_v0 }
0x15cf   :  { %v6311_v27 = vpop.eup %6310 }
0x15d0   :  { %2258 = vrot.lane.b32.xlu1 %v6311_v27, %s7193_s12 }
0x1642   :  { %v2259_v31 = vpop.permute.xlu1 %2258 }
0x1643   :  { %v2261_v33 = vmul.f32 %v2259_v31, %v2256_v30  ;;  %v2606_v30 = vld [vmem:[#allocation31 + $0x8] sm:$0xff] }
0x1644   :  { %v5990_v31 = vpack.c.bf16 %v2606_v30, %v2605_v28 }
0x1645   :  { %v2266_v34 = vadd.f32 %v2265_v32, %v2261_v33  ;;  %v2607_v32 = vld [vmem:[#allocation31 + $0x10] sm:$0xff]  ;;  %v2608_v33 = vld [vmem:[#allocation31 + $0x18] sm:$0xff] }
0x1646   :  { %5991 = vmatprep.subr.bf16.mxu0 %v5990_v31 }
0x1647   :  { %2273 = vrot.lane.b32.xlu1 %v2266_v34, %s7193_s12  ;;  %v5994_v34 = vpack.c.bf16 %v2608_v33, %v2607_v32 }
0x169a   :  { %v2352_v35 = vpop.f32.mrb[20].mxu1 }
0x169b   :  { %v2353_v37 = vadd.f32 %v6428_v36, %v2352_v35  ;;  %v5558_v38 = vpop.f32.mrb[21].mxu1 }
0x169d   :  { %2441 = vrot.lane.b32.xlu0 %v2353_v37, %s7192_s21  ;;  %v2433_v43 = vadd.f32 %v2430_v42, %v2353_v37 }
0x169f   :  { %v5113_v45 = vmul.f32 -1.442695, %v2433_v43 }
0x16a1   :  { %6312 = vpow2.f32 %v5113_v45 }
0x16ab   :  { %v6313_v46 = vpop.eup %6312 }
0x16ac   :  { %v2437_v48 = vadd.f32 1.0, %v6313_v46 }
0x16ae   :  { %6314 = vrcp.f32 %v2437_v48  ;;  %v7823_v48 = vld [vmem:[#allocation23] ss:$0 sm:$0xff] }
0x16b8   :  { %v6315_v49 = vpop.eup %6314 }
0x16b9   :  { %v2274_v39 = vpop.permute.xlu1 %2273  ;;  %v2451_v6 = vsub.f32 1.0, %v6315_v49 }
0x16ba   :  { %2276 = vst.msk [vmem:[#allocation7] sm:$0x3] %vm690_vm1, %v2274_v39  ;;  %2280 = vst.msk [vmem:[#allocation5 + $0xc] sm:$0x3] %vm690_vm1, %v2274_v39 }
0x16c1   :  { %v2282_v40 = vld [vmem:[#allocation7] sm:$0x3] }
0x16c2   :  { %5568 = vmatmul.mubr.msk.f32.vlgmr.msra.gmra.mrb[14].mxu0 %vm712_vm3, %v2282_v40 }
0x16c3   :  { %5589 = vmatprep.mubr.msk.f32.mxu0 %vm712_vm3, %v2509_v41  ;;  %5993 = vmatpush3.bf16.msra.mxu0 %v5990_v31  ;;  %v5115_v41 = vld [vmem:[#allocation22] ss:$0 sm:$0xff] }
0x16c4   :  { %5995 = vmatprep.subr.bf16.mxu0 %v5994_v34 }
0x16c7   :  { %5997 = vmatpush3.bf16.msra.mxu0 %v5994_v34 }
0x16c8   :  { %6004 = vmatprep.subr.bf16.mxu0 %v7189_v0 }
0x170f   :  { %v2442_v50 = vpop.permute.xlu0 %2441 }
0x1710   :  { %v2444_v51 = vmul.f32 %v6315_v49, %v2442_v50 }
0x1712   :  { %2446 = vrot.lane.b32.xlu1 %v2444_v51, %s7192_s21 }
0x1716   :  { %2457 = vrot.lane.b32.xlu1 %v2281_v25, %s7156_s15  ;;  %v7801_v25 = vpack.c.bf16 %v2707_v22, %v2706_v21 }
0x1784   :  { %v2447_v53 = vpop.permute.xlu1 %2446 }
0x1785   :  { %v2449_v54 = vadd.f32 %v2447_v53, %v2430_v42  ;;  %v2702_v53 = vld [vmem:[#allocation11 + $0x2] sm:$0x3] }
0x1787   :  { %6316 = vtanh.f32 %v2449_v54 }
0x1788   :  { %v2458_v61 = vpop.permute.xlu1 %2457 }
0x1789   :  { %v2460_v9 = vmul.f32 %v6315_v49, %v2458_v61 }
0x1791   :  { %v6317_v55 = vpop.eup %6316 }
0x1792   :  { %2453 = vrot.lane.b32.xlu0 %v6317_v55, %s7193_s12  ;;  %v2709_v55 = vld [vmem:[#allocation32] sm:$0xff] }
0x1795   :  { %v2425_v47 = vpop.f32.mrb[14].mxu0 }
0x1796   :  { %v2426_v58 = vadd.f32 %v6429_v56, %v2425_v47  ;;  %v5569_v52 = vpop.f32.mrb[15].mxu0  ;;  %v2710_v47 = vld [vmem:[#allocation32 + $0x8] sm:$0xff] }
0x1797   :  { %v7830_v56 = vpack.c.bf16 %v2710_v47, %v2709_v55  ;;  %v2712_v52 = vld [vmem:[#allocation32 + $0x18] sm:$0xff] }
0x1798   :  { %2470 = vrot.lane.b32.xlu1 %v2426_v58, %s7192_s21  ;;  %v2462_v59 = vadd.f32 %v2432_v7, %v2426_v58  ;;  %v2711_v58 = vld [vmem:[#allocation32 + $0x10] sm:$0xff] }
0x179a   :  { %v5114_v60 = vmul.f32 -1.442695, %v2462_v59  ;;  %v7834_v59 = vpack.c.bf16 %v2712_v52, %v2711_v58 }
0x179c   :  { %6318 = vpow2.f32 %v5114_v60 }
0x17a6   :  { %v6319_v62 = vpop.eup %6318 }
0x17a7   :  { %v2466_v3 = vadd.f32 1.0, %v6319_v62 }
0x17a9   :  { %6320 = vrcp.f32 %v2466_v3 }
0x17b3   :  { %v6321_v12 = vpop.eup %6320 }
0x17b4   :  { %v2480_v36 = vsub.f32 1.0, %v6321_v12 }
0x1804   :  { %v2454_v8 = vpop.permute.xlu0 %2453 }
0x1805   :  { %v2456_v10 = vmul.f32 %v2454_v8, %v2451_v6  ;;  %v5118_v8 = vld [vmem:[#allocation34] ss:$0 sm:$0xff] }
0x1807   :  { %v2461_v11 = vadd.f32 %v2460_v9, %v2456_v10 }
0x1809   :  { %2492 = vrot.lane.b32.xlu0 %v2461_v11, %s7193_s12 }
0x180a   :  { %v2471_v13 = vpop.permute.xlu1 %2470 }
0x180b   :  { %v2473_v14 = vmul.f32 %v6321_v12, %v2471_v13 }
0x180d   :  { %2475 = vrot.lane.b32.xlu0 %v2473_v14, %s7192_s21  ;;  %v7854_v14 = vld [vmem:[#allocation35] ss:$0 sm:$0xff] }
0x1811   :  { %2486 = vrot.lane.b32.xlu0 %v2282_v40, %s7156_s15 }
0x187b   :  { %v2493_v15 = vpop.permute.xlu0 %2492 }
0x187c   :  { %2495 = vst.msk [vmem:[#allocation6] sm:$0x3] %vm690_vm1, %v2493_v15  ;;  %2502 = vst.msk [vmem:[#allocation4 + $0xe] sm:$0x3] %vm690_vm1, %v2493_v15 }
0x187f   :  { %v2476_v18 = vpop.permute.xlu0 %2475 }
0x1880   :  { %v2478_v19 = vadd.f32 %v2476_v18, %v2432_v7 }
0x1882   :  { %6322 = vtanh.f32 %v2478_v19 }
0x1883   :  { %v2505_v23 = vld [vmem:[#allocation6] sm:$0x3]  ;;  %v2508_v24 = vld [vmem:[#allocation4 + $0x8] sm:$0xff]  ;;  %v2487_v35 = vpop.permute.xlu0 %2486 }
0x1884   :  { %2506 = vst.msk [vmem:[#allocation53] sm:$0x3] %vm690_vm1, %v2505_v23  ;;  %5579 = vmatmul.mubr.msk.f32.vlgmr.msra.gmra.mrb[22].mxu1 %vm712_vm3, %v2508_v24  ;;  %2701 = vst.msk [vmem:[#allocation6] sm:$0x3] %vm690_vm1, %v2700_v29  ;;  %v2489_v38 = vmul.f32 %v6321_v12, %v2487_v35 }
0x1885   :  { %6000 = vmatpush3.bf16.msra.mxu1 %v7795_v20  ;;  %5600 = vmatprep.mubr.msk.f32.mxu1 %vm7191_vm2, %v7190_v44 }
0x1886   :  { %6001 = vmatprep.subr.bf16.mxu1 %v7189_v0 }
0x1889   :  { %6003 = vmatpush3.bf16.msra.mxu1 %v7801_v25 }
0x188a   :  { %6010 = vmatprep.subr.bf16.mxu1 %v7189_v0 }
0x188b   :  { %v7808_v26 = vld [vmem:[#allocation6] sm:$0x3] }
0x188c   :  { %v6323_v27 = vpop.eup %6322  ;;  %5601 = vmatmul.mubr.msk.f32.vlgmr.msra.gmra.mrb[24].mxu1 %vm712_vm3, %v7808_v26 }
0x188d   :  { %2482 = vrot.lane.b32.xlu1 %v6323_v27, %s7193_s12  ;;  %6012 = vmatpush3.bf16.msra.mxu1 %v7795_v20 }
0x188e   :  { %6013 = vmatprep.subr.bf16.mxu1 %v7189_v0  ;;  %5622 = vmatprep.mubr.msk.f32.mxu1 %vm7191_vm2, %v7190_v44 }
0x1891   :  { %6015 = vmatpush3.bf16.msra.mxu1 %v7801_v25 }
0x1892   :  { %6022 = vmatprep.subr.bf16.mxu1 %v7189_v0 }
0x18ff   :  { %v2483_v37 = vpop.permute.xlu1 %2482 }
0x1900   :  { %v2485_v39 = vmul.f32 %v2483_v37, %v2480_v36 }
0x1902   :  { %v2490_v40 = vadd.f32 %v2489_v38, %v2485_v39 }
0x1904   :  { %2497 = vrot.lane.b32.xlu1 %v2490_v40, %s7193_s12 }
0x1957   :  { %v5580_v42 = vpop.f32.mrb[22].mxu1 }
0x1958   :  { %v2600_v43 = vadd.f32 %v5580_v42, %v5115_v41  ;;  %v2594_v45 = vpop.f32.mrb[23].mxu1 }
0x1959   :  { %v2595_v46 = vadd.f32 %v5115_v41, %v2594_v45 }
0x195a   :  { %2604 = vst.msk [vmem:[#allocation2 + $0x8] sm:$0xff] %vm594_vm5, %v2600_v43 }
0x195b   :  { %2603 = vst.msk [vmem:[#allocation2] sm:$0xff] %vm594_vm5, %v2595_v46 }
0x195f   :  { %v2791_v49 = vpop.f32.mrb[24].mxu1 }
0x1960   :  { %v2792_v50 = vadd.f32 %v7823_v48, %v2791_v49  ;;  %v5602_v51 = vpop.f32.mrb[25].mxu1 }
0x1962   :  { %2884 = vrot.lane.b32.xlu0 %v2792_v50, %s7192_s21  ;;  %v2874_v62 = vld [vmem:[#allocation2] sm:$0x3] }
0x1963   :  { %v2876_v63 = vadd.f32 %v2874_v62, %v2792_v50 }
0x1965   :  { %v5125_v1 = vmul.f32 -1.442695, %v2876_v63 }
0x1967   :  { %6324 = vpow2.f32 %v5125_v1 }
0x1971   :  { %v6325_v2 = vpop.eup %6324 }
0x1972   :  { %v2880_v3 = vadd.f32 1.0, %v6325_v2 }
0x1974   :  { %6326 = vrcp.f32 %v2880_v3 }
0x1976   :  { %v2498_v54 = vpop.permute.xlu1 %2497 }
0x1977   :  { %2500 = vst.msk [vmem:[#allocation7] sm:$0x3] %vm690_vm1, %v2498_v54  ;;  %2504 = vst.msk [vmem:[#allocation5 + $0xe] sm:$0x3] %vm690_vm1, %v2498_v54  ;;  %v3094_v54 = vld [vmem:[#allocation2 + $0x2] sm:$0x3] }
0x1978   :  { %2703 = vst.msk [vmem:[#allocation7] sm:$0x3] %vm690_vm1, %v2702_v53 }
0x197e   :  { %v2510_v7 = vld [vmem:[#allocation5 + $0x8] sm:$0xff]  ;;  %v6327_v57 = vpop.eup %6326 }
0x197f   :  { %5590 = vmatmul.mubr.msk.f32.vlgmr.msra.gmra.mrb[16].mxu0 %vm712_vm3, %v2510_v7  ;;  %v2715_v60 = vld [vmem:[#allocation7] sm:$0x3]  ;;  %v2894_v24 = vsub.f32 1.0, %v6327_v57 }
0x1980   :  { %6006 = vmatpush3.bf16.msra.mxu0 %v7830_v56  ;;  %5611 = vmatprep.mubr.msk.f32.mxu0 %vm7191_vm2, %v7190_v44 }
0x1981   :  { %6007 = vmatprep.subr.bf16.mxu0 %v7189_v0 }
0x1984   :  { %6009 = vmatpush3.bf16.msra.mxu0 %v7834_v59 }
0x1985   :  { %6016 = vmatprep.subr.bf16.mxu0 %v7189_v0 }
0x1987   :  { %5612 = vmatmul.mubr.msk.f32.vlgmr.msra.gmra.mrb[18].mxu0 %vm712_vm3, %v2715_v60 }
0x1988   :  { %6018 = vmatpush3.bf16.msra.mxu0 %v7830_v56  ;;  %5633 = vmatprep.mubr.msk.f32.mxu0 %vm7191_vm2, %v7190_v44 }
0x1989   :  { %6019 = vmatprep.subr.bf16.mxu0 %v7189_v0 }
0x198c   :  { %6021 = vmatpush3.bf16.msra.mxu0 %v7834_v59 }
0x198d   :  { %6028 = vmatprep.subr.bf16.mxu0 %v7189_v0 }
0x19d4   :  { %v2885_v4 = vpop.permute.xlu0 %2884 }
0x19d5   :  { %v2887_v5 = vmul.f32 %v6327_v57, %v2885_v4 }
0x19d7   :  { %2889 = vrot.lane.b32.xlu1 %v2887_v5, %s7192_s21 }
0x19db   :  { %2900 = vrot.lane.b32.xlu1 %v7808_v26, %s7156_s15 }
0x1a49   :  { %v2890_v61 = vpop.permute.xlu1 %2889 }
0x1a4a   :  { %v2892_v6 = vadd.f32 %v2890_v61, %v2874_v62 }
0x1a4c   :  { %6328 = vtanh.f32 %v2892_v6 }
0x1a4d   :  { %v2901_v23 = vpop.permute.xlu1 %2900 }
0x1a4e   :  { %v2903_v27 = vmul.f32 %v6327_v57, %v2901_v23 }
0x1a52   :  { %v5591_v9 = vpop.f32.mrb[16].mxu0 }
0x1a53   :  { %v2694_v10 = vadd.f32 %v5591_v9, %v5118_v8  ;;  %v2688_v11 = vpop.f32.mrb[17].mxu0 }
0x1a54   :  { %v2689_v12 = vadd.f32 %v5118_v8, %v2688_v11 }
0x1a55   :  { %2698 = vst.msk [vmem:[#allocation3 + $0x8] sm:$0xff] %vm594_vm5, %v2694_v10 }
0x1a56   :  { %v6329_v13 = vpop.eup %6328  ;;  %2697 = vst.msk [vmem:[#allocation3] sm:$0xff] %vm594_vm5, %v2689_v12 }
0x1a57   :  { %2896 = vrot.lane.b32.xlu0 %v6329_v13, %s7193_s12 }
0x1a5a   :  { %v2870_v15 = vpop.f32.mrb[18].mxu0 }
0x1a5b   :  { %v2871_v16 = vadd.f32 %v7854_v14, %v2870_v15  ;;  %v5613_v17 = vpop.f32.mrb[19].mxu0 }
0x1a5d   :  { %2913 = vrot.lane.b32.xlu1 %v2871_v16, %s7192_s21  ;;  %v2875_v18 = vld [vmem:[#allocation3] sm:$0x3]  ;;  %v3095_v5 = vld [vmem:[#allocation3 + $0x2] sm:$0x3] }
0x1a5e   :  { %v2905_v19 = vadd.f32 %v2875_v18, %v2871_v16 }
0x1a60   :  { %v5126_v29 = vmul.f32 -1.442695, %v2905_v19 }
0x1a62   :  { %6330 = vpow2.f32 %v5126_v29 }
0x1a6c   :  { %v6331_v21 = vpop.eup %6330 }
0x1a6d   :  { %v2909_v22 = vadd.f32 1.0, %v6331_v21 }
0x1a6f   :  { %6332 = vrcp.f32 %v2909_v22 }
0x1a79   :  { %v6333_v31 = vpop.eup %6332 }
0x1a7a   :  { %v2923_v40 = vsub.f32 1.0, %v6333_v31 }
0x1ac9   :  { %v2897_v26 = vpop.permute.xlu0 %2896 }
0x1aca   :  { %v2899_v28 = vmul.f32 %v2897_v26, %v2894_v24 }
0x1acc   :  { %v2904_v30 = vadd.f32 %v2903_v27, %v2899_v28 }
0x1ace   :  { %2935 = vrot.lane.b32.xlu0 %v2904_v30, %s7193_s12 }
0x1acf   :  { %v2914_v32 = vpop.permute.xlu1 %2913 }
0x1ad0   :  { %v2916_v33 = vmul.f32 %v6333_v31, %v2914_v32 }
0x1ad2   :  { %2918 = vrot.lane.b32.xlu0 %v2916_v33, %s7192_s21 }
0x1ad6   :  { %2929 = vrot.lane.b32.xlu0 %v2715_v60, %s7156_s15 }
0x1b40   :  { %v2936_v34 = vpop.permute.xlu0 %2935 }
0x1b41   :  { %2938 = vst.msk [vmem:[#allocation6] sm:$0x3] %vm690_vm1, %v2936_v34  ;;  %2944 = vst.msk [vmem:[#allocation4] sm:$0x3] %vm690_vm1, %v2936_v34 }
0x1b44   :  { %v2919_v35 = vpop.permute.xlu0 %2918 }
0x1b45   :  { %v2921_v36 = vadd.f32 %v2919_v35, %v2875_v18 }
0x1b47   :  { %6334 = vtanh.f32 %v2921_v36 }
0x1b48   :  { %v2946_v37 = vld [vmem:[#allocation6] sm:$0x3]  ;;  %v2930_v39 = vpop.permute.xlu0 %2929 }
0x1b49   :  { %5623 = vmatmul.mubr.msk.f32.vlgmr.msra.gmra.mrb[26].mxu1 %vm712_vm3, %v2946_v37  ;;  %v2932_v42 = vmul.f32 %v6333_v31, %v2930_v39 }
0x1b4a   :  { %6024 = vmatpush3.bf16.msra.mxu1 %v7795_v20  ;;  %5644 = vmatprep.mubr.msk.f32.mxu1 %vm7191_vm2, %v7190_v44 }
0x1b4b   :  { %6025 = vmatprep.subr.bf16.mxu1 %v7189_v0 }
0x1b4e   :  { %6027 = vmatpush3.bf16.msra.mxu1 %v7801_v25 }
0x1b4f   :  { %6034 = vmatprep.subr.bf16.mxu1 %v7189_v0 }
0x1b51   :  { %v6335_v38 = vpop.eup %6334 }
0x1b52   :  { %2925 = vrot.lane.b32.xlu1 %v6335_v38, %s7193_s12  ;;  %v3314_v38 = vld [vmem:[#allocation2 + $0x4] sm:$0x3] }
0x1bc4   :  { %v2926_v41 = vpop.permute.xlu1 %2925 }
0x1bc5   :  { %v2928_v43 = vmul.f32 %v2926_v41, %v2923_v40 }
0x1bc7   :  { %v2933_v45 = vadd.f32 %v2932_v42, %v2928_v43 }
0x1bc9   :  { %2940 = vrot.lane.b32.xlu1 %v2933_v45, %s7193_s12 }
0x1c1c   :  { %v3017_v46 = vpop.f32.mrb[26].mxu1 }
0x1c1d   :  { %v3018_v49 = vadd.f32 %v7823_v48, %v3017_v46  ;;  %v5624_v50 = vpop.f32.mrb[27].mxu1 }
0x1c1f   :  { %3104 = vrot.lane.b32.xlu0 %v3018_v49, %s7192_s21  ;;  %v3096_v55 = vadd.f32 %v3094_v54, %v3018_v49 }
0x1c21   :  { %v5129_v47 = vmul.f32 -1.442695, %v3096_v55 }
0x1c23   :  { %6336 = vpow2.f32 %v5129_v47  ;;  %v3315_v47 = vld [vmem:[#allocation3 + $0x4] sm:$0x3] }
0x1c2d   :  { %v6337_v58 = vpop.eup %6336 }
0x1c2e   :  { %v3100_v52 = vadd.f32 1.0, %v6337_v58 }
0x1c30   :  { %6338 = vrcp.f32 %v3100_v52 }
0x1c3a   :  { %v6339_v7 = vpop.eup %6338 }
0x1c3b   :  { %v2941_v51 = vpop.permute.xlu1 %2940  ;;  %v3114_v11 = vsub.f32 1.0, %v6339_v7 }
0x1c3c   :  { %2943 = vst.msk [vmem:[#allocation7] sm:$0x3] %vm690_vm1, %v2941_v51  ;;  %2945 = vst.msk [vmem:[#allocation5] sm:$0x3] %vm690_vm1, %v2941_v51 }
0x1c43   :  { %v2947_v53 = vld [vmem:[#allocation7] sm:$0x3] }
0x1c44   :  { %5634 = vmatmul.mubr.msk.f32.vlgmr.msra.gmra.mrb[20].mxu0 %vm712_vm3, %v2947_v53 }
0x1c45   :  { %6030 = vmatpush3.bf16.msra.mxu0 %v7830_v56  ;;  %5655 = vmatprep.mubr.msk.f32.mxu0 %vm7191_vm2, %v7190_v44 }
0x1c46   :  { %6031 = vmatprep.subr.bf16.mxu0 %v7189_v0 }
0x1c49   :  { %6033 = vmatpush3.bf16.msra.mxu0 %v7834_v59 }
0x1c4a   :  { %6040 = vmatprep.subr.bf16.mxu0 %v7189_v0 }
0x1c91   :  { %v3105_v60 = vpop.permute.xlu0 %3104 }
0x1c92   :  { %v3107_v62 = vmul.f32 %v6339_v7, %v3105_v60 }
0x1c94   :  { %3109 = vrot.lane.b32.xlu1 %v3107_v62, %s7192_s21 }
0x1c98   :  { %3120 = vrot.lane.b32.xlu1 %v2946_v37, %s7156_s15 }
0x1d06   :  { %v3110_v63 = vpop.permute.xlu1 %3109 }
0x1d07   :  { %v3112_v1 = vadd.f32 %v3110_v63, %v3094_v54 }
0x1d09   :  { %6340 = vtanh.f32 %v3112_v1 }
0x1d0a   :  { %v3121_v10 = vpop.permute.xlu1 %3120 }
0x1d0b   :  { %v3123_v13 = vmul.f32 %v6339_v7, %v3121_v10 }
0x1d13   :  { %v6341_v2 = vpop.eup %6340 }
0x1d14   :  { %3116 = vrot.lane.b32.xlu0 %v6341_v2, %s7193_s12 }
0x1d17   :  { %v3090_v3 = vpop.f32.mrb[20].mxu0 }
0x1d18   :  { %v3091_v57 = vadd.f32 %v7854_v14, %v3090_v3  ;;  %v5635_v4 = vpop.f32.mrb[21].mxu0 }
0x1d1a   :  { %3133 = vrot.lane.b32.xlu1 %v3091_v57, %s7192_s21  ;;  %v3125_v61 = vadd.f32 %v3095_v5, %v3091_v57 }
0x1d1c   :  { %v5130_v6 = vmul.f32 -1.442695, %v3125_v61 }
0x1d1e   :  { %6342 = vpow2.f32 %v5130_v6 }
0x1d28   :  { %v6343_v8 = vpop.eup %6342 }
0x1d29   :  { %v3129_v9 = vadd.f32 1.0, %v6343_v8 }
0x1d2b   :  { %6344 = vrcp.f32 %v3129_v9 }
0x1d35   :  { %v6345_v17 = vpop.eup %6344 }
0x1d36   :  { %v3143_v27 = vsub.f32 1.0, %v6345_v17 }
0x1d86   :  { %v3117_v12 = vpop.permute.xlu0 %3116 }
0x1d87   :  { %v3119_v15 = vmul.f32 %v3117_v12, %v3114_v11 }
0x1d89   :  { %v3124_v16 = vadd.f32 %v3123_v13, %v3119_v15 }
0x1d8b   :  { %3155 = vrot.lane.b32.xlu0 %v3124_v16, %s7193_s12 }
0x1d8c   :  { %v3134_v18 = vpop.permute.xlu1 %3133 }
0x1d8d   :  { %v3136_v19 = vmul.f32 %v6345_v17, %v3134_v18 }
0x1d8f   :  { %3138 = vrot.lane.b32.xlu0 %v3136_v19, %s7192_s21 }
0x1d93   :  { %3149 = vrot.lane.b32.xlu0 %v2947_v53, %s7156_s15 }
0x1dfd   :  { %v3156_v29 = vpop.permute.xlu0 %3155 }
0x1dfe   :  { %3164 = vst.msk [vmem:[#allocation4 + $0x2] sm:$0x3] %vm690_vm1, %v3156_v29  ;;  %3158 = vst.msk [vmem:[#allocation6] sm:$0x3] %vm690_vm1, %v3156_v29 }
0x1e01   :  { %v3139_v21 = vpop.permute.xlu0 %3138 }
0x1e02   :  { %v3141_v22 = vadd.f32 %v3139_v21, %v3095_v5 }
0x1e04   :  { %6346 = vtanh.f32 %v3141_v22 }
0x1e05   :  { %v3166_v23 = vld [vmem:[#allocation6] sm:$0x3]  ;;  %v3150_v26 = vpop.permute.xlu0 %3149 }
0x1e06   :  { %5645 = vmatmul.mubr.msk.f32.vlgmr.msra.gmra.mrb[28].mxu1 %vm712_vm3, %v3166_v23  ;;  %v3152_v30 = vmul.f32 %v6345_v17, %v3150_v26 }
0x1e07   :  { %6036 = vmatpush3.bf16.msra.mxu1 %v7795_v20  ;;  %5666 = vmatprep.mubr.msk.f32.mxu1 %vm7191_vm2, %v7190_v44 }
0x1e08   :  { %6037 = vmatprep.subr.bf16.mxu1 %v7189_v0 }
0x1e0b   :  { %6039 = vmatpush3.bf16.msra.mxu1 %v7801_v25 }
0x1e0c   :  { %6046 = vmatprep.subr.bf16.mxu1 %v7189_v0 }
0x1e0e   :  { %v6347_v24 = vpop.eup %6346 }
0x1e0f   :  { %3145 = vrot.lane.b32.xlu1 %v6347_v24, %s7193_s12  ;;  %v3534_v24 = vld [vmem:[#allocation2 + $0x6] sm:$0x3] }
0x1e81   :  { %v3146_v28 = vpop.permute.xlu1 %3145 }
0x1e82   :  { %v3148_v31 = vmul.f32 %v3146_v28, %v3143_v27 }
0x1e84   :  { %v3153_v32 = vadd.f32 %v3152_v30, %v3148_v31 }
0x1e86   :  { %3160 = vrot.lane.b32.xlu1 %v3153_v32, %s7193_s12 }
0x1ed9   :  { %v3237_v33 = vpop.f32.mrb[28].mxu1 }
0x1eda   :  { %v3238_v34 = vadd.f32 %v7823_v48, %v3237_v33  ;;  %v5646_v35 = vpop.f32.mrb[29].mxu1 }
0x1edc   :  { %3324 = vrot.lane.b32.xlu0 %v3238_v34, %s7192_s21  ;;  %v3316_v39 = vadd.f32 %v3314_v38, %v3238_v34 }
0x1ede   :  { %v5133_v40 = vmul.f32 -1.442695, %v3316_v39 }
0x1ee0   :  { %6348 = vpow2.f32 %v5133_v40  ;;  %v3535_v40 = vld [vmem:[#allocation3 + $0x6] sm:$0x3] }
0x1eea   :  { %v6349_v41 = vpop.eup %6348 }
0x1eeb   :  { %v3320_v42 = vadd.f32 1.0, %v6349_v41 }
0x1eed   :  { %6350 = vrcp.f32 %v3320_v42 }
0x1ef7   :  { %v6351_v43 = vpop.eup %6350 }
0x1ef8   :  { %v3161_v36 = vpop.permute.xlu1 %3160  ;;  %v3334_v63 = vsub.f32 1.0, %v6351_v43 }
0x1ef9   :  { %3165 = vst.msk [vmem:[#allocation5 + $0x2] sm:$0x3] %vm690_vm1, %v3161_v36  ;;  %3163 = vst.msk [vmem:[#allocation7] sm:$0x3] %vm690_vm1, %v3161_v36 }
0x1f00   :  { %v3167_v37 = vld [vmem:[#allocation7] sm:$0x3] }
0x1f01   :  { %5656 = vmatmul.mubr.msk.f32.vlgmr.msra.gmra.mrb[22].mxu0 %vm712_vm3, %v3167_v37 }
0x1f02   :  { %6042 = vmatpush3.bf16.msra.mxu0 %v7830_v56  ;;  %5677 = vmatprep.mubr.msk.f32.mxu0 %vm7191_vm2, %v7190_v44 }
0x1f03   :  { %6043 = vmatprep.subr.bf16.mxu0 %v7189_v0 }
0x1f06   :  { %6045 = vmatpush3.bf16.msra.mxu0 %v7834_v59 }
0x1f07   :  { %6052 = vmatprep.subr.bf16.mxu0 %v7189_v0 }
0x1f4e   :  { %v3325_v45 = vpop.permute.xlu0 %3324 }
0x1f4f   :  { %v3327_v46 = vmul.f32 %v6351_v43, %v3325_v45 }
0x1f51   :  { %3329 = vrot.lane.b32.xlu1 %v3327_v46, %s7192_s21 }
0x1f55   :  { %3340 = vrot.lane.b32.xlu1 %v3166_v23, %s7156_s15 }
0x1fc3   :  { %v3330_v49 = vpop.permute.xlu1 %3329 }
0x1fc4   :  { %v3332_v50 = vadd.f32 %v3330_v49, %v3314_v38 }
0x1fc6   :  { %6352 = vtanh.f32 %v3332_v50 }
0x1fc7   :  { %v3341_v62 = vpop.permute.xlu1 %3340 }
0x1fc8   :  { %v3343_v2 = vmul.f32 %v6351_v43, %v3341_v62 }
0x1fd0   :  { %v6353_v51 = vpop.eup %6352 }
0x1fd1   :  { %3336 = vrot.lane.b32.xlu0 %v6353_v51, %s7193_s12 }
0x1fd4   :  { %v3310_v53 = vpop.f32.mrb[22].mxu0 }
0x1fd5   :  { %v3311_v54 = vadd.f32 %v7854_v14, %v3310_v53  ;;  %v5657_v55 = vpop.f32.mrb[23].mxu0 }
0x1fd7   :  { %3353 = vrot.lane.b32.xlu1 %v3311_v54, %s7192_s21  ;;  %v3345_v58 = vadd.f32 %v3315_v47, %v3311_v54 }
0x1fd9   :  { %v5134_v52 = vmul.f32 -1.442695, %v3345_v58 }
0x1fdb   :  { %6354 = vpow2.f32 %v5134_v52 }
0x1fe5   :  { %v6355_v7 = vpop.eup %6354 }
0x1fe6   :  { %v3349_v60 = vadd.f32 1.0, %v6355_v7 }
0x1fe8   :  { %6356 = vrcp.f32 %v3349_v60 }
0x1ff2   :  { %v6357_v4 = vpop.eup %6356 }
0x1ff3   :  { %v3363_v13 = vsub.f32 1.0, %v6357_v4 }
0x2043   :  { %v3337_v1 = vpop.permute.xlu0 %3336 }
0x2044   :  { %v3339_v3 = vmul.f32 %v3337_v1, %v3334_v63 }
0x2046   :  { %v3344_v57 = vadd.f32 %v3343_v2, %v3339_v3 }
0x2048   :  { %3375 = vrot.lane.b32.xlu0 %v3344_v57, %s7193_s12 }
0x2049   :  { %v3354_v5 = vpop.permute.xlu1 %3353 }
0x204a   :  { %v3356_v61 = vmul.f32 %v6357_v4, %v3354_v5 }
0x204c   :  { %3358 = vrot.lane.b32.xlu0 %v3356_v61, %s7192_s21 }
0x2050   :  { %3369 = vrot.lane.b32.xlu0 %v3167_v37, %s7156_s15 }
0x20ba   :  { %v3376_v6 = vpop.permute.xlu0 %3375 }
0x20bb   :  { %3384 = vst.msk [vmem:[#allocation4 + $0x4] sm:$0x3] %vm690_vm1, %v3376_v6  ;;  %3378 = vst.msk [vmem:[#allocation6] sm:$0x3] %vm690_vm1, %v3376_v6 }
0x20be   :  { %v3359_v8 = vpop.permute.xlu0 %3358 }
0x20bf   :  { %v3361_v9 = vadd.f32 %v3359_v8, %v3315_v47 }
0x20c1   :  { %6358 = vtanh.f32 %v3361_v9 }
0x20c2   :  { %v3386_v10 = vld [vmem:[#allocation6] sm:$0x3]  ;;  %v3370_v12 = vpop.permute.xlu0 %3369 }
0x20c3   :  { %5667 = vmatmul.mubr.msk.f32.vlgmr.msra.gmra.mrb[30].mxu1 %vm712_vm3, %v3386_v10  ;;  %v3372_v16 = vmul.f32 %v6357_v4, %v3370_v12 }
0x20c4   :  { %6048 = vmatpush3.bf16.msra.mxu1 %v7795_v20  ;;  %5688 = vmatprep.mubr.msk.f32.mxu1 %vm7191_vm2, %v7190_v44 }
0x20c5   :  { %6049 = vmatprep.subr.bf16.mxu1 %v7189_v0 }
0x20c8   :  { %6051 = vmatpush3.bf16.msra.mxu1 %v7801_v25 }
0x20c9   :  { %6058 = vmatprep.subr.bf16.mxu1 %v7189_v0 }
0x20cb   :  { %v6359_v11 = vpop.eup %6358 }
0x20cc   :  { %3365 = vrot.lane.b32.xlu1 %v6359_v11, %s7193_s12  ;;  %v3754_v11 = vld [vmem:[#allocation2 + $0x8] sm:$0x3] }
0x213e   :  { %v3366_v15 = vpop.permute.xlu1 %3365 }
0x213f   :  { %v3368_v17 = vmul.f32 %v3366_v15, %v3363_v13 }
0x2141   :  { %v3373_v18 = vadd.f32 %v3372_v16, %v3368_v17 }
0x2143   :  { %3380 = vrot.lane.b32.xlu1 %v3373_v18, %s7193_s12 }
0x2196   :  { %v3457_v19 = vpop.f32.mrb[30].mxu1 }
0x2197   :  { %v3458_v29 = vadd.f32 %v7823_v48, %v3457_v19  ;;  %v5668_v21 = vpop.f32.mrb[31].mxu1 }
0x2199   :  { %3544 = vrot.lane.b32.xlu0 %v3458_v29, %s7192_s21  ;;  %v3536_v26 = vadd.f32 %v3534_v24, %v3458_v29 }
0x219b   :  { %v5137_v27 = vmul.f32 -1.442695, %v3536_v26 }
0x219d   :  { %6360 = vpow2.f32 %v5137_v27  ;;  %v3755_v27 = vld [vmem:[#allocation3 + $0x8] sm:$0x3] }
0x21a7   :  { %v6361_v28 = vpop.eup %6360 }
0x21a8   :  { %v3540_v30 = vadd.f32 1.0, %v6361_v28 }
0x21aa   :  { %6362 = vrcp.f32 %v3540_v30 }
0x21b4   :  { %v6363_v31 = vpop.eup %6362 }
0x21b5   :  { %v3381_v22 = vpop.permute.xlu1 %3380  ;;  %v3554_v49 = vsub.f32 1.0, %v6363_v31 }
0x21b6   :  { %3385 = vst.msk [vmem:[#allocation5 + $0x4] sm:$0x3] %vm690_vm1, %v3381_v22  ;;  %3383 = vst.msk [vmem:[#allocation7] sm:$0x3] %vm690_vm1, %v3381_v22 }
0x21bd   :  { %v3387_v23 = vld [vmem:[#allocation7] sm:$0x3] }
0x21be   :  { %5678 = vmatmul.mubr.msk.f32.vlgmr.msra.gmra.mrb[24].mxu0 %vm712_vm3, %v3387_v23 }
0x21bf   :  { %6054 = vmatpush3.bf16.msra.mxu0 %v7830_v56  ;;  %5699 = vmatprep.mubr.msk.f32.mxu0 %vm7191_vm2, %v7190_v44 }
0x21c0   :  { %6055 = vmatprep.subr.bf16.mxu0 %v7189_v0 }
0x21c3   :  { %6057 = vmatpush3.bf16.msra.mxu0 %v7834_v59 }
0x21c4   :  { %6064 = vmatprep.subr.bf16.mxu0 %v7189_v0 }
0x220b   :  { %v3545_v32 = vpop.permute.xlu0 %3544 }
0x220c   :  { %v3547_v33 = vmul.f32 %v6363_v31, %v3545_v32 }
0x220e   :  { %3549 = vrot.lane.b32.xlu1 %v3547_v33, %s7192_s21 }
0x2212   :  { %3560 = vrot.lane.b32.xlu1 %v3386_v10, %s7156_s15 }
0x2280   :  { %v3550_v34 = vpop.permute.xlu1 %3549 }
0x2281   :  { %v3552_v35 = vadd.f32 %v3550_v34, %v3534_v24 }
0x2283   :  { %6364 = vtanh.f32 %v3552_v35 }
0x2284   :  { %v3561_v46 = vpop.permute.xlu1 %3560 }
0x2285   :  { %v3563_v51 = vmul.f32 %v6363_v31, %v3561_v46 }
0x228d   :  { %v6365_v36 = vpop.eup %6364 }
0x228e   :  { %3556 = vrot.lane.b32.xlu0 %v6365_v36, %s7193_s12 }
0x2291   :  { %v3530_v37 = vpop.f32.mrb[24].mxu0 }
0x2292   :  { %v3531_v38 = vadd.f32 %v7854_v14, %v3530_v37  ;;  %v5679_v39 = vpop.f32.mrb[25].mxu0 }
0x2294   :  { %3573 = vrot.lane.b32.xlu1 %v3531_v38, %s7192_s21  ;;  %v3565_v41 = vadd.f32 %v3535_v40, %v3531_v38 }
0x2296   :  { %v5138_v42 = vmul.f32 -1.442695, %v3565_v41 }
0x2298   :  { %6366 = vpow2.f32 %v5138_v42 }
0x22a2   :  { %v6367_v43 = vpop.eup %6366 }
0x22a3   :  { %v3569_v45 = vadd.f32 1.0, %v6367_v43 }
0x22a5   :  { %6368 = vrcp.f32 %v3569_v45 }
0x22af   :  { %v6369_v55 = vpop.eup %6368 }
0x22b0   :  { %v3583_v2 = vsub.f32 1.0, %v6369_v55 }
0x2300   :  { %v3557_v50 = vpop.permute.xlu0 %3556 }
0x2301   :  { %v3559_v53 = vmul.f32 %v3557_v50, %v3554_v49 }
0x2303   :  { %v3564_v54 = vadd.f32 %v3563_v51, %v3559_v53 }
0x2305   :  { %3595 = vrot.lane.b32.xlu0 %v3564_v54, %s7193_s12 }
0x2306   :  { %v3574_v47 = vpop.permute.xlu1 %3573 }
0x2307   :  { %v3576_v58 = vmul.f32 %v6369_v55, %v3574_v47 }
0x2309   :  { %3578 = vrot.lane.b32.xlu0 %v3576_v58, %s7192_s21 }
0x230d   :  { %3589 = vrot.lane.b32.xlu0 %v3387_v23, %s7156_s15 }
0x2377   :  { %v3596_v52 = vpop.permute.xlu0 %3595 }
0x2378   :  { %3604 = vst.msk [vmem:[#allocation4 + $0x6] sm:$0x3] %vm690_vm1, %v3596_v52  ;;  %3598 = vst.msk [vmem:[#allocation6] sm:$0x3] %vm690_vm1, %v3596_v52 }
0x237b   :  { %v3579_v7 = vpop.permute.xlu0 %3578 }
0x237c   :  { %v3581_v60 = vadd.f32 %v3579_v7, %v3535_v40 }
0x237e   :  { %6370 = vtanh.f32 %v3581_v60 }
0x237f   :  { %v3606_v62 = vld [vmem:[#allocation6] sm:$0x3]  ;;  %v3590_v1 = vpop.permute.xlu0 %3589 }
0x2380   :  { %5689 = vmatmul.mubr.msk.f32.vlgmr.msra.gmra.mrb[32].mxu1 %vm712_vm3, %v3606_v62  ;;  %v3592_v57 = vmul.f32 %v6369_v55, %v3590_v1 }
0x2381   :  { %6060 = vmatpush3.bf16.msra.mxu1 %v7795_v20  ;;  %5710 = vmatprep.mubr.msk.f32.mxu1 %vm7191_vm2, %v7190_v44 }
0x2382   :  { %6061 = vmatprep.subr.bf16.mxu1 %v7189_v0 }
0x2385   :  { %6063 = vmatpush3.bf16.msra.mxu1 %v7801_v25 }
0x2386   :  { %6070 = vmatprep.subr.bf16.mxu1 %v7189_v0 }
0x2388   :  { %v6371_v63 = vpop.eup %6370 }
0x2389   :  { %3585 = vrot.lane.b32.xlu1 %v6371_v63, %s7193_s12  ;;  %v3974_v63 = vld [vmem:[#allocation2 + $0xa] sm:$0x3] }
0x23fb   :  { %v3586_v3 = vpop.permute.xlu1 %3585 }
0x23fc   :  { %v3588_v4 = vmul.f32 %v3586_v3, %v3583_v2 }
0x23fe   :  { %v3593_v5 = vadd.f32 %v3592_v57, %v3588_v4 }
0x2400   :  { %3600 = vrot.lane.b32.xlu1 %v3593_v5, %s7193_s12 }
0x2453   :  { %v3677_v61 = vpop.f32.mrb[32].mxu1 }
0x2454   :  { %v3678_v6 = vadd.f32 %v7823_v48, %v3677_v61  ;;  %v5690_v8 = vpop.f32.mrb[33].mxu1 }
0x2456   :  { %3764 = vrot.lane.b32.xlu0 %v3678_v6, %s7192_s21  ;;  %v3756_v12 = vadd.f32 %v3754_v11, %v3678_v6 }
0x2458   :  { %v5141_v13 = vmul.f32 -1.442695, %v3756_v12 }
0x245a   :  { %6372 = vpow2.f32 %v5141_v13  ;;  %v3975_v13 = vld [vmem:[#allocation3 + $0xa] sm:$0x3] }
0x2464   :  { %v6373_v15 = vpop.eup %6372 }
0x2465   :  { %v3760_v16 = vadd.f32 1.0, %v6373_v15 }
0x2467   :  { %6374 = vrcp.f32 %v3760_v16 }
0x2471   :  { %v6375_v17 = vpop.eup %6374 }
0x2472   :  { %v3601_v9 = vpop.permute.xlu1 %3600  ;;  %v3774_v34 = vsub.f32 1.0, %v6375_v17 }
0x2473   :  { %3605 = vst.msk [vmem:[#allocation5 + $0x6] sm:$0x3] %vm690_vm1, %v3601_v9  ;;  %3603 = vst.msk [vmem:[#allocation7] sm:$0x3] %vm690_vm1, %v3601_v9 }
0x247a   :  { %v3607_v10 = vld [vmem:[#allocation7] sm:$0x3] }
0x247b   :  { %5700 = vmatmul.mubr.msk.f32.vlgmr.msra.gmra.mrb[26].mxu0 %vm712_vm3, %v3607_v10 }
0x247c   :  { %6066 = vmatpush3.bf16.msra.mxu0 %v7830_v56  ;;  %5721 = vmatprep.mubr.msk.f32.mxu0 %vm7191_vm2, %v7190_v44 }
0x247d   :  { %6067 = vmatprep.subr.bf16.mxu0 %v7189_v0 }
0x2480   :  { %6069 = vmatpush3.bf16.msra.mxu0 %v7834_v59 }
0x2481   :  { %6076 = vmatprep.subr.bf16.mxu0 %v7189_v0 }
0x24c8   :  { %v3765_v18 = vpop.permute.xlu0 %3764 }
0x24c9   :  { %v3767_v19 = vmul.f32 %v6375_v17, %v3765_v18 }
0x24cb   :  { %3769 = vrot.lane.b32.xlu1 %v3767_v19, %s7192_s21 }
0x24cf   :  { %3780 = vrot.lane.b32.xlu1 %v3606_v62, %s7156_s15 }
0x253d   :  { %v3770_v29 = vpop.permute.xlu1 %3769 }
0x253e   :  { %v3772_v21 = vadd.f32 %v3770_v29, %v3754_v11 }
0x2540   :  { %6376 = vtanh.f32 %v3772_v21 }
0x2541   :  { %v3781_v33 = vpop.permute.xlu1 %3780 }
0x2542   :  { %v3783_v36 = vmul.f32 %v6375_v17, %v3781_v33 }
0x254a   :  { %v6377_v22 = vpop.eup %6376 }
0x254b   :  { %3776 = vrot.lane.b32.xlu0 %v6377_v22, %s7193_s12 }
0x254e   :  { %v3750_v23 = vpop.f32.mrb[26].mxu0 }
0x254f   :  { %v3751_v24 = vadd.f32 %v7854_v14, %v3750_v23  ;;  %v5701_v26 = vpop.f32.mrb[27].mxu0 }
0x2551   :  { %3793 = vrot.lane.b32.xlu1 %v3751_v24, %s7192_s21  ;;  %v3785_v28 = vadd.f32 %v3755_v27, %v3751_v24 }
0x2553   :  { %v5142_v30 = vmul.f32 -1.442695, %v3785_v28 }
0x2555   :  { %6378 = vpow2.f32 %v5142_v30 }
0x255f   :  { %v6379_v31 = vpop.eup %6378 }
0x2560   :  { %v3789_v32 = vadd.f32 1.0, %v6379_v31 }
0x2562   :  { %6380 = vrcp.f32 %v3789_v32 }
0x256c   :  { %v6381_v39 = vpop.eup %6380 }
0x256d   :  { %v3803_v51 = vsub.f32 1.0, %v6381_v39 }
0x25bd   :  { %v3777_v35 = vpop.permute.xlu0 %3776 }
0x25be   :  { %v3779_v37 = vmul.f32 %v3777_v35, %v3774_v34 }
0x25c0   :  { %v3784_v38 = vadd.f32 %v3783_v36, %v3779_v37 }
0x25c2   :  { %3815 = vrot.lane.b32.xlu0 %v3784_v38, %s7193_s12 }
0x25c3   :  { %v3794_v40 = vpop.permute.xlu1 %3793 }
0x25c4   :  { %v3796_v41 = vmul.f32 %v6381_v39, %v3794_v40 }
0x25c6   :  { %3798 = vrot.lane.b32.xlu0 %v3796_v41, %s7192_s21 }
0x25ca   :  { %3809 = vrot.lane.b32.xlu0 %v3607_v10, %s7156_s15 }
0x2634   :  { %v3816_v42 = vpop.permute.xlu0 %3815 }
0x2635   :  { %3824 = vst.msk [vmem:[#allocation4 + $0x8] sm:$0x3] %vm690_vm1, %v3816_v42  ;;  %3818 = vst.msk [vmem:[#allocation6] sm:$0x3] %vm690_vm1, %v3816_v42 }
0x2638   :  { %v3799_v43 = vpop.permute.xlu0 %3798 }
0x2639   :  { %v3801_v45 = vadd.f32 %v3799_v43, %v3755_v27 }
0x263b   :  { %6382 = vtanh.f32 %v3801_v45 }
0x263c   :  { %v3826_v46 = vld [vmem:[#allocation6] sm:$0x3]  ;;  %v3810_v50 = vpop.permute.xlu0 %3809 }
0x263d   :  { %5711 = vmatmul.mubr.msk.f32.vlgmr.msra.gmra.mrb[34].mxu1 %vm712_vm3, %v3826_v46  ;;  %v3812_v54 = vmul.f32 %v6381_v39, %v3810_v50 }
0x263e   :  { %6072 = vmatpush3.bf16.msra.mxu1 %v7795_v20  ;;  %5732 = vmatprep.mubr.msk.f32.mxu1 %vm7191_vm2, %v7190_v44 }
0x263f   :  { %6073 = vmatprep.subr.bf16.mxu1 %v7189_v0 }
0x2642   :  { %6075 = vmatpush3.bf16.msra.mxu1 %v7801_v25 }
0x2643   :  { %6082 = vmatprep.subr.bf16.mxu1 %v7189_v0 }
0x2645   :  { %v6383_v49 = vpop.eup %6382 }
0x2646   :  { %3805 = vrot.lane.b32.xlu1 %v6383_v49, %s7193_s12 }
0x26b8   :  { %v3806_v53 = vpop.permute.xlu1 %3805 }
0x26b9   :  { %v3808_v55 = vmul.f32 %v3806_v53, %v3803_v51 }
0x26bb   :  { %v3813_v47 = vadd.f32 %v3812_v54, %v3808_v55 }
0x26bd   :  { %3820 = vrot.lane.b32.xlu1 %v3813_v47, %s7193_s12 }
0x2710   :  { %v3897_v58 = vpop.f32.mrb[34].mxu1 }
0x2711   :  { %v3898_v52 = vadd.f32 %v7823_v48, %v3897_v58  ;;  %v5712_v7 = vpop.f32.mrb[35].mxu1  ;;  %v4195_v58 = vld [vmem:[#allocation3 + $0xc] sm:$0x3] }
0x2713   :  { %3984 = vrot.lane.b32.xlu0 %v3898_v52, %s7192_s21  ;;  %v3976_v1 = vadd.f32 %v3974_v63, %v3898_v52 }
0x2715   :  { %v5145_v2 = vmul.f32 -1.442695, %v3976_v1 }
0x2717   :  { %6384 = vpow2.f32 %v5145_v2 }
0x2721   :  { %v6385_v3 = vpop.eup %6384 }
0x2722   :  { %v3980_v57 = vadd.f32 1.0, %v6385_v3 }
0x2724   :  { %6386 = vrcp.f32 %v3980_v57 }
0x272e   :  { %v6387_v4 = vpop.eup %6386 }
0x272f   :  { %v3821_v60 = vpop.permute.xlu1 %3820  ;;  %v3994_v29 = vsub.f32 1.0, %v6387_v4 }
0x2730   :  { %3825 = vst.msk [vmem:[#allocation5 + $0x8] sm:$0x3] %vm690_vm1, %v3821_v60  ;;  %3823 = vst.msk [vmem:[#allocation7] sm:$0x3] %vm690_vm1, %v3821_v60 }
0x2737   :  { %v3827_v62 = vld [vmem:[#allocation7] sm:$0x3] }
0x2738   :  { %5722 = vmatmul.mubr.msk.f32.vlgmr.msra.gmra.mrb[28].mxu0 %vm712_vm3, %v3827_v62 }
0x2739   :  { %6078 = vmatpush3.bf16.msra.mxu0 %v7830_v56  ;;  %5743 = vmatprep.mubr.msk.f32.mxu0 %vm7191_vm2, %v7190_v44 }
0x273a   :  { %6079 = vmatprep.subr.bf16.mxu0 %v7189_v0 }
0x273d   :  { %6081 = vmatpush3.bf16.msra.mxu0 %v7834_v59 }
0x273e   :  { %6088 = vmatprep.subr.bf16.mxu0 %v7189_v0 }
0x2785   :  { %v3985_v5 = vpop.permute.xlu0 %3984 }
0x2786   :  { %v3987_v61 = vmul.f32 %v6387_v4, %v3985_v5 }
0x2788   :  { %3989 = vrot.lane.b32.xlu1 %v3987_v61, %s7192_s21 }
0x278c   :  { %4000 = vrot.lane.b32.xlu1 %v3826_v46, %s7156_s15 }
0x27fa   :  { %v3990_v6 = vpop.permute.xlu1 %3989 }
0x27fb   :  { %v3992_v8 = vadd.f32 %v3990_v6, %v3974_v63 }
0x27fd   :  { %6388 = vtanh.f32 %v3992_v8 }
0x27fe   :  { %v4001_v19 = vpop.permute.xlu1 %4000 }
0x27ff   :  { %v4003_v22 = vmul.f32 %v6387_v4, %v4001_v19 }
0x2807   :  { %v6389_v9 = vpop.eup %6388 }
0x2808   :  { %3996 = vrot.lane.b32.xlu0 %v6389_v9, %s7193_s12 }
0x280b   :  { %v3970_v10 = vpop.f32.mrb[28].mxu0 }
0x280c   :  { %v3971_v11 = vadd.f32 %v7854_v14, %v3970_v10  ;;  %v5723_v12 = vpop.f32.mrb[29].mxu0 }
0x280e   :  { %4013 = vrot.lane.b32.xlu1 %v3971_v11, %s7192_s21  ;;  %v4005_v15 = vadd.f32 %v3975_v13, %v3971_v11  ;;  %v4489_v11 = vld [vmem:[#allocation4] sm:$0xff] }
0x2810   :  { %v5146_v16 = vmul.f32 -1.442695, %v4005_v15 }
0x2812   :  { %6390 = vpow2.f32 %v5146_v16 }
0x281c   :  { %v6391_v17 = vpop.eup %6390 }
0x281d   :  { %v4009_v18 = vadd.f32 1.0, %v6391_v17 }
0x281f   :  { %6392 = vrcp.f32 %v4009_v18 }
0x2829   :  { %v6393_v26 = vpop.eup %6392 }
0x282a   :  { %v4023_v36 = vsub.f32 1.0, %v6393_v26 }
0x287a   :  { %v3997_v21 = vpop.permute.xlu0 %3996 }
0x287b   :  { %v3999_v23 = vmul.f32 %v3997_v21, %v3994_v29  ;;  %v6430_v21 = vld [vmem:[#allocation23] ss:$0 sm:$0xff] }
0x287d   :  { %v4004_v24 = vadd.f32 %v4003_v22, %v3999_v23 }
0x287f   :  { %4035 = vrot.lane.b32.xlu0 %v4004_v24, %s7193_s12 }
0x2880   :  { %v4014_v27 = vpop.permute.xlu1 %4013 }
0x2881   :  { %v4016_v28 = vmul.f32 %v6393_v26, %v4014_v27  ;;  %v4414_v27 = vld [vmem:[#allocation2 + $0xe] sm:$0x3] }
0x2883   :  { %4018 = vrot.lane.b32.xlu0 %v4016_v28, %s7192_s21 }
0x2887   :  { %4029 = vrot.lane.b32.xlu0 %v3827_v62, %s7156_s15 }
0x28f1   :  { %v4036_v30 = vpop.permute.xlu0 %4035 }
0x28f2   :  { %4044 = vst.msk [vmem:[#allocation4 + $0xa] sm:$0x3] %vm690_vm1, %v4036_v30  ;;  %4038 = vst.msk [vmem:[#allocation6] sm:$0x3] %vm690_vm1, %v4036_v30 }
0x28f5   :  { %v4019_v31 = vpop.permute.xlu0 %4018 }
0x28f6   :  { %v4021_v32 = vadd.f32 %v4019_v31, %v3975_v13 }
0x28f8   :  { %6394 = vtanh.f32 %v4021_v32 }
0x28f9   :  { %v4046_v33 = vld [vmem:[#allocation6] sm:$0x3]  ;;  %v4030_v35 = vpop.permute.xlu0 %4029 }
0x28fa   :  { %5733 = vmatmul.mubr.msk.f32.vlgmr.msra.gmra.mrb[36].mxu1 %vm712_vm3, %v4046_v33  ;;  %v4032_v38 = vmul.f32 %v6393_v26, %v4030_v35 }
0x28fb   :  { %6084 = vmatpush3.bf16.msra.mxu1 %v7795_v20  ;;  %5754 = vmatprep.mubr.msk.f32.mxu1 %vm7191_vm2, %v7190_v44 }
0x28fc   :  { %6085 = vmatprep.subr.bf16.mxu1 %v7189_v0 }
0x28ff   :  { %6087 = vmatpush3.bf16.msra.mxu1 %v7801_v25 }
0x2902   :  { %v6395_v34 = vpop.eup %6394 }
0x2903   :  { %4025 = vrot.lane.b32.xlu1 %v6395_v34, %s7193_s12 }
0x2975   :  { %v4026_v37 = vpop.permute.xlu1 %4025 }
0x2976   :  { %v4028_v39 = vmul.f32 %v4026_v37, %v4023_v36 }
0x2978   :  { %v4033_v40 = vadd.f32 %v4032_v38, %v4028_v39 }
0x297a   :  { %4040 = vrot.lane.b32.xlu1 %v4033_v40, %s7193_s12  ;;  %v6431_v40 = vld [vmem:[#allocation35] ss:$0 sm:$0xff] }
0x29cd   :  { %v4117_v41 = vpop.f32.mrb[36].mxu1 }
0x29ce   :  { %v4118_v20 = vadd.f32 %v7823_v48, %v4117_v41  ;;  %v5734_v42 = vpop.f32.mrb[37].mxu1  ;;  %v4194_v48 = vld [vmem:[#allocation2 + $0xc] sm:$0x3] }
0x29cf   :  { %v4415_v42 = vld [vmem:[#allocation3 + $0xe] sm:$0x3] }
0x29d0   :  { %4204 = vrot.lane.b32.xlu0 %v4118_v20, %s7192_s21  ;;  %v4196_v45 = vadd.f32 %v4194_v48, %v4118_v20 }
0x29d2   :  { %v5149_v46 = vmul.f32 -1.442695, %v4196_v45  ;;  %v4493_v45 = vld [vmem:[#allocation37] sm:$0xff] }
0x29d4   :  { %6396 = vpow2.f32 %v5149_v46  ;;  %v4494_v46 = vld [vmem:[#allocation37 + $0x8] sm:$0xff] }
0x29de   :  { %v6397_v49 = vpop.eup %6396 }
0x29df   :  { %v4200_v50 = vadd.f32 1.0, %v6397_v49 }
0x29e1   :  { %6398 = vrcp.f32 %v4200_v50  ;;  %v6094_v50 = vpack.c.bf16 %v4494_v46, %v4493_v45 }
0x29e3   :  { %6095 = vmatprep.subr.bf16.mxu1 %v6094_v50 }
0x29eb   :  { %v6399_v51 = vpop.eup %6398 }
0x29ec   :  { %v4041_v43 = vpop.permute.xlu1 %4040  ;;  %v4214_v1 = vsub.f32 1.0, %v6399_v51 }
0x29ed   :  { %4045 = vst.msk [vmem:[#allocation5 + $0xa] sm:$0x3] %vm690_vm1, %v4041_v43  ;;  %4043 = vst.msk [vmem:[#allocation7] sm:$0x3] %vm690_vm1, %v4041_v43 }
0x29f4   :  { %v4047_v25 = vld [vmem:[#allocation7] sm:$0x3] }
0x29f5   :  { %5744 = vmatmul.mubr.msk.f32.vlgmr.msra.gmra.mrb[30].mxu0 %vm712_vm3, %v4047_v25 }
0x29f6   :  { %6090 = vmatpush3.bf16.msra.mxu0 %v7830_v56  ;;  %5765 = vmatprep.mubr.msk.f32.mxu0 %vm7191_vm2, %v7190_v44 }
0x29f7   :  { %6091 = vmatprep.subr.bf16.mxu0 %v7189_v0 }
0x29fa   :  { %6093 = vmatpush3.bf16.msra.mxu0 %v7834_v59 }
0x2a42   :  { %v4205_v53 = vpop.permute.xlu0 %4204 }
0x2a43   :  { %v4207_v54 = vmul.f32 %v6399_v51, %v4205_v53  ;;  %v4496_v53 = vld [vmem:[#allocation37 + $0x18] sm:$0xff] }
0x2a45   :  { %4209 = vrot.lane.b32.xlu1 %v4207_v54, %s7192_s21 }
0x2a49   :  { %4220 = vrot.lane.b32.xlu1 %v4046_v33, %s7156_s15 }
0x2ab7   :  { %v4210_v56 = vpop.permute.xlu1 %4209 }
0x2ab8   :  { %v4212_v44 = vadd.f32 %v4210_v56, %v4194_v48 }
0x2aba   :  { %6400 = vtanh.f32 %v4212_v44 }
0x2abb   :  { %v4221_v63 = vpop.permute.xlu1 %4220 }
0x2abc   :  { %v4223_v3 = vmul.f32 %v6399_v51, %v4221_v63  ;;  %v4495_v51 = vld [vmem:[#allocation37 + $0x10] sm:$0xff] }
0x2abd   :  { %v6098_v54 = vpack.c.bf16 %v4496_v53, %v4495_v51 }
0x2ac4   :  { %v6401_v0 = vpop.eup %6400 }
0x2ac5   :  { %4216 = vrot.lane.b32.xlu0 %v6401_v0, %s7193_s12 }
0x2ac8   :  { %v4190_v59 = vpop.f32.mrb[30].mxu0 }
0x2ac9   :  { %v4191_v55 = vadd.f32 %v7854_v14, %v4190_v59  ;;  %v5745_v47 = vpop.f32.mrb[31].mxu0 }
0x2acb   :  { %4233 = vrot.lane.b32.xlu1 %v4191_v55, %s7192_s21  ;;  %v4225_v52 = vadd.f32 %v4195_v58, %v4191_v55 }
0x2acd   :  { %v5150_v7 = vmul.f32 -1.442695, %v4225_v52 }
0x2acf   :  { %6402 = vpow2.f32 %v5150_v7 }
0x2ad9   :  { %v6403_v60 = vpop.eup %6402 }
0x2ada   :  { %v4229_v62 = vadd.f32 1.0, %v6403_v60 }
0x2adc   :  { %6404 = vrcp.f32 %v4229_v62 }
0x2ae6   :  { %v6405_v5 = vpop.eup %6404 }
0x2ae7   :  { %v4243_v15 = vsub.f32 1.0, %v6405_v5 }
0x2b37   :  { %v4217_v2 = vpop.permute.xlu0 %4216 }
0x2b38   :  { %v4219_v57 = vmul.f32 %v4217_v2, %v4214_v1 }
0x2b3a   :  { %v4224_v4 = vadd.f32 %v4223_v3, %v4219_v57  ;;  %v4591_v3 = vld [vmem:[#allocation40] sm:$0xff]  ;;  %v4592_v57 = vld [vmem:[#allocation40 + $0x8] sm:$0xff] }
0x2b3c   :  { %4255 = vrot.lane.b32.xlu0 %v4224_v4, %s7193_s12  ;;  %v4593_v4 = vld [vmem:[#allocation40 + $0x10] sm:$0xff] }
0x2b3d   :  { %v4234_v14 = vpop.permute.xlu1 %4233 }
0x2b3e   :  { %v4236_v61 = vmul.f32 %v6405_v5, %v4234_v14  ;;  %v4594_v14 = vld [vmem:[#allocation40 + $0x18] sm:$0xff] }
0x2b40   :  { %4238 = vrot.lane.b32.xlu0 %v4236_v61, %s7192_s21  ;;  %v6106_v61 = vpack.c.bf16 %v4594_v14, %v4593_v4 }
0x2b44   :  { %4249 = vrot.lane.b32.xlu0 %v4047_v25, %s7156_s15 }
0x2bae   :  { %v4256_v6 = vpop.permute.xlu0 %4255 }
0x2baf   :  { %4264 = vst.msk [vmem:[#allocation4 + $0xc] sm:$0x3] %vm690_vm1, %v4256_v6  ;;  %4258 = vst.msk [vmem:[#allocation6] sm:$0x3] %vm690_vm1, %v4256_v6 }
0x2bb2   :  { %v4239_v8 = vpop.permute.xlu0 %4238 }
0x2bb3   :  { %v4241_v9 = vadd.f32 %v4239_v8, %v4195_v58  ;;  %v4595_v8 = vld [vmem:[#allocation40 + $0x20] sm:$0xff] }
0x2bb5   :  { %6406 = vtanh.f32 %v4241_v9  ;;  %v4596_v9 = vld [vmem:[#allocation40 + $0x28] sm:$0xff] }
0x2bb6   :  { %v4266_v10 = vld [vmem:[#allocation6] sm:$0x3]  ;;  %v4250_v13 = vpop.permute.xlu0 %4249 }
0x2bb7   :  { %5755 = vmatmul.mubr.msk.f32.vlgmr.msra.gmra.mrb[38].mxu1 %vm712_vm3, %v4266_v10  ;;  %v4252_v17 = vmul.f32 %v6405_v5, %v4250_v13  ;;  %v6102_v5 = vpack.c.bf16 %v4592_v57, %v4591_v3  ;;  %v5164_v57 = vld [vmem:[#allocation47] ss:$0 sm:$0xff] }
0x2bb8   :  { %5776 = vmatprep.mubr.msk.f32.mxu1 %vm712_vm3, %v4489_v11  ;;  %6097 = vmatpush3.bf16.msra.mxu1 %v6094_v50  ;;  %v4597_v11 = vld [vmem:[#allocation40 + $0x30] sm:$0xff] }
0x2bb9   :  { %6099 = vmatprep.subr.bf16.mxu1 %v6098_v54  ;;  %6103 = vmatprep.subr.bf16.mxu0 %v6102_v5  ;;  %v4491_v50 = vld [vmem:[#allocation5] sm:$0xff] }
0x2bbc   :  { %6101 = vmatpush3.bf16.msra.mxu1 %v6098_v54  ;;  %v4884_v54 = vld [vmem:[#allocation49] sm:$0xff] }
0x2bbf   :  { %v6407_v12 = vpop.eup %6406 }
0x2bc0   :  { %4245 = vrot.lane.b32.xlu1 %v6407_v12, %s7193_s12  ;;  %v4598_v12 = vld [vmem:[#allocation40 + $0x38] sm:$0xff] }
0x2bc1   :  { %v6114_v13 = vpack.c.bf16 %v4598_v12, %v4597_v11 }
0x2c32   :  { %v4246_v16 = vpop.permute.xlu1 %4245 }
0x2c33   :  { %v4248_v18 = vmul.f32 %v4246_v16, %v4243_v15  ;;  %v4786_v15 = vld [vmem:[#allocation46] sm:$0xff]  ;;  %v4787_v16 = vld [vmem:[#allocation46 + $0x8] sm:$0xff] }
0x2c35   :  { %v4253_v19 = vadd.f32 %v4252_v17, %v4248_v18  ;;  %v6134_v17 = vpack.c.bf16 %v4787_v16, %v4786_v15 }
0x2c37   :  { %4260 = vrot.lane.b32.xlu1 %v4253_v19, %s7193_s12 }
0x2c8a   :  { %v4337_v29 = vpop.f32.mrb[38].mxu1 }
0x2c8b   :  { %v4338_v22 = vadd.f32 %v6430_v21, %v4337_v29  ;;  %v5756_v23 = vpop.f32.mrb[39].mxu1  ;;  %v4688_v21 = vld [vmem:[#allocation43] sm:$0xff] }
0x2c8c   :  { %v4690_v23 = vld [vmem:[#allocation43 + $0x10] sm:$0xff] }
0x2c8d   :  { %4424 = vrot.lane.b32.xlu0 %v4338_v22, %s7192_s21  ;;  %v4416_v28 = vadd.f32 %v4414_v27, %v4338_v22  ;;  %v4689_v22 = vld [vmem:[#allocation43 + $0x8] sm:$0xff] }
0x2c8f   :  { %v5153_v30 = vmul.f32 -1.442695, %v4416_v28  ;;  %v4691_v28 = vld [vmem:[#allocation43 + $0x18] sm:$0xff] }
0x2c91   :  { %6408 = vpow2.f32 %v5153_v30  ;;  %v6122_v30 = vpack.c.bf16 %v4691_v28, %v4690_v23 }
0x2c9b   :  { %v6409_v31 = vpop.eup %6408 }
0x2c9c   :  { %v4420_v32 = vadd.f32 1.0, %v6409_v31  ;;  %v4692_v31 = vld [vmem:[#allocation43 + $0x20] sm:$0xff] }
0x2c9e   :  { %6410 = vrcp.f32 %v4420_v32  ;;  %v4693_v32 = vld [vmem:[#allocation43 + $0x28] sm:$0xff] }
0x2ca8   :  { %v6411_v33 = vpop.eup %6410 }
0x2ca9   :  { %v4261_v24 = vpop.permute.xlu1 %4260  ;;  %v4434_v44 = vsub.f32 1.0, %v6411_v33 }
0x2caa   :  { %4265 = vst.msk [vmem:[#allocation5 + $0xc] sm:$0x3] %vm690_vm1, %v4261_v24  ;;  %4263 = vst.msk [vmem:[#allocation7] sm:$0x3] %vm690_vm1, %v4261_v24 }
0x2cb1   :  { %v4267_v26 = vld [vmem:[#allocation7] sm:$0x3] }
0x2cb2   :  { %5766 = vmatmul.mubr.msk.f32.vlgmr.msra.gmra.mrb[32].mxu0 %vm712_vm3, %v4267_v26 }
0x2cb3   :  { %6105 = vmatpush3.bf16.msra.mxu0 %v6102_v5 }
0x2cb4   :  { %6107 = vmatprep.subr.bf16.mxu0 %v6106_v61 }
0x2cb7   :  { %6109 = vmatpush3.bf16.msra.mxu0 %v6106_v61 }
0x2cff   :  { %v4425_v34 = vpop.permute.xlu0 %4424 }
0x2d00   :  { %v4427_v35 = vmul.f32 %v6411_v33, %v4425_v34  ;;  %v6126_v34 = vpack.c.bf16 %v4693_v32, %v4692_v31 }
0x2d02   :  { %4429 = vrot.lane.b32.xlu1 %v4427_v35, %s7192_s21  ;;  %v4694_v35 = vld [vmem:[#allocation43 + $0x30] sm:$0xff] }
0x2d06   :  { %4440 = vrot.lane.b32.xlu1 %v4266_v10, %s7156_s15  ;;  %v6110_v10 = vpack.c.bf16 %v4596_v9, %v4595_v8 }
0x2d08   :  { %6111 = vmatprep.subr.bf16.mxu0 %v6110_v10 }
0x2d09   :  { %6113 = vmatpush3.bf16.msra.mxu0 %v6110_v10 }
0x2d0a   :  { %6115 = vmatprep.subr.bf16.mxu0 %v6114_v13 }
0x2d0d   :  { %6117 = vmatpush3.bf16.msra.mxu0 %v6114_v13 }
0x2d0e   :  { %6135 = vmatprep.subr.bf16.mxu0 %v6134_v17 }
0x2d74   :  { %v4430_v36 = vpop.permute.xlu1 %4429 }
0x2d75   :  { %v4432_v37 = vadd.f32 %v4430_v36, %v4414_v27  ;;  %v6118_v27 = vpack.c.bf16 %v4689_v22, %v4688_v21  ;;  %v4695_v36 = vld [vmem:[#allocation43 + $0x38] sm:$0xff] }
0x2d77   :  { %6412 = vtanh.f32 %v4432_v37  ;;  %6119 = vmatprep.subr.bf16.mxu1 %v6118_v27  ;;  %v6130_v37 = vpack.c.bf16 %v4695_v36, %v4694_v35 }
0x2d78   :  { %v4441_v56 = vpop.permute.xlu1 %4440 }
0x2d79   :  { %v4443_v59 = vmul.f32 %v6411_v33, %v4441_v56  ;;  %v4885_v56 = vld [vmem:[#allocation49 + $0x8] sm:$0xff] }
0x2d81   :  { %v6413_v38 = vpop.eup %6412 }
0x2d82   :  { %4436 = vrot.lane.b32.xlu0 %v6413_v38, %s7193_s12  ;;  %v5155_v38 = vld [vmem:[#allocation38] ss:$0 sm:$0xff] }
0x2d85   :  { %v4410_v39 = vpop.f32.mrb[32].mxu0 }
0x2d86   :  { %v4411_v41 = vadd.f32 %v6431_v40, %v4410_v39  ;;  %v5767_v20 = vpop.f32.mrb[33].mxu0 }
0x2d88   :  { %4453 = vrot.lane.b32.xlu1 %v4411_v41, %s7192_s21  ;;  %v4445_v43 = vadd.f32 %v4415_v42, %v4411_v41 }
0x2d8a   :  { %v5154_v25 = vmul.f32 -1.442695, %v4445_v43  ;;  %v4788_v43 = vld [vmem:[#allocation46 + $0x10] sm:$0xff] }
0x2d8c   :  { %6414 = vpow2.f32 %v5154_v25  ;;  %v4789_v25 = vld [vmem:[#allocation46 + $0x18] sm:$0xff] }
0x2d96   :  { %v6415_v48 = vpop.eup %6414 }
0x2d97   :  { %v4449_v49 = vadd.f32 1.0, %v6415_v48 }
0x2d99   :  { %6416 = vrcp.f32 %v4449_v49  ;;  %v6138_v49 = vpack.c.bf16 %v4789_v25, %v4788_v43 }
0x2da3   :  { %v6417_v58 = vpop.eup %6416 }
0x2da4   :  { %v4463_v19 = vsub.f32 1.0, %v6417_v58 }
0x2df4   :  { %v4437_v0 = vpop.permute.xlu0 %4436 }
0x2df5   :  { %v4439_v55 = vmul.f32 %v4437_v0, %v4434_v44  ;;  %v6142_v44 = vpack.c.bf16 %v4885_v56, %v4884_v54  ;;  %v4886_v0 = vld [vmem:[#allocation49 + $0x10] sm:$0xff] }
0x2df7   :  { %v4444_v47 = vadd.f32 %v4443_v59, %v4439_v55  ;;  %v4887_v59 = vld [vmem:[#allocation49 + $0x18] sm:$0xff] }
0x2df9   :  { %4475 = vrot.lane.b32.xlu0 %v4444_v47, %s7193_s12  ;;  %v6146_v47 = vpack.c.bf16 %v4887_v59, %v4886_v0 }
0x2dfa   :  { %v4454_v52 = vpop.permute.xlu1 %4453 }
0x2dfb   :  { %v4456_v7 = vmul.f32 %v6417_v58, %v4454_v52  ;;  %v4888_v52 = vld [vmem:[#allocation49 + $0x20] sm:$0xff] }
0x2dfd   :  { %4458 = vrot.lane.b32.xlu0 %v4456_v7, %s7192_s21  ;;  %v4889_v7 = vld [vmem:[#allocation49 + $0x28] sm:$0xff] }
0x2e01   :  { %4469 = vrot.lane.b32.xlu0 %v4267_v26, %s7156_s15 }
0x2e6b   :  { %v4476_v60 = vpop.permute.xlu0 %4475 }
0x2e6c   :  { %4484 = vst.msk [vmem:[#allocation4 + $0xe] sm:$0x3] %vm690_vm1, %v4476_v60  ;;  %4478 = vst.msk [vmem:[#allocation6] sm:$0x3] %vm690_vm1, %v4476_v60  ;;  %v6150_v60 = vpack.c.bf16 %v4889_v7, %v4888_v52 }
0x2e6f   :  { %v4459_v62 = vpop.permute.xlu0 %4458 }
0x2e70   :  { %v4461_v63 = vadd.f32 %v4459_v62, %v4415_v42  ;;  %v4890_v62 = vld [vmem:[#allocation49 + $0x30] sm:$0xff] }
0x2e72   :  { %6418 = vtanh.f32 %v4461_v63  ;;  %v4891_v63 = vld [vmem:[#allocation49 + $0x38] sm:$0xff] }
0x2e73   :  { %v4490_v1 = vld [vmem:[#allocation4 + $0x8] sm:$0xff]  ;;  %v4486_v2 = vld [vmem:[#allocation6] sm:$0x3]  ;;  %v4470_v18 = vpop.permute.xlu0 %4469 }
0x2e74   :  { %5777 = vmatmul.mubr.msk.f32.vlgmr.msra.gmra.mrb[40].mxu1 %vm712_vm3, %v4490_v1  ;;  %4488 = vst.msk [vmem:[#allocation53 + $0x2] sm:$0x3] %vm690_vm1, %v4486_v2  ;;  %v4472_v24 = vmul.f32 %v6417_v58, %v4470_v18  ;;  %v6154_v1 = vpack.c.bf16 %v4891_v63, %v4890_v62 }
0x2e75   :  { %6121 = vmatpush3.bf16.msra.mxu1 %v6118_v27 }
0x2e76   :  { %6123 = vmatprep.subr.bf16.mxu1 %v6122_v30 }
0x2e79   :  { %6125 = vmatpush3.bf16.msra.mxu1 %v6122_v30 }
0x2e7a   :  { %6127 = vmatprep.subr.bf16.mxu1 %v6126_v34 }
0x2e7c   :  { %v6419_v6 = vpop.eup %6418 }
0x2e7d   :  { %4465 = vrot.lane.b32.xlu1 %v6419_v6, %s7193_s12  ;;  %6129 = vmatpush3.bf16.msra.mxu1 %v6126_v34 }
0x2e7e   :  { %6131 = vmatprep.subr.bf16.mxu1 %v6130_v37 }
0x2e81   :  { %6133 = vmatpush3.bf16.msra.mxu1 %v6130_v37 }
0x2e82   :  { %6143 = vmatprep.subr.bf16.mxu1 %v6142_v44 }
0x2eef   :  { %v4466_v29 = vpop.permute.xlu1 %4465 }
0x2ef0   :  { %v4468_v26 = vmul.f32 %v4466_v29, %v4463_v19 }
0x2ef2   :  { %v4473_v33 = vadd.f32 %v4472_v24, %v4468_v26 }
0x2ef4   :  { %4480 = vrot.lane.b32.xlu1 %v4473_v33, %s7193_s12 }
0x2f47   :  { %v5778_v39 = vpop.f32.mrb[40].mxu1 }
0x2f48   :  { %v4582_v40 = vadd.f32 %v5778_v39, %v5155_v38  ;;  %v4576_v41 = vpop.f32.mrb[41].mxu1 }
0x2f49   :  { %v4577_v20 = vadd.f32 %v5155_v38, %v4576_v41 }
0x2f4a   :  { %vm4586_vm6 = vcmp.gt.f32.partialorder %v4582_v40, 0.0  ;;  %v4588_v42 = vmul.f32 0.01, %v4582_v40 }
0x2f4b   :  { %vm4585_vm7 = vcmp.gt.f32.partialorder %v4577_v20, 0.0  ;;  %v4587_v48 = vmul.f32 0.01, %v4577_v20 }
0x2f4c   :  { %v4590_v45 = vsel %vm4586_vm6, %v4582_v40, %v4588_v42 }
0x2f4d   :  { %4705 = vrot.lane.b32.xlu1 %v4590_v45, %s7192_s21  ;;  %v4589_v46 = vsel %vm4585_vm7, %v4577_v20, %v4587_v48 }
0x2f4e   :  { %5795 = vmatprep.mubr.msk.f32.mxu0 %vm4606_vm8, %v4589_v46  ;;  %4703 = vrot.lane.b32.xlu0 %v4589_v46, %s7192_s21 }
0x2f4f   :  { %5796 = vmatmul.mubr.msk.f32.vlgmr.msra.gmra.mrb[34].mxu0 %vm4606_vm8, %v4590_v45 }
0x2f50   :  { %5825 = vmatprep.mubr.msk.f32.mxu0 %vm712_vm3, %v4491_v50  ;;  %6137 = vmatpush3.bf16.msra.mxu0 %v6134_v17 }
0x2f51   :  { %6139 = vmatprep.subr.bf16.mxu0 %v6138_v49 }
0x2f54   :  { %6141 = vmatpush3.bf16.msra.mxu0 %v6138_v49 }
0x2f66   :  { %v4481_v51 = vpop.permute.xlu1 %4480 }
0x2f67   :  { %4483 = vst.msk [vmem:[#allocation7] sm:$0x3] %vm690_vm1, %v4481_v51  ;;  %4485 = vst.msk [vmem:[#allocation5 + $0xe] sm:$0x3] %vm690_vm1, %v4481_v51 }
0x2f6e   :  { %v4492_v53 = vld [vmem:[#allocation5 + $0x8] sm:$0xff] }
0x2f6f   :  { %5826 = vmatmul.mubr.msk.f32.vlgmr.msra.gmra.mrb[36].mxu0 %vm712_vm3, %v4492_v53 }
0x2fbf   :  { %v4706_v58 = vpop.permute.xlu1 %4705 }
0x2fc0   :  { %v4704_v55 = vpop.permute.xlu0 %4703 }
0x2fc1   :  { %5814 = vmatprep.mubr.msk.f32.mxu1 %vm4606_vm8, %v4704_v55 }
0x2fc2   :  { %5815 = vmatmul.mubr.msk.f32.vlgmr.msra.gmra.mrb[42].mxu1 %vm4606_vm8, %v4706_v58 }
0x2fc3   :  { %6145 = vmatpush3.bf16.msra.mxu1 %v6142_v44 }
0x2fc4   :  { %6147 = vmatprep.subr.bf16.mxu1 %v6146_v47 }
0x2fc7   :  { %6149 = vmatpush3.bf16.msra.mxu1 %v6146_v47 }
0x2fc8   :  { %6151 = vmatprep.subr.bf16.mxu1 %v6150_v60 }
0x2fcb   :  { %6153 = vmatpush3.bf16.msra.mxu1 %v6150_v60 }
0x2fcc   :  { %6155 = vmatprep.subr.bf16.mxu1 %v6154_v1 }
0x2fcf   :  { %6157 = vmatpush3.bf16.msra.mxu1 %v6154_v1 }
0x3022   :  { %v5797_v2 = vpop.f32.mrb[34].mxu0 }
0x3023   :  { %v4679_v3 = vpop.f32.mrb[35].mxu0 }
0x3042   :  { %v5827_v4 = vpop.f32.mrb[36].mxu0 }
0x3043   :  { %v4875_v5 = vadd.f32 %v5827_v4, %v5164_v57  ;;  %v4869_v14 = vpop.f32.mrb[37].mxu0 }
0x3044   :  { %v4870_v61 = vadd.f32 %v5164_v57, %v4869_v14 }
0x3045   :  { %v4881_v6 = vmul.f32 0.01, %v4875_v5  ;;  %vm4879_vm9 = vcmp.gt.f32.partialorder %v4875_v5, 0.0 }
0x3046   :  { %vm4878_vm10 = vcmp.gt.f32.partialorder %v4870_v61, 0.0  ;;  %v4880_v8 = vmul.f32 0.01, %v4870_v61 }
0x3047   :  { %v4883_v10 = vsel %vm4879_vm9, %v4875_v5, %v4881_v6 }
0x3048   :  { %v4882_v9 = vsel %vm4878_vm10, %v4870_v61, %v4880_v8 }
0x3049   :  { %5844 = vmatprep.mubr.msk.f32.mxu1 %vm4606_vm8, %v4882_v9 }
0x304a   :  { %5845 = vmatmul.mubr.msk.f32.vlgmr.msra.gmra.mrb[44].mxu1 %vm4606_vm8, %v4883_v10 }
0x3095   :  { %v5816_v11 = vpop.f32.mrb[42].mxu1 }
0x3096   :  { %v4777_v12 = vpop.f32.mrb[43].mxu1 }
0x3097   :  { %7059 = shalt.err (!%p7056_p4)
}
0x3098   :  { %s7060_s5 = scalar_lea.hbm %s7349_s13, 64 }
0x3099   :  { %p7061_p5 = scmp.ne.s32.totalorder %s7349_s13, %s7060_s5  ;;  %p7064_p6 = scmp.lt.u32.totalorder %s7060_s5, %s7349_s13 }
0x309b   :  { %p7066_p7 = pnand %p7064_p6, %p7061_p5 }
0x309d   :  { %7069 = shalt.err (!%p7066_p7)
}
0x309e   :  { %5022 = dma.vmem_to_hbm [thread:$0]  %s5017_s24, 64, %s7349_s13, [#allocation54], %s7156_s15, %s7156_s15, %s7157_s16   ;;  %v5161_v13 = vld [vmem:[#allocation44] ss:$0 sm:$0xff]  ;;  %v5167_v23 = vld [vmem:[#allocation50] ss:$0 sm:$0xff] }
0x309f   :  { %v4783_v15 = vadd.f32 %v5816_v11, %v5161_v13  ;;  %v4778_v16 = vadd.f32 %v5161_v13, %v4777_v12  ;;  %v5158_v24 = vld [vmem:[#allocation41] ss:$0 sm:$0xff]  ;;  %s7195_s13 = smov [#allocation52]   ;;  %vm4996_vm11 = vcmask 130048  }
0x30a0   :  { %v4685_v33 = vadd.f32 %v5797_v2, %v5158_v24  ;;  %s5004_s15 = sshll.u32 %s7195_s13, 4  ;;  %v4680_v35 = vadd.f32 %v5158_v24, %v4679_v3  ;;  %s5005_s15 = int_to_ptr.vmem [resolvable:$true] %s5004_s15 }
0x30a1   :  { %v5171_v17 = vmul.f32 -1.442695, %v4783_v15  ;;  %v5170_v18 = vmul.f32 -1.442695, %v4778_v16  ;;  %s7070_s16 = scalar_lea.vmem %s5005_s15, 256  ;;  %p7075_p9 = scmp.lt.s32.totalorder %s5005_s15, %s5005_s15 }
0x30a2   :  { %p7071_p8 = scmp.ne.s32.totalorder %s5005_s15, %s7070_s16  ;;  %p7076_p10 = scmp.lt.s32.totalorder %s7070_s16, %s7070_s16 }
0x30a3   :  { %6420 = vpow2.f32 %v5171_v17 }
0x30a4   :  { %6422 = vpow2.f32 %v5170_v18  ;;  %p7077_p11 = por %p7076_p10, %p7075_p9 }
0x30a6   :  { %p7078_p12 = pnand %p7077_p11, %p7071_p8 }
0x30ad   :  { %v6421_v19 = vpop.eup %6420 }
0x30ae   :  { %v6423_v29 = vpop.eup %6422  ;;  %v4987_v21 = vadd.f32 1.0, %v6421_v19 }
0x30af   :  { %v4986_v22 = vadd.f32 1.0, %v6423_v29 }
0x30b0   :  { %6424 = vrcp.f32 %v4987_v21 }
0x30b1   :  { %6426 = vrcp.f32 %v4986_v22 }
0x30ba   :  { %v6425_v30 = vpop.eup %6424 }
0x30bb   :  { %v6427_v32 = vpop.eup %6426 }
0x311d   :  { %v5846_v26 = vpop.f32.mrb[44].mxu1 }
0x311e   :  { %v4977_v27 = vadd.f32 %v5846_v26, %v5167_v23  ;;  %v4971_v28 = vpop.f32.mrb[45].mxu1 }
0x311f   :  { %v4972_v31 = vadd.f32 %v5167_v23, %v4971_v28 }
0x3120   :  { %v4993_v34 = vmul.f32 %v6425_v30, %v4977_v27 }
0x3121   :  { %v4992_v36 = vmul.f32 %v6427_v32, %v4972_v31 }
0x3122   :  { %v4995_v37 = vadd.f32 %v4993_v34, %v4685_v33 }
0x3123   :  { %v4994_v38 = vadd.f32 %v4992_v36, %v4680_v35 }
0x3124   :  { %4998 = vst.msk [vmem:[#allocation52 + $0x8] sm:$0xff] %vm4996_vm11, %v4995_v37 }
0x3125   :  { %4997 = vst.msk [vmem:[#allocation52] sm:$0xff] %vm4996_vm11, %v4994_v38 }
0x3126   :  { %7081 = shalt.err (!%p7078_p12)
}
0x3127   :  { %s7082_s23 = scalar_lea.hbm %s7344_s27, 256 }
0x3128   :  { %p7083_p13 = scmp.ne.s32.totalorder %s7344_s27, %s7082_s23  ;;  %p7086_p0 = scmp.lt.u32.totalorder %s7082_s23, %s7344_s27 }
0x312a   :  { %p7088_p1 = pnand %p7086_p0, %p7083_p13 }
0x312c   :  { %7091 = shalt.err (!%p7088_p1)
}
0x312d   :  { %5010 = dma.vmem_to_hbm [thread:$0]  %s5005_s15, 256, %s7344_s27, [#allocation10], %s7160_s2, %s7160_s2, %s7161_s9  }
0x312e   :  { %7122 = dma.done.wait [#allocation10], 256  }
0x312f   :  { %7123 = vsyncadd [#allocation10], 4294967040 }
0x3130   :  { %7124 = dma.done.wait [#allocation54], 64  }
0x3131   :  { %7125 = vsyncadd [#allocation54], 4294967232 }
0x3132   :  { %5029 = vsyncpa [#allocation9], 1 }
0x3133   :  { %5030 = vsyncpa [#allocation12], 1 }
0x3134   :  { %5031 = vsyncpa [#allocation15], 1 }
0x3135   :  { %5032 = vsyncpa [#allocation18], 1 }
0x3136   :  { %5033 = vsyncpa [#allocation21], 1 }
0x3137   :  { %5034 = vsyncpa [#allocation24], 1 }
0x3138   :  { %5035 = vsyncpa [#allocation27], 1 }
0x3139   :  { %5036 = vsyncpa [#allocation30], 1 }
0x313a   :  { %5037 = vsyncpa [#allocation33], 1 }
0x313b   :  { %5038 = vsyncpa [#allocation36], 1 }
0x313c   :  { %5039 = vsyncpa [#allocation39], 1 }
0x313d   :  { %5040 = vsyncpa [#allocation42], 1 }
0x313e   :  { %5041 = vsyncpa [#allocation45], 1 }
0x313f   :  { %5042 = vsyncpa [#allocation48], 1 }
0x3140   :  { %5043 = vsyncpa [#allocation51], 1 }
0x3141   :  { %5044 = vsyncpa [#allocation10], 1 }
0x3142   :  { %5045 = vsyncpa [#allocation54], 1 }

</bundles_post_ra>
